<compile_context>
chip_gen: v5e
topology: v5e:2x2
jax: 0.10.0
libtpu: 0.0.40
codegen_flags: <defaults>
</compile_context>

<pallas_src>
import functools
import math

import jax
import jax.numpy as jnp
from jax.experimental import pallas as pl
from jax.experimental.pallas import tpu as pltpu


def _scaled_embedding_kernel(ids_ref, w_ref, o_ref, acc_ref, *,
                             onehot_scale, out_scale, tv, n_vblocks):
    # ids_ref: (TB, 1) int32 | w_ref: (Vt, D) | o_ref: (TB, D) | acc_ref: (TB, D) f32
    ids = ids_ref[...]                                   # ids on the sublane axis
    tb = ids.shape[0]

    def onehot(vblock):
        # Lane iota compared against sublane ids: pure VPU, no cross-lane relayout.
        lane_iota = jax.lax.broadcasted_iota(jnp.int32, (tb, tv), 1) + vblock * tv
        return jnp.where(lane_iota == ids,
                         jnp.float32(onehot_scale),
                         jnp.float32(0.0)).astype(w_ref.dtype)

    def finish(acc_f32):
        if out_scale != 1.0:                             # static Python branch
            acc_f32 = acc_f32 * jnp.float32(out_scale)
        return acc_f32.astype(o_ref.dtype)

    if n_vblocks == 1:
        # Whole table resident in a single block: one MXU dot, store directly.
        o_ref[...] = finish(jnp.dot(onehot(0), w_ref[...],
                                    preferred_element_type=jnp.float32))
    else:
        v = pl.program_id(1)

        @pl.when(v == 0)
        def _():
            acc_ref[...] = jnp.zeros_like(acc_ref)

        acc_ref[...] += jnp.dot(onehot(v), w_ref[...],
                                preferred_element_type=jnp.float32)

        @pl.when(v == n_vblocks - 1)
        def _():
            o_ref[...] = finish(acc_ref[...])


def scaled_embedding(x, weight, *, tb=512, max_table_block_bytes=8 * 1024 * 1024):
    """x: integer token ids of any shape. weight: (vocab_size, d_model).
    Returns weight[x] * sqrt(d_model) with shape x.shape + (d_model,)."""
    vocab, d_model = weight.shape
    orig_shape = x.shape
    scale = math.sqrt(d_model)
    assert tb % 8 == 0, "token tile must be a multiple of 8 (sublane)"

    ids = x.reshape(-1, 1).astype(jnp.int32)             # (n, 1): ids on sublanes
    n = ids.shape[0]
    g = pl.cdiv(n, tb)                                   # partial last block is masked

    # --- vocab tiling: keep the whole table resident if it fits the budget ---
    bytes_per_row = d_model * weight.dtype.itemsize
    if vocab * bytes_per_row <= max_table_block_bytes:
        tv = vocab
    else:
        tv = max(256, int(max_table_block_bytes // bytes_per_row) // 256 * 256)
    n_vblocks = pl.cdiv(vocab, tv)
    vocab_padded = n_vblocks * tv
    if vocab_padded != vocab:
        # zero rows are never selected (ids < vocab) and cannot poison the dot
        weight = jnp.pad(weight, ((0, vocab_padded - vocab), (0, 0)))

    # --- scale placement: fold into the one-hot when it stays in f32 ---
    if weight.dtype == jnp.float32:
        onehot_scale, out_scale = scale, 1.0             # free (select exists anyway)
    else:
        onehot_scale, out_scale = 1.0, scale             # keep scale in f32

    # --- weight BlockSpec: single-buffer the table when it is a constant block ---
    if n_vblocks == 1:
        w_spec = pl.BlockSpec((tv, d_model), lambda i, v: (0, 0),
                              pipeline_mode=pl.Buffered(1))
    else:
        w_spec = pl.BlockSpec((tv, d_model), lambda i, v: (v, 0))

    # --- explicit scoped-VMEM budget from the actual tile footprint ---
    itemsize = weight.dtype.itemsize
    w_bufs = 1 if n_vblocks == 1 else 2
    vmem_est = (tv * d_model * itemsize * w_bufs         # table block(s)
                + 2 * tb * 128 * 4                       # ids blocks (lane-padded)
                + 2 * tb * d_model * itemsize            # double-buffered output
                + tb * d_model * 4                       # f32 accumulator scratch
                + tb * tv * 4)                           # one-hot intermediate
    vmem_limit = int(min(max(2 * vmem_est, 32 * 1024 * 1024), 64 * 1024 * 1024))

    kernel = functools.partial(
        _scaled_embedding_kernel,
        onehot_scale=onehot_scale, out_scale=out_scale,
        tv=tv, n_vblocks=n_vblocks)

    out = pl.pallas_call(
        kernel,
        out_shape=jax.ShapeDtypeStruct((n, d_model), weight.dtype),
        grid_spec=pltpu.PrefetchScalarGridSpec(
            num_scalar_prefetch=0,
            grid=(g, n_vblocks),                         # (token tiles, vocab tiles)
            in_specs=[
                pl.BlockSpec((tb, 1), lambda i, v: (i, 0)),       # token ids
                w_spec,                                           # embedding table
            ],
            out_specs=pl.BlockSpec((tb, d_model), lambda i, v: (i, 0)),  # lane-dense
            scratch_shapes=[pltpu.VMEM((tb, d_model), jnp.float32)],
        ),
        compiler_params=pltpu.CompilerParams(
            dimension_semantics=("parallel", "arbitrary"),
            vmem_limit_bytes=vmem_limit,
        ),
    )(ids, weight)

    return out.reshape(*orig_shape, d_model)


def ref_scaled_embedding(x, weight):
    """Pure-JAX reference mirroring the PyTorch module."""
    return jnp.take(weight, x, axis=0) * math.sqrt(weight.shape[1])


if __name__ == "__main__":
    D_MODEL = 256      # multiple of 128/256 -> lane-dense output, fills MXU N dim
    VOCAB = 512
    B, S = 4, 96       # 384 tokens -> exercises the masked partial token block

    key = jax.random.PRNGKey(0)
    k_ids, k_w = jax.random.split(key)

    x = jax.random.randint(k_ids, (B, S), 0, VOCAB, dtype=jnp.int32)
    # xavier_normal_ init: std = sqrt(2 / (fan_in + fan_out))
    std = math.sqrt(2.0 / (VOCAB + D_MODEL))
    weight = std * jax.random.normal(k_w, (VOCAB, D_MODEL), dtype=jnp.float32)

    ref = ref_scaled_embedding(x, weight)

    # Case 1: default config — single resident vocab block, TB=512, partial block.
    out = jax.block_until_ready(scaled_embedding(x, weight))
    assert out.shape == (B, S, D_MODEL)
    assert jnp.allclose(out, ref, atol=1e-5, rtol=1e-5), \
        f"max abs err {jnp.max(jnp.abs(out - ref))}"

    # Case 2: force vocab tiling (2 vocab blocks, 2 token blocks) to exercise the
    # pl.when-initialized accumulation path used for large vocabularies.
    out2 = jax.block_until_ready(
        scaled_embedding(x, weight, tb=256,
                         max_table_block_bytes=(VOCAB // 2) * D_MODEL * 4))
    assert jnp.allclose(out2, ref, atol=1e-5, rtol=1e-5), \
        f"max abs err {jnp.max(jnp.abs(out2 - ref))}"

    print("KERNEL_OK")
</pallas_src>

<mosaic_0001>
module attributes {stable_mosaic.version = 11 : i64} {
  func.func @_scaled_embedding_kernel(%arg0: i32, %arg1: i32, %arg2: memref<512x1xi32, #tpu.memory_space<vmem>>, %arg3: memref<512x256xf32, #tpu.memory_space<vmem>>, %arg4: memref<512x256xf32, #tpu.memory_space<vmem>>, %arg5: memref<512x256xf32, #tpu.memory_space<vmem>>) attributes {dimension_semantics = [#tpu.dimension_semantics<parallel>, #tpu.dimension_semantics<arbitrary>], iteration_bounds = array<i64: 1, 1>, scalar_prefetch = 0 : i64, scratch_operands = 1 : i64, tpu.core_type = #tpu.core_type<tc>, window_params = [{transform_indices = @transform_0, window_bounds = array<i64: 512, 1>}, {pipeline_mode = #tpu.pipeline_mode<synchronous>, transform_indices = @transform_1, window_bounds = array<i64: 512, 256>}, {transform_indices = @transform_2, window_bounds = array<i64: 512, 256>}]} {
    %c0 = arith.constant 0 : index
    %c0_0 = arith.constant 0 : index
    %0 = vector.load %arg2[%c0, %c0_0] : memref<512x1xi32, #tpu.memory_space<vmem>>, vector<512x1xi32>
    %1 = tpu.iota {dimensions = array<i32: 1>} : vector<512x512xi32>
    %c0_i32 = arith.constant 0 : i32
    %2 = vector.broadcast %c0_i32 : i32 to vector<512x512xi32>
    %3 = arith.addi %1, %2 : vector<512x512xi32>
    %4 = vector.broadcast %0 : vector<512x1xi32> to vector<512x512xi32>
    %5 = arith.cmpi eq, %3, %4 : vector<512x512xi32>
    %cst = arith.constant 1.600000e+01 : f32
    %cst_1 = arith.constant 0.000000e+00 : f32
    %6 = vector.broadcast %cst : f32 to vector<512x512xf32>
    %7 = vector.broadcast %cst_1 : f32 to vector<512x512xf32>
    %8 = arith.select %5, %6, %7 : vector<512x512xi1>, vector<512x512xf32>
    %c0_2 = arith.constant 0 : index
    %c0_3 = arith.constant 0 : index
    %9 = vector.load %arg3[%c0_2, %c0_3] : memref<512x256xf32, #tpu.memory_space<vmem>>, vector<512x256xf32>
    %cst_4 = arith.constant dense<0.000000e+00> : vector<512x256xf32>
    %10 = tpu.matmul %8, %9, %cst_4 {dimension_numbers = #tpu.dot_dimension_numbers<[1], [0], [0], [1], [0, 0, 1, 1], [], []>} : vector<512x512xf32>, vector<512x256xf32>, vector<512x256xf32> -> vector<512x256xf32>
    %c0_5 = arith.constant 0 : index
    %c0_6 = arith.constant 0 : index
    %11 = vector.load %arg4[%c0_5, %c0_6] : memref<512x256xf32, #tpu.memory_space<vmem>>, vector<512x256xf32>
    tpu.vector_store %arg4[%c0_5, %c0_6], %10 {strides = array<i32>} : memref<512x256xf32, #tpu.memory_space<vmem>>, vector<512x256xf32>,
    return
  }
  func.func @transform_0(%arg0: i32, %arg1: i32) -> (i32, i32) {
    %c0_i32 = arith.constant 0 : i32
    %c0_i32_0 = arith.constant 0 : i32
    return %arg0, %c0_i32 : i32, i32
  }
  func.func @transform_1(%arg0: i32, %arg1: i32) -> (i32, i32) {
    %c0_i32 = arith.constant 0 : i32
    %c0_i32_0 = arith.constant 0 : i32
    %c0_i32_1 = arith.constant 0 : i32
    return %c0_i32, %c0_i32_0 : i32, i32
  }
  func.func @transform_2(%arg0: i32, %arg1: i32) -> (i32, i32) {
    %c0_i32 = arith.constant 0 : i32
    %c0_i32_0 = arith.constant 0 : i32
    return %arg0, %c0_i32 : i32, i32
  }
}

</mosaic_0001>

<bundles_post_ra>
// kernel: tpu_custom_call.1
= control target key start
LH: loop header
LB: loop body
LE: loop exit
PB: predicated region body
PF: predicated region fallthrough
CT: control target
= control target key end

     0   :  { %7 = vsyncpa [#allocation4], 0  ;;  %s6245_s0 = inlined_call_operand.vmem [shape: s32[384,1], index: 0, kind: input, shape index: {}]   ;;  %s6246_s1 = inlined_call_operand.hbm [shape: f32[512,256], index: 1, kind: input, shape index: {}]   ;;  %s6247_s2 = inlined_call_operand.hbm [shape: f32[384,256], index: 2, kind: output, shape index: {}]  }
   0x1   :  { %8 = vsyncpa [#allocation5], 0  ;;  %s15_s11 = sshll.u32 %s6246_s1, 4  ;;  %s3321_s12 = smov [#allocation3]   ;;  %s16_s11 = int_to_ptr.hbm [resolvable:$true] %s15_s11 }
   0x2   :  { %s17_s13 = sshll.u32 %s3321_s12, 4  ;;  %s3322_s14 = smov 256   ;;  %s18_s13 = int_to_ptr.vmem [resolvable:$true] %s17_s13 }
   0x3   :  { %s3323_s15 = smov 16  }
   0x4   :  { %23 = dma.hbm_to_vmem [thread:$0]  %s16_s11, 16384, %s18_s13, [#allocation4], %s3322_s14, %s3322_s14, %s3323_s15  }
   0x5   :  { %3317 = dma.done.wait [#allocation4], 16384  }
   0x6   :  { %3318 = vsyncadd [#allocation4], 4294950912  ;;  %v3324_v0 = vmov 0   ;;  %v32_v1 = vld [vmem:[%s6245_s0 + $0x20] sm:$0xff]  ;;  %v30_v2 = vld [vmem:[%s6245_s0 + $0x10] sm:$0xff] }
   0x7   :  { %3268 = vset.pattern.permute.xlu2 %v3324_v0  ;;  %3267 = vset.pattern.permute.xlu1 %v3324_v0  ;;  %v28_v3 = vld [vmem:[%s6245_s0] sm:$0xff]  ;;  %v33_v4 = vld [vmem:[%s6245_s0 + $0x28] sm:$0xff]  ;;  %v31_v5 = vld [vmem:[%s6245_s0 + $0x18] sm:$0xff] }
   0x8   :  { %3266 = vset.pattern.permute.xlu0 %v3324_v0  ;;  %110 = vperm.xlu2 %3268, %v32_v1   ;;  %v29_v6 = vld [vmem:[%s6245_s0 + $0x8] sm:$0xff]  ;;  %v36_v7 = vld [vmem:[%s6245_s0 + $0x40] sm:$0xff]  ;;  %v35_v8 = vld [vmem:[%s6245_s0 + $0x38] sm:$0xff] }
   0x9   :  { %104 = vperm.xlu1 %3267, %v30_v2   ;;  %98 = vperm.xlu0 %3266, %v28_v3   ;;  %v34_v9 = vld [vmem:[%s6245_s0 + $0x30] sm:$0xff]  ;;  %v39_v10 = vld [vmem:[%s6245_s0 + $0x58] sm:$0xff]  ;;  %v37_v12 = vld [vmem:[%s6245_s0 + $0x48] sm:$0xff] }
   0xa   :  { %v38_v11 = vld [vmem:[%s6245_s0 + $0x50] sm:$0xff]  ;;  %v41_v14 = vld [vmem:[%s6245_s0 + $0x68] sm:$0xff]  ;;  %v40_v15 = vld [vmem:[%s6245_s0 + $0x60] sm:$0xff] }
   0xb   :  { %v42_v13 = vld [vmem:[%s6245_s0 + $0x70] sm:$0xff]  ;;  %v45_v16 = vld [vmem:[%s6245_s0 + $0x88] sm:$0xff]  ;;  %v44_v17 = vld [vmem:[%s6245_s0 + $0x80] sm:$0xff] }
   0xc   :  { %v43_v18 = vld [vmem:[%s6245_s0 + $0x78] sm:$0xff]  ;;  %v48_v19 = vld [vmem:[%s6245_s0 + $0xa0] sm:$0xff]  ;;  %v46_v21 = vld [vmem:[%s6245_s0 + $0x90] sm:$0xff] }
   0xd   :  { %v47_v20 = vld [vmem:[%s6245_s0 + $0x98] sm:$0xff]  ;;  %v831_v22 = vld [vmem:[#allocation3 + $0xf0] sm:$0xff]  ;;  %v829_v26 = vld [vmem:[#allocation3 + $0xe0] sm:$0xff] }
   0xe   :  { %v863_v23 = vld [vmem:[#allocation3 + $0x1f0] sm:$0xff]  ;;  %929 = vmatpush.msra.mxu0 %v831_v22  ;;  %v861_v27 = vld [vmem:[#allocation3 + $0x1e0] sm:$0xff]  ;;  %v51_v30 = vld [vmem:[%s6245_s0 + $0xb8] sm:$0xff] }
   0xf   :  { %v895_v24 = vld [vmem:[#allocation3 + $0x2f0] sm:$0xff]  ;;  %1138 = vmatpush.msra.mxu1 %v863_v23  ;;  %v893_v28 = vld [vmem:[#allocation3 + $0x2e0] sm:$0xff]  ;;  %v49_v32 = vld [vmem:[%s6245_s0 + $0xa8] sm:$0xff] }
  0x10   :  { %113 = vperm.xlu2 %3268, %v33_v4   ;;  %v927_v25 = vld [vmem:[#allocation3 + $0x3f0] sm:$0xff]  ;;  %1347 = vmatpush.msra.mxu2 %v895_v24  ;;  %v925_v29 = vld [vmem:[#allocation3 + $0x3e0] sm:$0xff]  ;;  %v53_v46 = vld [vmem:[%s6245_s0 + $0xc8] sm:$0xff] }
  0x11   :  { %107 = vperm.xlu1 %3267, %v31_v5   ;;  %101 = vperm.xlu0 %3266, %v29_v6   ;;  %v50_v31 = vld [vmem:[%s6245_s0 + $0xb0] sm:$0xff]  ;;  %v825_v37 = vld [vmem:[#allocation3 + $0xc0] sm:$0xff]  ;;  %v57_v61 = vld [vmem:[%s6245_s0 + $0xe8] sm:$0xff] }
  0x12   :  { %1556 = vmatpush.msra.mxu3 %v927_v25  ;;  %930 = vmatpush.msra.mxu0 %v829_v26  ;;  %v827_v33 = vld [vmem:[#allocation3 + $0xd0] sm:$0xff]  ;;  %v857_v38 = vld [vmem:[#allocation3 + $0x1c0] sm:$0xff]  ;;  %v55_v63 = vld [vmem:[%s6245_s0 + $0xd8] sm:$0xff] }
  0x13   :  { %1139 = vmatpush.msra.mxu1 %v861_v27  ;;  %1348 = vmatpush.msra.mxu2 %v893_v28  ;;  %v859_v34 = vld [vmem:[#allocation3 + $0x1d0] sm:$0xff]  ;;  %v889_v39 = vld [vmem:[#allocation3 + $0x2c0] sm:$0xff] }
  0x14   :  { %1557 = vmatpush.msra.mxu3 %v925_v29  ;;  %v891_v35 = vld [vmem:[#allocation3 + $0x2d0] sm:$0xff]  ;;  %931 = vmatpush.msra.mxu0 %v827_v33  ;;  %v921_v40 = vld [vmem:[#allocation3 + $0x3c0] sm:$0xff]  ;;  %v63_v29 = vld [vmem:[%s6245_s0 + $0x118] sm:$0xff] }
  0x15   :  { %1140 = vmatpush.msra.mxu1 %v859_v34  ;;  %v923_v36 = vld [vmem:[#allocation3 + $0x3d0] sm:$0xff]  ;;  %1349 = vmatpush.msra.mxu2 %v891_v35  ;;  %v52_v47 = vld [vmem:[%s6245_s0 + $0xc0] sm:$0xff] }
  0x16   :  { %1558 = vmatpush.msra.mxu3 %v923_v36  ;;  %v823_v41 = vld [vmem:[#allocation3 + $0xb0] sm:$0xff]  ;;  %932 = vmatpush.msra.mxu0 %v825_v37  ;;  %v821_v48 = vld [vmem:[#allocation3 + $0xa0] sm:$0xff]  ;;  %v896_v37 = vld [vmem:[#allocation3 + $0x2f8] sm:$0xff] }
  0x17   :  { %1141 = vmatpush.msra.mxu1 %v857_v38  ;;  %v855_v42 = vld [vmem:[#allocation3 + $0x1b0] sm:$0xff]  ;;  %1350 = vmatpush.msra.mxu2 %v889_v39  ;;  %v853_v49 = vld [vmem:[#allocation3 + $0x1a0] sm:$0xff]  ;;  %v928_v38 = vld [vmem:[#allocation3 + $0x3f8] sm:$0xff] }
  0x18   :  { %122 = vperm.xlu2 %3268, %v36_v7   ;;  %v887_v43 = vld [vmem:[#allocation3 + $0x2b0] sm:$0xff]  ;;  %1559 = vmatpush.msra.mxu3 %v921_v40  ;;  %v885_v50 = vld [vmem:[#allocation3 + $0x2a0] sm:$0xff]  ;;  %v832_v39 = vld [vmem:[#allocation3 + $0xf8] sm:$0xff] }
  0x19   :  { %119 = vperm.xlu1 %3267, %v35_v8   ;;  %116 = vperm.xlu0 %3266, %v34_v9   ;;  %v919_v44 = vld [vmem:[#allocation3 + $0x3b0] sm:$0xff]  ;;  %v917_v51 = vld [vmem:[#allocation3 + $0x3a0] sm:$0xff]  ;;  %v864_v40 = vld [vmem:[#allocation3 + $0x1f8] sm:$0xff] }
  0x1a   :  { %v54_v45 = vld [vmem:[%s6245_s0 + $0xd0] sm:$0xff]  ;;  %933 = vmatpush.msra.mxu0 %v823_v41  ;;  %1142 = vmatpush.msra.mxu1 %v855_v42  ;;  %v817_v56 = vld [vmem:[#allocation3 + $0x80] sm:$0xff]  ;;  %v65_v42 = vld [vmem:[%s6245_s0 + $0x128] sm:$0xff] }
  0x1b   :  { %1351 = vmatpush.msra.mxu2 %v887_v43  ;;  %1560 = vmatpush.msra.mxu3 %v919_v44  ;;  %v819_v52 = vld [vmem:[#allocation3 + $0x90] sm:$0xff]  ;;  %v849_v57 = vld [vmem:[#allocation3 + $0x180] sm:$0xff]  ;;  %v69_v44 = vld [vmem:[%s6245_s0 + $0x148] sm:$0xff] }
  0x1c   :  { %934 = vmatpush.msra.mxu0 %v821_v48  ;;  %v851_v53 = vld [vmem:[#allocation3 + $0x190] sm:$0xff]  ;;  %1143 = vmatpush.msra.mxu1 %v853_v49  ;;  %v881_v58 = vld [vmem:[#allocation3 + $0x280] sm:$0xff] }
  0x1d   :  { %v883_v54 = vld [vmem:[#allocation3 + $0x290] sm:$0xff]  ;;  %1352 = vmatpush.msra.mxu2 %v885_v50  ;;  %1561 = vmatpush.msra.mxu3 %v917_v51  ;;  %v913_v59 = vld [vmem:[#allocation3 + $0x380] sm:$0xff]  ;;  %v71_v50 = vld [vmem:[%s6245_s0 + $0x158] sm:$0xff] }
  0x1e   :  { %v915_v55 = vld [vmem:[#allocation3 + $0x390] sm:$0xff]  ;;  %935 = vmatpush.msra.mxu0 %v819_v52  ;;  %1144 = vmatpush.msra.mxu1 %v851_v53  ;;  %v56_v62 = vld [vmem:[%s6245_s0 + $0xe0] sm:$0xff] }
  0x1f   :  { %1353 = vmatpush.msra.mxu2 %v883_v54  ;;  %v815_v60 = vld [vmem:[#allocation3 + $0x70] sm:$0xff]  ;;  %1562 = vmatpush.msra.mxu3 %v915_v55  ;;  %v813_v3 = vld [vmem:[#allocation3 + $0x60] sm:$0xff] }
  0x20   :  { %131 = vperm.xlu2 %3268, %v39_v10   ;;  %936 = vmatpush.msra.mxu0 %v817_v56  ;;  %v847_v0 = vld [vmem:[#allocation3 + $0x170] sm:$0xff]  ;;  %v845_v4 = vld [vmem:[#allocation3 + $0x160] sm:$0xff]  ;;  %v3325_v56 = vmov 16.0  }
  0x21   :  { %128 = vperm.xlu1 %3267, %v38_v11   ;;  %125 = vperm.xlu0 %3266, %v37_v12   ;;  %v879_v1 = vld [vmem:[#allocation3 + $0x270] sm:$0xff]  ;;  %v877_v5 = vld [vmem:[#allocation3 + $0x260] sm:$0xff] }
  0x22   :  { %1145 = vmatpush.msra.mxu1 %v849_v57  ;;  %1354 = vmatpush.msra.mxu2 %v881_v58  ;;  %v911_v2 = vld [vmem:[#allocation3 + $0x370] sm:$0xff]  ;;  %v909_v6 = vld [vmem:[#allocation3 + $0x360] sm:$0xff]  ;;  %v75_v57 = vld [vmem:[%s6245_s0 + $0x178] sm:$0xff] }
  0x23   :  { %1563 = vmatpush.msra.mxu3 %v913_v59  ;;  %937 = vmatpush.msra.mxu0 %v815_v60  ;;  %v811_v7 = vld [vmem:[#allocation3 + $0x50] sm:$0xff]  ;;  %v809_v11 = vld [vmem:[#allocation3 + $0x40] sm:$0xff]  ;;  %v73_v59 = vld [vmem:[%s6245_s0 + $0x168] sm:$0xff] }
  0x24   :  { %1146 = vmatpush.msra.mxu1 %v847_v0  ;;  %1355 = vmatpush.msra.mxu2 %v879_v1  ;;  %v843_v8 = vld [vmem:[#allocation3 + $0x150] sm:$0xff]  ;;  %v841_v12 = vld [vmem:[#allocation3 + $0x140] sm:$0xff]  ;;  %v894_v60 = vld [vmem:[#allocation3 + $0x2e8] sm:$0xff] }
  0x25   :  { %1564 = vmatpush.msra.mxu3 %v911_v2  ;;  %938 = vmatpush.msra.mxu0 %v813_v3  ;;  %v875_v9 = vld [vmem:[#allocation3 + $0x250] sm:$0xff]  ;;  %v805_v22 = vld [vmem:[#allocation3 + $0x20] sm:$0xff]  ;;  %v77_v2 = vld [vmem:[%s6245_s0 + $0x188] sm:$0xff] }
  0x26   :  { %1147 = vmatpush.msra.mxu1 %v845_v4  ;;  %v907_v10 = vld [vmem:[#allocation3 + $0x350] sm:$0xff]  ;;  %1356 = vmatpush.msra.mxu2 %v877_v5  ;;  %v837_v23 = vld [vmem:[#allocation3 + $0x120] sm:$0xff]  ;;  %v81_v5 = vld [vmem:[%s6245_s0 + $0x1a8] sm:$0xff] }
  0x27   :  { %1565 = vmatpush.msra.mxu3 %v909_v6  ;;  %939 = vmatpush.msra.mxu0 %v811_v7  ;;  %v869_v24 = vld [vmem:[#allocation3 + $0x220] sm:$0xff]  ;;  %v803_v26 = vld [vmem:[#allocation3 + $0x10] sm:$0xff]  ;;  %v79_v7 = vld [vmem:[%s6245_s0 + $0x198] sm:$0xff] }
  0x28   :  { %140 = vperm.xlu2 %3268, %v42_v13   ;;  %v60_v13 = vld [vmem:[%s6245_s0 + $0x100] sm:$0xff]  ;;  %1148 = vmatpush.msra.mxu1 %v843_v8  ;;  %v835_v27 = vld [vmem:[#allocation3 + $0x110] sm:$0xff] }
  0x29   :  { %137 = vperm.xlu1 %3267, %v41_v14   ;;  %134 = vperm.xlu0 %3266, %v40_v15   ;;  %v59_v14 = vld [vmem:[%s6245_s0 + $0xf8] sm:$0xff]  ;;  %v58_v15 = vld [vmem:[%s6245_s0 + $0xf0] sm:$0xff]  ;;  %v901_v25 = vld [vmem:[#allocation3 + $0x320] sm:$0xff] }
  0x2a   :  { %1357 = vmatpush.msra.mxu2 %v875_v9  ;;  %1566 = vmatpush.msra.mxu3 %v907_v10  ;;  %v867_v28 = vld [vmem:[#allocation3 + $0x210] sm:$0xff]  ;;  %v801_v33 = vld [vmem:[#allocation3] sm:$0xff]  ;;  %v83_v10 = vld [vmem:[%s6245_s0 + $0x1b8] sm:$0xff] }
  0x2b   :  { %940 = vmatpush.msra.mxu0 %v809_v11  ;;  %1149 = vmatpush.msra.mxu1 %v841_v12  ;;  %v833_v34 = vld [vmem:[#allocation3 + $0x100] sm:$0xff]  ;;  %v66_v41 = vld [vmem:[%s6245_s0 + $0x130] sm:$0xff] }
  0x2c   :  { %v865_v35 = vld [vmem:[#allocation3 + $0x200] sm:$0xff]  ;;  %v70_v51 = vld [vmem:[%s6245_s0 + $0x150] sm:$0xff] }
  0x2d   :  { %v897_v36 = vld [vmem:[#allocation3 + $0x300] sm:$0xff]  ;;  %v74_v58 = vld [vmem:[%s6245_s0 + $0x170] sm:$0xff] }
  0x2e   :  { %v64_v43 = vld [vmem:[%s6245_s0 + $0x120] sm:$0xff]  ;;  %v78_v1 = vld [vmem:[%s6245_s0 + $0x190] sm:$0xff] }
  0x2f   :  { %v72_v49 = vld [vmem:[%s6245_s0 + $0x160] sm:$0xff]  ;;  %v82_v11 = vld [vmem:[%s6245_s0 + $0x1b0] sm:$0xff] }
  0x30   :  { %149 = vperm.xlu2 %3268, %v45_v16   ;;  %v873_v16 = vld [vmem:[#allocation3 + $0x240] sm:$0xff] }
  0x31   :  { %146 = vperm.xlu1 %3267, %v44_v17   ;;  %143 = vperm.xlu0 %3266, %v43_v18   ;;  %v905_v17 = vld [vmem:[#allocation3 + $0x340] sm:$0xff]  ;;  %v807_v18 = vld [vmem:[#allocation3 + $0x30] sm:$0xff] }
  0x32   :  { %1358 = vmatpush.msra.mxu2 %v873_v16  ;;  %1567 = vmatpush.msra.mxu3 %v905_v17  ;;  %v76_v3 = vld [vmem:[%s6245_s0 + $0x180] sm:$0xff]  ;;  %v892_v16 = vld [vmem:[#allocation3 + $0x2d8] sm:$0xff] }
  0x33   :  { %941 = vmatpush.msra.mxu0 %v807_v18  ;;  %v80_v6 = vld [vmem:[%s6245_s0 + $0x1a0] sm:$0xff]  ;;  %v924_v17 = vld [vmem:[#allocation3 + $0x3d8] sm:$0xff] }
  0x34   :  { %v84_v9 = vld [vmem:[%s6245_s0 + $0x1c0] sm:$0xff]  ;;  %v828_v18 = vld [vmem:[#allocation3 + $0xd8] sm:$0xff] }
  0x35   :  { %942 = vmatpush.msra.mxu0 %v805_v22  ;;  %v89_v22 = vld [vmem:[%s6245_s0 + $0x1e8] sm:$0xff] }
  0x37   :  { %943 = vmatpush.msra.mxu0 %v803_v26 }
  0x38   :  { %158 = vperm.xlu2 %3268, %v48_v19   ;;  %v839_v19 = vld [vmem:[#allocation3 + $0x130] sm:$0xff] }
  0x39   :  { %155 = vperm.xlu1 %3267, %v47_v20   ;;  %152 = vperm.xlu0 %3266, %v46_v21   ;;  %v871_v20 = vld [vmem:[#allocation3 + $0x230] sm:$0xff] }
  0x3a   :  { %v903_v21 = vld [vmem:[#allocation3 + $0x330] sm:$0xff]  ;;  %1150 = vmatpush.msra.mxu1 %v839_v19  ;;  %1359 = vmatpush.msra.mxu2 %v871_v20  ;;  %v860_v19 = vld [vmem:[#allocation3 + $0x1d8] sm:$0xff] }
  0x3b   :  { %1568 = vmatpush.msra.mxu3 %v903_v21  ;;  %944 = vmatpush.msra.mxu0 %v801_v33  ;;  %v90_v21 = vld [vmem:[%s6245_s0 + $0x1f0] sm:$0xff] }
  0x3c   :  { %1151 = vmatpush.msra.mxu1 %v837_v23  ;;  %1360 = vmatpush.msra.mxu2 %v869_v24  ;;  %v88_v23 = vld [vmem:[%s6245_s0 + $0x1e0] sm:$0xff] }
  0x3d   :  { %1569 = vmatpush.msra.mxu3 %v901_v25  ;;  %1765 = vmatpush.msrb.mxu0 %v832_v39  ;;  %v91_v25 = vld [vmem:[%s6245_s0 + $0x1f8] sm:$0xff] }
  0x3e   :  { %1152 = vmatpush.msra.mxu1 %v835_v27  ;;  %1361 = vmatpush.msra.mxu2 %v867_v28  ;;  %v890_v28 = vld [vmem:[#allocation3 + $0x2c8] sm:$0xff]  ;;  %v824_v39 = vld [vmem:[#allocation3 + $0xb8] sm:$0xff] }
  0x40   :  { %167 = vperm.xlu2 %3268, %v51_v30   ;;  %v62_v30 = vld [vmem:[%s6245_s0 + $0x110] sm:$0xff]  ;;  %1153 = vmatpush.msra.mxu1 %v833_v34 }
  0x41   :  { %164 = vperm.xlu1 %3267, %v50_v31   ;;  %161 = vperm.xlu0 %3266, %v49_v32   ;;  %v61_v31 = vld [vmem:[%s6245_s0 + $0x108] sm:$0xff]  ;;  %v899_v32 = vld [vmem:[#allocation3 + $0x310] sm:$0xff] }
  0x42   :  { %1570 = vmatpush.msra.mxu3 %v899_v32  ;;  %1362 = vmatpush.msra.mxu2 %v865_v35 }
  0x43   :  { %1974 = vmatpush.msrb.mxu1 %v864_v40  ;;  %v856_v40 = vld [vmem:[#allocation3 + $0x1b8] sm:$0xff] }
  0x44   :  { %1571 = vmatpush.msra.mxu3 %v897_v36  ;;  %2183 = vmatpush.msrb.mxu2 %v896_v37  ;;  %v888_v36 = vld [vmem:[#allocation3 + $0x2b8] sm:$0xff] }
  0x45   :  { %v920_v37 = vld [vmem:[#allocation3 + $0x3b8] sm:$0xff] }
  0x46   :  { %2392 = vmatpush.msrb.mxu3 %v928_v38  ;;  %2184 = vmatpush.msrb.mxu2 %v894_v60 }
  0x48   :  { %176 = vperm.xlu2 %3268, %v54_v45   ;;  %v68_v45 = vld [vmem:[%s6245_s0 + $0x140] sm:$0xff]  ;;  %2185 = vmatpush.msrb.mxu2 %v892_v16 }
  0x49   :  { %173 = vperm.xlu1 %3267, %v53_v46   ;;  %170 = vperm.xlu0 %3266, %v52_v47   ;;  %v67_v46 = vld [vmem:[%s6245_s0 + $0x138] sm:$0xff]  ;;  %v92_v47 = vlaneseq }
  0x4a   :  { %2186 = vmatpush.msrb.mxu2 %v890_v28 }
  0x4b   :  { %v3474_v48 = vand.u32 127, %v92_v47  ;;  %v918_v47 = vld [vmem:[#allocation3 + $0x3a8] sm:$0xff] }
  0x4c   :  { %2187 = vmatpush.msrb.mxu2 %v888_v36  ;;  %v884_v36 = vld [vmem:[#allocation3 + $0x298] sm:$0xff] }
  0x4d   :  { %v3486_v52 = vadd.s32 128, %v3474_v48  ;;  %v3489_v53 = vadd.s32 256, %v3474_v48  ;;  %v3492_v54 = vadd.s32 384, %v3474_v48 }
  0x50   :  { %185 = vperm.xlu2 %3268, %v57_v61   ;;  %v926_v61 = vld [vmem:[#allocation3 + $0x3e8] sm:$0xff] }
  0x51   :  { %182 = vperm.xlu1 %3267, %v56_v62   ;;  %179 = vperm.xlu0 %3266, %v55_v63   ;;  %v830_v62 = vld [vmem:[#allocation3 + $0xe8] sm:$0xff] }
  0x52   :  { %2393 = vmatpush.msrb.mxu3 %v926_v61  ;;  %v862_v63 = vld [vmem:[#allocation3 + $0x1e8] sm:$0xff]  ;;  %1766 = vmatpush.msrb.mxu0 %v830_v62 }
  0x53   :  { %1975 = vmatpush.msrb.mxu1 %v862_v63  ;;  %v822_v62 = vld [vmem:[#allocation3 + $0xa8] sm:$0xff] }
  0x54   :  { %2394 = vmatpush.msrb.mxu3 %v924_v17  ;;  %1767 = vmatpush.msrb.mxu0 %v828_v18  ;;  %v854_v63 = vld [vmem:[#allocation3 + $0x1a8] sm:$0xff] }
  0x55   :  { %1976 = vmatpush.msrb.mxu1 %v860_v19 }
  0x58   :  { %194 = vperm.xlu2 %3268, %v60_v13   ;;  %v87_v13 = vld [vmem:[%s6245_s0 + $0x1d8] sm:$0xff] }
  0x59   :  { %191 = vperm.xlu1 %3267, %v59_v14   ;;  %188 = vperm.xlu0 %3266, %v58_v15   ;;  %v86_v14 = vld [vmem:[%s6245_s0 + $0x1d0] sm:$0xff]  ;;  %v85_v15 = vld [vmem:[%s6245_s0 + $0x1c8] sm:$0xff] }
  0x60   :  { %203 = vperm.xlu2 %3268, %v63_v29   ;;  %v922_v29 = vld [vmem:[#allocation3 + $0x3c8] sm:$0xff] }
  0x61   :  { %200 = vperm.xlu1 %3267, %v62_v30   ;;  %197 = vperm.xlu0 %3266, %v61_v31   ;;  %v826_v30 = vld [vmem:[#allocation3 + $0xc8] sm:$0xff] }
  0x62   :  { %v3634_v12 = vpop.permute.xlu2 %110  ;;  %2395 = vmatpush.msrb.mxu3 %v922_v29  ;;  %v858_v31 = vld [vmem:[#allocation3 + $0x1c8] sm:$0xff]  ;;  %1768 = vmatpush.msrb.mxu0 %v826_v30 }
  0x63   :  { %1977 = vmatpush.msrb.mxu1 %v858_v31 }
  0x64   :  { %2396 = vmatpush.msrb.mxu3 %v920_v37  ;;  %1769 = vmatpush.msrb.mxu0 %v824_v39  ;;  %v916_v37 = vld [vmem:[#allocation3 + $0x398] sm:$0xff] }
  0x65   :  { %1978 = vmatpush.msrb.mxu1 %v856_v40 }
  0x66   :  { %2397 = vmatpush.msrb.mxu3 %v918_v47  ;;  %1770 = vmatpush.msrb.mxu0 %v822_v62 }
  0x67   :  { %1979 = vmatpush.msrb.mxu1 %v854_v63 }
  0x68   :  { %212 = vperm.xlu2 %3268, %v66_v41   ;;  %2398 = vmatpush.msrb.mxu3 %v916_v37 }
  0x69   :  { %209 = vperm.xlu1 %3267, %v65_v42   ;;  %206 = vperm.xlu0 %3266, %v64_v43  }
  0x6a   :  { %v3669_v20 = vpop.permute.xlu2 %113 }
  0x70   :  { %221 = vperm.xlu2 %3268, %v69_v44  }
  0x71   :  { %218 = vperm.xlu1 %3267, %v68_v45   ;;  %215 = vperm.xlu0 %3266, %v67_v46   ;;  %v886_v46 = vld [vmem:[#allocation3 + $0x2a8] sm:$0xff] }
  0x72   :  { %v3759_v27 = vpop.permute.xlu2 %122  ;;  %2188 = vmatpush.msrb.mxu2 %v886_v46 }
  0x74   :  { %2189 = vmatpush.msrb.mxu2 %v884_v36 }
  0x78   :  { %230 = vperm.xlu2 %3268, %v72_v49  }
  0x79   :  { %227 = vperm.xlu1 %3267, %v71_v50   ;;  %224 = vperm.xlu0 %3266, %v70_v51  }
  0x7a   :  { %v3837_v34 = vpop.permute.xlu2 %131 }
  0x7b   :  { %v3494_v55 = vpop.permute.xlu0 %98  ;;  %v3564_v4 = vpop.permute.xlu1 %104 }
  0x7c   :  { %vm289_vm0 = vcmp.eq.s32.totalorder %v3474_v48, %v3494_v55  ;;  %vm290_vm1 = vcmp.eq.s32.totalorder %v3486_v52, %v3494_v55  ;;  %vm291_vm2 = vcmp.eq.s32.totalorder %v3489_v53, %v3494_v55  ;;  %vm292_vm3 = vcmp.eq.s32.totalorder %v3492_v54, %v3494_v55 }
  0x7d   :  { %2748 = vmatmul.msk.f32.vlgmr.msra.gmra.mxu0 %vm289_vm0, %v3325_v56  ;;  %2812 = vmatmul.msk.f32.vlgmr.msra.gmra.mxu1 %vm290_vm1, %v3325_v56  ;;  %vm297_vm8 = vcmp.eq.s32.totalorder %v3474_v48, %v3564_v4  ;;  %vm298_vm9 = vcmp.eq.s32.totalorder %v3486_v52, %v3564_v4  ;;  %vm299_vm10 = vcmp.eq.s32.totalorder %v3489_v53, %v3564_v4 }
  0x7e   :  { %2876 = vmatmul.msk.f32.vlgmr.msra.gmra.mxu2 %vm291_vm2, %v3325_v56  ;;  %2940 = vmatmul.msk.f32.vlgmr.msra.gmra.mxu3 %vm292_vm3, %v3325_v56  ;;  %vm300_vm11 = vcmp.eq.s32.totalorder %v3492_v54, %v3564_v4 }
  0x80   :  { %239 = vperm.xlu2 %3268, %v75_v57  }
  0x81   :  { %236 = vperm.xlu1 %3267, %v74_v58   ;;  %233 = vperm.xlu0 %3266, %v73_v59  }
  0x82   :  { %v3915_v41 = vpop.permute.xlu2 %140 }
  0x83   :  { %v3529_v0 = vpop.permute.xlu0 %101  ;;  %v3599_v8 = vpop.permute.xlu1 %107 }
  0x84   :  { %vm293_vm4 = vcmp.eq.s32.totalorder %v3474_v48, %v3529_v0  ;;  %vm294_vm5 = vcmp.eq.s32.totalorder %v3486_v52, %v3529_v0  ;;  %vm295_vm6 = vcmp.eq.s32.totalorder %v3489_v53, %v3529_v0  ;;  %vm296_vm7 = vcmp.eq.s32.totalorder %v3492_v54, %v3529_v0 }
  0x85   :  { %2749 = vmatmul.msk.f32.gmra.mxu0 %vm293_vm4, %v3325_v56  ;;  %2813 = vmatmul.msk.f32.gmra.mxu1 %vm294_vm5, %v3325_v56  ;;  %vm6250_vm12 = vcmp.eq.s32.totalorder %v3474_v48, %v3599_v8  ;;  %vm6248_vm13 = vcmp.eq.s32.totalorder %v3486_v52, %v3599_v8  ;;  %vm6249_vm14 = vcmp.eq.s32.totalorder %v3489_v53, %v3599_v8 }
  0x86   :  { %2877 = vmatmul.msk.f32.gmra.mxu2 %vm295_vm6, %v3325_v56  ;;  %2941 = vmatmul.msk.f32.gmra.mxu3 %vm296_vm7, %v3325_v56  ;;  %vm6251_vm15 = vcmp.eq.s32.totalorder %v3492_v54, %v3599_v8 }
  0x88   :  { %248 = vperm.xlu2 %3268, %v78_v1  }
  0x89   :  { %245 = vperm.xlu1 %3267, %v77_v2   ;;  %242 = vperm.xlu0 %3266, %v76_v3  }
  0x8a   :  { %v3993_v60 = vpop.permute.xlu2 %149 }
  0x8b   :  { %v3704_v24 = vpop.permute.xlu0 %116  ;;  %v3733_v26 = vpop.permute.xlu1 %119 }
  0x8d   :  { %2750 = vmatmul.msk.f32.gmra.mxu0 %vm297_vm8, %v3325_v56  ;;  %2814 = vmatmul.msk.f32.gmra.mxu1 %vm298_vm9, %v3325_v56 }
  0x8e   :  { %2878 = vmatmul.msk.f32.gmra.mxu2 %vm299_vm10, %v3325_v56  ;;  %2942 = vmatmul.msk.f32.gmra.mxu3 %vm300_vm11, %v3325_v56 }
  0x90   :  { %257 = vperm.xlu2 %3268, %v81_v5  }
  0x91   :  { %254 = vperm.xlu1 %3267, %v80_v6   ;;  %251 = vperm.xlu0 %3266, %v79_v7  }
  0x92   :  { %v4071_v30 = vpop.permute.xlu2 %158 }
  0x93   :  { %v3785_v32 = vpop.permute.xlu0 %125  ;;  %v3811_v33 = vpop.permute.xlu1 %128 }
  0x95   :  { %2751 = vmatmul.msk.f32.gmra.mxu0 %vm6250_vm12, %v3325_v56  ;;  %2815 = vmatmul.msk.f32.gmra.mxu1 %vm6248_vm13, %v3325_v56  ;;  %vm6255_vm13 = vcmp.eq.s32.totalorder %v3474_v48, %v3634_v12  ;;  %vm6252_vm12 = vcmp.eq.s32.totalorder %v3489_v53, %v3634_v12 }
  0x96   :  { %2879 = vmatmul.msk.f32.gmra.mxu2 %vm6249_vm14, %v3325_v56  ;;  %2943 = vmatmul.msk.f32.gmra.mxu3 %vm6251_vm15, %v3325_v56  ;;  %vm6253_vm14 = vcmp.eq.s32.totalorder %v3486_v52, %v3634_v12  ;;  %vm6254_vm15 = vcmp.eq.s32.totalorder %v3492_v54, %v3634_v12 }
  0x98   :  { %266 = vperm.xlu2 %3268, %v84_v9  }
  0x99   :  { %263 = vperm.xlu1 %3267, %v83_v10   ;;  %260 = vperm.xlu0 %3266, %v82_v11  }
  0x9b   :  { %v3863_v35 = vpop.permute.xlu0 %134  ;;  %v3889_v38 = vpop.permute.xlu1 %137 }
  0x9d   :  { %2752 = vmatmul.msk.f32.gmra.mxu0 %vm6255_vm13, %v3325_v56  ;;  %2816 = vmatmul.msk.f32.gmra.mxu1 %vm6253_vm14, %v3325_v56  ;;  %vm6256_vm14 = vcmp.eq.s32.totalorder %v3486_v52, %v3669_v20  ;;  %vm6258_vm13 = vcmp.eq.s32.totalorder %v3492_v54, %v3669_v20 }
  0x9e   :  { %2880 = vmatmul.msk.f32.gmra.mxu2 %vm6252_vm12, %v3325_v56  ;;  %2944 = vmatmul.msk.f32.gmra.mxu3 %vm6254_vm15, %v3325_v56  ;;  %vm6259_vm12 = vcmp.eq.s32.totalorder %v3474_v48, %v3669_v20  ;;  %vm6257_vm15 = vcmp.eq.s32.totalorder %v3489_v53, %v3669_v20 }
  0xa0   :  { %275 = vperm.xlu2 %3268, %v87_v13  }
  0xa1   :  { %272 = vperm.xlu1 %3267, %v86_v14   ;;  %269 = vperm.xlu0 %3266, %v85_v15  }
  0xa3   :  { %v3941_v42 = vpop.permute.xlu0 %143  ;;  %v3967_v43 = vpop.permute.xlu1 %146 }
  0xa5   :  { %2753 = vmatmul.msk.f32.gmra.mxu0 %vm6259_vm12, %v3325_v56  ;;  %2817 = vmatmul.msk.f32.gmra.mxu1 %vm6256_vm14, %v3325_v56  ;;  %vm6261_vm14 = vcmp.eq.s32.totalorder %v3474_v48, %v3704_v24  ;;  %vm6262_vm12 = vcmp.eq.s32.totalorder %v3492_v54, %v3704_v24 }
  0xa6   :  { %2881 = vmatmul.msk.f32.gmra.mxu2 %vm6257_vm15, %v3325_v56  ;;  %2945 = vmatmul.msk.f32.gmra.mxu3 %vm6258_vm13, %v3325_v56  ;;  %vm6260_vm15 = vcmp.eq.s32.totalorder %v3486_v52, %v3704_v24  ;;  %vm6263_vm13 = vcmp.eq.s32.totalorder %v3489_v53, %v3704_v24 }
  0xa8   :  { %284 = vperm.xlu2 %3268, %v90_v21  }
  0xa9   :  { %281 = vperm.xlu1 %3267, %v89_v22   ;;  %278 = vperm.xlu0 %3266, %v88_v23  }
  0xab   :  { %v4019_v1 = vpop.permute.xlu0 %152  ;;  %v4045_v11 = vpop.permute.xlu1 %155 }
  0xad   :  { %2754 = vmatmul.msk.f32.gmra.mxu0 %vm6261_vm14, %v3325_v56  ;;  %2818 = vmatmul.msk.f32.gmra.mxu1 %vm6260_vm15, %v3325_v56  ;;  %vm6265_vm15 = vcmp.eq.s32.totalorder %v3474_v48, %v3733_v26  ;;  %vm6264_vm14 = vcmp.eq.s32.totalorder %v3486_v52, %v3733_v26 }
  0xae   :  { %2882 = vmatmul.msk.f32.gmra.mxu2 %vm6263_vm13, %v3325_v56  ;;  %2946 = vmatmul.msk.f32.gmra.mxu3 %vm6262_vm12, %v3325_v56  ;;  %vm6267_vm12 = vcmp.eq.s32.totalorder %v3489_v53, %v3733_v26  ;;  %vm6266_vm13 = vcmp.eq.s32.totalorder %v3492_v54, %v3733_v26 }
  0xb1   :  { %287 = vperm.xlu0 %3266, %v91_v25  }
  0xb3   :  { %v4097_v39 = vpop.permute.xlu0 %161 }
  0xb5   :  { %2755 = vmatmul.msk.f32.gmra.mxu0 %vm6265_vm15, %v3325_v56  ;;  %2819 = vmatmul.msk.f32.gmra.mxu1 %vm6264_vm14, %v3325_v56  ;;  %vm6271_vm14 = vcmp.eq.s32.totalorder %v3474_v48, %v3759_v27  ;;  %vm6268_vm15 = vcmp.eq.s32.totalorder %v3486_v52, %v3759_v27 }
  0xb6   :  { %2883 = vmatmul.msk.f32.gmra.mxu2 %vm6267_vm12, %v3325_v56  ;;  %2947 = vmatmul.msk.f32.gmra.mxu3 %vm6266_vm13, %v3325_v56  ;;  %vm6269_vm13 = vcmp.eq.s32.totalorder %v3489_v53, %v3759_v27  ;;  %vm6270_vm12 = vcmp.eq.s32.totalorder %v3492_v54, %v3759_v27 }
  0xbd   :  { %2756 = vmatmul.msk.f32.gmra.mxu0 %vm6271_vm14, %v3325_v56  ;;  %2820 = vmatmul.msk.f32.gmra.mxu1 %vm6268_vm15, %v3325_v56  ;;  %vm6273_vm15 = vcmp.eq.s32.totalorder %v3474_v48, %v3785_v32  ;;  %vm6274_vm14 = vcmp.eq.s32.totalorder %v3492_v54, %v3785_v32 }
  0xbe   :  { %2884 = vmatmul.msk.f32.gmra.mxu2 %vm6269_vm13, %v3325_v56  ;;  %2948 = vmatmul.msk.f32.gmra.mxu3 %vm6270_vm12, %v3325_v56  ;;  %vm6272_vm13 = vcmp.eq.s32.totalorder %v3486_v52, %v3785_v32  ;;  %vm6275_vm12 = vcmp.eq.s32.totalorder %v3489_v53, %v3785_v32 }
  0xc5   :  { %2757 = vmatmul.msk.f32.gmra.mxu0 %vm6273_vm15, %v3325_v56  ;;  %2821 = vmatmul.msk.f32.gmra.mxu1 %vm6272_vm13, %v3325_v56  ;;  %vm6277_vm13 = vcmp.eq.s32.totalorder %v3474_v48, %v3811_v33  ;;  %vm6276_vm15 = vcmp.eq.s32.totalorder %v3486_v52, %v3811_v33 }
  0xc6   :  { %2885 = vmatmul.msk.f32.gmra.mxu2 %vm6275_vm12, %v3325_v56  ;;  %2949 = vmatmul.msk.f32.gmra.mxu3 %vm6274_vm14, %v3325_v56  ;;  %vm6279_vm14 = vcmp.eq.s32.totalorder %v3489_v53, %v3811_v33  ;;  %vm6278_vm12 = vcmp.eq.s32.totalorder %v3492_v54, %v3811_v33 }
  0xcd   :  { %2758 = vmatmul.msk.f32.gmra.mxu0 %vm6277_vm13, %v3325_v56  ;;  %2822 = vmatmul.msk.f32.gmra.mxu1 %vm6276_vm15, %v3325_v56  ;;  %vm6281_vm15 = vcmp.eq.s32.totalorder %v3474_v48, %v3837_v34  ;;  %vm6280_vm13 = vcmp.eq.s32.totalorder %v3486_v52, %v3837_v34 }
  0xce   :  { %2886 = vmatmul.msk.f32.gmra.mxu2 %vm6279_vm14, %v3325_v56  ;;  %2950 = vmatmul.msk.f32.gmra.mxu3 %vm6278_vm12, %v3325_v56  ;;  %vm6283_vm12 = vcmp.eq.s32.totalorder %v3489_v53, %v3837_v34  ;;  %vm6282_vm14 = vcmp.eq.s32.totalorder %v3492_v54, %v3837_v34 }
  0xd5   :  { %2759 = vmatmul.msk.f32.gmra.mxu0 %vm6281_vm15, %v3325_v56  ;;  %2823 = vmatmul.msk.f32.gmra.mxu1 %vm6280_vm13, %v3325_v56  ;;  %vm6285_vm13 = vcmp.eq.s32.totalorder %v3474_v48, %v3863_v35  ;;  %vm6284_vm15 = vcmp.eq.s32.totalorder %v3486_v52, %v3863_v35 }
  0xd6   :  { %2887 = vmatmul.msk.f32.gmra.mxu2 %vm6283_vm12, %v3325_v56  ;;  %2951 = vmatmul.msk.f32.gmra.mxu3 %vm6282_vm14, %v3325_v56  ;;  %vm6287_vm14 = vcmp.eq.s32.totalorder %v3489_v53, %v3863_v35  ;;  %vm6286_vm12 = vcmp.eq.s32.totalorder %v3492_v54, %v3863_v35 }
  0xdd   :  { %2760 = vmatmul.msk.f32.gmra.mxu0 %vm6285_vm13, %v3325_v56  ;;  %2824 = vmatmul.msk.f32.gmra.mxu1 %vm6284_vm15, %v3325_v56  ;;  %vm6289_vm15 = vcmp.eq.s32.totalorder %v3474_v48, %v3889_v38  ;;  %vm6288_vm13 = vcmp.eq.s32.totalorder %v3486_v52, %v3889_v38 }
  0xde   :  { %2888 = vmatmul.msk.f32.gmra.mxu2 %vm6287_vm14, %v3325_v56  ;;  %2952 = vmatmul.msk.f32.gmra.mxu3 %vm6286_vm12, %v3325_v56  ;;  %vm6291_vm12 = vcmp.eq.s32.totalorder %v3489_v53, %v3889_v38  ;;  %vm6290_vm14 = vcmp.eq.s32.totalorder %v3492_v54, %v3889_v38 }
  0xe5   :  { %2761 = vmatmul.msk.f32.gmra.mxu0 %vm6289_vm15, %v3325_v56  ;;  %2825 = vmatmul.msk.f32.gmra.mxu1 %vm6288_vm13, %v3325_v56  ;;  %vm6293_vm13 = vcmp.eq.s32.totalorder %v3474_v48, %v3915_v41  ;;  %vm6292_vm15 = vcmp.eq.s32.totalorder %v3486_v52, %v3915_v41 }
  0xe6   :  { %2889 = vmatmul.msk.f32.gmra.mxu2 %vm6291_vm12, %v3325_v56  ;;  %2953 = vmatmul.msk.f32.gmra.mxu3 %vm6290_vm14, %v3325_v56  ;;  %vm6295_vm14 = vcmp.eq.s32.totalorder %v3489_v53, %v3915_v41  ;;  %vm6294_vm12 = vcmp.eq.s32.totalorder %v3492_v54, %v3915_v41 }
  0xed   :  { %2762 = vmatmul.msk.f32.gmra.mxu0 %vm6293_vm13, %v3325_v56  ;;  %2826 = vmatmul.msk.f32.gmra.mxu1 %vm6292_vm15, %v3325_v56  ;;  %vm6297_vm15 = vcmp.eq.s32.totalorder %v3474_v48, %v3941_v42  ;;  %vm6296_vm13 = vcmp.eq.s32.totalorder %v3486_v52, %v3941_v42 }
  0xee   :  { %2890 = vmatmul.msk.f32.gmra.mxu2 %vm6295_vm14, %v3325_v56  ;;  %2954 = vmatmul.msk.f32.gmra.mxu3 %vm6294_vm12, %v3325_v56  ;;  %vm6299_vm12 = vcmp.eq.s32.totalorder %v3489_v53, %v3941_v42  ;;  %vm6298_vm14 = vcmp.eq.s32.totalorder %v3492_v54, %v3941_v42 }
  0xf5   :  { %2763 = vmatmul.msk.f32.gmra.mxu0 %vm6297_vm15, %v3325_v56  ;;  %2827 = vmatmul.msk.f32.gmra.mxu1 %vm6296_vm13, %v3325_v56  ;;  %vm6303_vm13 = vcmp.eq.s32.totalorder %v3474_v48, %v3967_v43  ;;  %vm6301_vm15 = vcmp.eq.s32.totalorder %v3486_v52, %v3967_v43 }
  0xf6   :  { %2891 = vmatmul.msk.f32.gmra.mxu2 %vm6299_vm12, %v3325_v56  ;;  %2955 = vmatmul.msk.f32.gmra.mxu3 %vm6298_vm14, %v3325_v56  ;;  %vm6300_vm14 = vcmp.eq.s32.totalorder %v3489_v53, %v3967_v43  ;;  %vm6302_vm12 = vcmp.eq.s32.totalorder %v3492_v54, %v3967_v43 }
  0xfa   :  { %v946_v44 = vpop.f32.mrf.mxu0  ;;  %v1155_v45 = vpop.f32.mrf.mxu1 }
  0xfb   :  { %v1156_v49 = vadd.f32 %v1155_v45, %v946_v44 }
  0xfd   :  { %2764 = vmatmul.msk.f32.gmra.mxu0 %vm6303_vm13, %v3325_v56  ;;  %2828 = vmatmul.msk.f32.gmra.mxu1 %vm6301_vm15, %v3325_v56  ;;  %vm6305_vm15 = vcmp.eq.s32.totalorder %v3486_v52, %v3993_v60  ;;  %vm6306_vm13 = vcmp.eq.s32.totalorder %v3492_v54, %v3993_v60 }
  0xfe   :  { %2892 = vmatmul.msk.f32.gmra.mxu2 %vm6300_vm14, %v3325_v56  ;;  %2956 = vmatmul.msk.f32.gmra.mxu3 %vm6302_vm12, %v3325_v56  ;;  %vm6307_vm14 = vcmp.eq.s32.totalorder %v3474_v48, %v3993_v60  ;;  %vm6304_vm12 = vcmp.eq.s32.totalorder %v3489_v53, %v3993_v60 }
 0x101   :  { %v1364_v50 = vpop.f32.mrf.mxu2  ;;  %v1573_v51 = vpop.f32.mrf.mxu3 }
 0x102   :  { %v1365_v57 = vadd.f32 %v1364_v50, %v1156_v49  ;;  %v949_v58 = vpop.f32.mrf.mxu0  ;;  %v1158_v59 = vpop.f32.mrf.mxu1 }
 0x103   :  { %v1159_v2 = vadd.f32 %v1158_v59, %v949_v58  ;;  %v4123_v58 = vpop.permute.xlu1 %164 }
 0x104   :  { %v1574_v61 = vadd.f32 %v1573_v51, %v1365_v57  ;;  %v820_v51 = vld [vmem:[#allocation3 + $0x98] sm:$0xff] }
 0x105   :  { %2765 = vmatmul.msk.f32.gmra.mxu0 %vm6307_vm14, %v3325_v56  ;;  %2829 = vmatmul.msk.f32.gmra.mxu1 %vm6305_vm15, %v3325_v56  ;;  %vm6308_vm15 = vcmp.eq.s32.totalorder %v3486_v52, %v4019_v1  ;;  %vm6310_vm14 = vcmp.eq.s32.totalorder %v3492_v54, %v4019_v1  ;;  %v852_v57 = vld [vmem:[#allocation3 + $0x198] sm:$0xff] }
 0x106   :  { %2601 = vst [vmem:[#allocation6] sm:$0xff] %v1574_v61  ;;  %2893 = vmatmul.msk.f32.gmra.mxu2 %vm6304_vm12, %v3325_v56  ;;  %2957 = vmatmul.msk.f32.gmra.mxu3 %vm6306_vm13, %v3325_v56  ;;  %vm6311_vm12 = vcmp.eq.s32.totalorder %v3474_v48, %v4019_v1  ;;  %vm6309_vm13 = vcmp.eq.s32.totalorder %v3489_v53, %v4019_v1 }
 0x107   :  { %1771 = vmatpush.msrb.mxu0 %v820_v51  ;;  %1980 = vmatpush.msrb.mxu1 %v852_v57  ;;  %v850_v51 = vld [vmem:[#allocation3 + $0x188] sm:$0xff] }
 0x109   :  { %v1367_v3 = vpop.f32.mrf.mxu2  ;;  %v1576_v5 = vpop.f32.mrf.mxu3  ;;  %1981 = vmatpush.msrb.mxu1 %v850_v51 }
 0x10a   :  { %v1368_v6 = vadd.f32 %v1367_v3, %v1159_v2  ;;  %v952_v7 = vpop.f32.mrf.mxu0  ;;  %v1161_v9 = vpop.f32.mrf.mxu1 }
 0x10b   :  { %v1162_v13 = vadd.f32 %v1161_v9, %v952_v7  ;;  %v4201_v36 = vpop.permute.xlu1 %173 }
 0x10c   :  { %v1577_v10 = vadd.f32 %v1576_v5, %v1368_v6  ;;  %v4149_v6 = vpop.permute.xlu2 %167 }
 0x10d   :  { %2766 = vmatmul.msk.f32.gmra.mxu0 %vm6311_vm12, %v3325_v56  ;;  %2830 = vmatmul.msk.f32.gmra.mxu1 %vm6308_vm15, %v3325_v56  ;;  %vm6315_vm15 = vcmp.eq.s32.totalorder %v3474_v48, %v4045_v11  ;;  %vm6314_vm12 = vcmp.eq.s32.totalorder %v3492_v54, %v4045_v11 }
 0x10e   :  { %2603 = vst [vmem:[#allocation6 + $0x10] sm:$0xff] %v1577_v10  ;;  %2894 = vmatmul.msk.f32.gmra.mxu2 %vm6309_vm13, %v3325_v56  ;;  %2958 = vmatmul.msk.f32.gmra.mxu3 %vm6310_vm14, %v3325_v56  ;;  %vm6312_vm13 = vcmp.eq.s32.totalorder %v3486_v52, %v4045_v11  ;;  %vm6313_vm14 = vcmp.eq.s32.totalorder %v3489_v53, %v4045_v11 }
 0x111   :  { %v1370_v14 = vpop.f32.mrf.mxu2  ;;  %v1579_v15 = vpop.f32.mrf.mxu3 }
 0x112   :  { %v1371_v16 = vadd.f32 %v1370_v14, %v1162_v13  ;;  %v955_v17 = vpop.f32.mrf.mxu0  ;;  %v1164_v18 = vpop.f32.mrf.mxu1 }
 0x113   :  { %v1165_v21 = vadd.f32 %v1164_v18, %v955_v17  ;;  %v4175_v17 = vpop.permute.xlu0 %170 }
 0x114   :  { %v1580_v19 = vadd.f32 %v1579_v15, %v1371_v16  ;;  %v4227_v57 = vpop.permute.xlu2 %176 }
 0x115   :  { %2767 = vmatmul.msk.f32.gmra.mxu0 %vm6315_vm15, %v3325_v56  ;;  %2831 = vmatmul.msk.f32.gmra.mxu1 %vm6312_vm13, %v3325_v56  ;;  %vm6319_vm13 = vcmp.eq.s32.totalorder %v3474_v48, %v4071_v30  ;;  %vm6318_vm15 = vcmp.eq.s32.totalorder %v3492_v54, %v4071_v30 }
 0x116   :  { %2605 = vst [vmem:[#allocation6 + $0x20] sm:$0xff] %v1580_v19  ;;  %2895 = vmatmul.msk.f32.gmra.mxu2 %vm6313_vm14, %v3325_v56  ;;  %2959 = vmatmul.msk.f32.gmra.mxu3 %vm6314_vm12, %v3325_v56  ;;  %vm6317_vm14 = vcmp.eq.s32.totalorder %v3486_v52, %v4071_v30  ;;  %vm6316_vm12 = vcmp.eq.s32.totalorder %v3489_v53, %v4071_v30 }
 0x119   :  { %v1373_v22 = vpop.f32.mrf.mxu2  ;;  %v1582_v23 = vpop.f32.mrf.mxu3 }
 0x11a   :  { %v1374_v25 = vadd.f32 %v1373_v22, %v1165_v21  ;;  %v958_v28 = vpop.f32.mrf.mxu0  ;;  %v1167_v29 = vpop.f32.mrf.mxu1 }
 0x11b   :  { %v1168_v40 = vadd.f32 %v1167_v29, %v958_v28  ;;  %v882_v29 = vld [vmem:[#allocation3 + $0x288] sm:$0xff] }
 0x11c   :  { %v1583_v31 = vadd.f32 %v1582_v23, %v1374_v25  ;;  %2190 = vmatpush.msrb.mxu2 %v882_v29 }
 0x11d   :  { %2768 = vmatmul.msk.f32.gmra.mxu0 %vm6319_vm13, %v3325_v56  ;;  %2832 = vmatmul.msk.f32.gmra.mxu1 %vm6317_vm14, %v3325_v56  ;;  %vm6321_vm14 = vcmp.eq.s32.totalorder %v3486_v52, %v4097_v39  ;;  %vm6322_vm13 = vcmp.eq.s32.totalorder %v3492_v54, %v4097_v39 }
 0x11e   :  { %2607 = vst [vmem:[#allocation6 + $0x30] sm:$0xff] %v1583_v31  ;;  %2896 = vmatmul.msk.f32.gmra.mxu2 %vm6316_vm12, %v3325_v56  ;;  %2960 = vmatmul.msk.f32.gmra.mxu3 %vm6318_vm15, %v3325_v56  ;;  %vm6323_vm12 = vcmp.eq.s32.totalorder %v3474_v48, %v4097_v39  ;;  %vm6320_vm15 = vcmp.eq.s32.totalorder %v3489_v53, %v4097_v39  ;;  %v914_v31 = vld [vmem:[#allocation3 + $0x388] sm:$0xff] }
 0x11f   :  { %2399 = vmatpush.msrb.mxu3 %v914_v31 }
 0x121   :  { %v1376_v44 = vpop.f32.mrf.mxu2  ;;  %v1585_v45 = vpop.f32.mrf.mxu3 }
 0x122   :  { %v1377_v46 = vadd.f32 %v1376_v44, %v1168_v40  ;;  %v961_v47 = vpop.f32.mrf.mxu0  ;;  %v1170_v49 = vpop.f32.mrf.mxu1 }
 0x123   :  { %v1171_v59 = vadd.f32 %v1170_v49, %v961_v47 }
 0x124   :  { %v1586_v50 = vadd.f32 %v1585_v45, %v1377_v46 }
 0x125   :  { %2769 = vmatmul.msk.f32.gmra.mxu0 %vm6323_vm12, %v3325_v56  ;;  %2833 = vmatmul.msk.f32.gmra.mxu1 %vm6321_vm14, %v3325_v56  ;;  %vm6324_vm14 = vcmp.eq.s32.totalorder %v3486_v52, %v4123_v58  ;;  %vm6326_vm12 = vcmp.eq.s32.totalorder %v3492_v54, %v4123_v58 }
 0x126   :  { %2609 = vst [vmem:[#allocation6 + $0x40] sm:$0xff] %v1586_v50  ;;  %2897 = vmatmul.msk.f32.gmra.mxu2 %vm6320_vm15, %v3325_v56  ;;  %2961 = vmatmul.msk.f32.gmra.mxu3 %vm6322_vm13, %v3325_v56  ;;  %vm6327_vm15 = vcmp.eq.s32.totalorder %v3474_v48, %v4123_v58  ;;  %vm6325_vm13 = vcmp.eq.s32.totalorder %v3489_v53, %v4123_v58  ;;  %v818_v50 = vld [vmem:[#allocation3 + $0x88] sm:$0xff] }
 0x127   :  { %1772 = vmatpush.msrb.mxu0 %v818_v50 }
 0x129   :  { %v1379_v61 = vpop.f32.mrf.mxu2  ;;  %v1588_v62 = vpop.f32.mrf.mxu3 }
 0x12a   :  { %v1380_v63 = vadd.f32 %v1379_v61, %v1171_v59  ;;  %v964_v2 = vpop.f32.mrf.mxu0  ;;  %v1173_v3 = vpop.f32.mrf.mxu1 }
 0x12b   :  { %v1174_v7 = vadd.f32 %v1173_v3, %v964_v2 }
 0x12c   :  { %v1589_v5 = vadd.f32 %v1588_v62, %v1380_v63 }
 0x12d   :  { %2770 = vmatmul.msk.f32.gmra.mxu0 %vm6327_vm15, %v3325_v56  ;;  %2834 = vmatmul.msk.f32.gmra.mxu1 %vm6324_vm14, %v3325_v56  ;;  %vm6331_vm14 = vcmp.eq.s32.totalorder %v3474_v48, %v4149_v6  ;;  %vm6330_vm15 = vcmp.eq.s32.totalorder %v3492_v54, %v4149_v6 }
 0x12e   :  { %2611 = vst [vmem:[#allocation6 + $0x50] sm:$0xff] %v1589_v5  ;;  %2898 = vmatmul.msk.f32.gmra.mxu2 %vm6325_vm13, %v3325_v56  ;;  %2962 = vmatmul.msk.f32.gmra.mxu3 %vm6326_vm12, %v3325_v56  ;;  %vm6328_vm13 = vcmp.eq.s32.totalorder %v3486_v52, %v4149_v6  ;;  %vm6329_vm12 = vcmp.eq.s32.totalorder %v3489_v53, %v4149_v6 }
 0x131   :  { %v1382_v9 = vpop.f32.mrf.mxu2  ;;  %v1591_v10 = vpop.f32.mrf.mxu3 }
 0x132   :  { %v1383_v13 = vadd.f32 %v1382_v9, %v1174_v7  ;;  %v967_v14 = vpop.f32.mrf.mxu0  ;;  %v1176_v15 = vpop.f32.mrf.mxu1 }
 0x133   :  { %v1177_v18 = vadd.f32 %v1176_v15, %v967_v14  ;;  %v4253_v7 = vpop.permute.xlu0 %179 }
 0x134   :  { %v1592_v16 = vadd.f32 %v1591_v10, %v1383_v13 }
 0x135   :  { %2771 = vmatmul.msk.f32.gmra.mxu0 %vm6331_vm14, %v3325_v56  ;;  %2835 = vmatmul.msk.f32.gmra.mxu1 %vm6328_vm13, %v3325_v56  ;;  %vm6335_vm13 = vcmp.eq.s32.totalorder %v3474_v48, %v4175_v17  ;;  %vm6334_vm14 = vcmp.eq.s32.totalorder %v3492_v54, %v4175_v17 }
 0x136   :  { %2613 = vst [vmem:[#allocation6 + $0x60] sm:$0xff] %v1592_v16  ;;  %2899 = vmatmul.msk.f32.gmra.mxu2 %vm6329_vm12, %v3325_v56  ;;  %2963 = vmatmul.msk.f32.gmra.mxu3 %vm6330_vm15, %v3325_v56  ;;  %vm6333_vm12 = vcmp.eq.s32.totalorder %v3486_v52, %v4175_v17  ;;  %vm6332_vm15 = vcmp.eq.s32.totalorder %v3489_v53, %v4175_v17 }
 0x139   :  { %v1385_v19 = vpop.f32.mrf.mxu2  ;;  %v1594_v21 = vpop.f32.mrf.mxu3 }
 0x13a   :  { %v1386_v22 = vadd.f32 %v1385_v19, %v1177_v18  ;;  %v970_v23 = vpop.f32.mrf.mxu0  ;;  %v1179_v25 = vpop.f32.mrf.mxu1 }
 0x13b   :  { %v1180_v37 = vadd.f32 %v1179_v25, %v970_v23  ;;  %v4279_v19 = vpop.permute.xlu1 %182 }
 0x13c   :  { %v1595_v28 = vadd.f32 %v1594_v21, %v1386_v22 }
 0x13d   :  { %2772 = vmatmul.msk.f32.gmra.mxu0 %vm6335_vm13, %v3325_v56  ;;  %2836 = vmatmul.msk.f32.gmra.mxu1 %vm6333_vm12, %v3325_v56  ;;  %vm6337_vm12 = vcmp.eq.s32.totalorder %v3486_v52, %v4201_v36  ;;  %vm6338_vm13 = vcmp.eq.s32.totalorder %v3492_v54, %v4201_v36 }
 0x13e   :  { %2615 = vst [vmem:[#allocation6 + $0x70] sm:$0xff] %v1595_v28  ;;  %2900 = vmatmul.msk.f32.gmra.mxu2 %vm6332_vm15, %v3325_v56  ;;  %2964 = vmatmul.msk.f32.gmra.mxu3 %vm6334_vm14, %v3325_v56  ;;  %vm6339_vm15 = vcmp.eq.s32.totalorder %v3474_v48, %v4201_v36  ;;  %vm6336_vm14 = vcmp.eq.s32.totalorder %v3489_v53, %v4201_v36 }
 0x141   :  { %v1388_v40 = vpop.f32.mrf.mxu2  ;;  %v1597_v44 = vpop.f32.mrf.mxu3 }
 0x142   :  { %v1389_v45 = vadd.f32 %v1388_v40, %v1180_v37  ;;  %v973_v46 = vpop.f32.mrf.mxu0  ;;  %v1182_v47 = vpop.f32.mrf.mxu1  ;;  %v880_v37 = vld [vmem:[#allocation3 + $0x278] sm:$0xff] }
 0x143   :  { %v1183_v59 = vadd.f32 %v1182_v47, %v973_v46  ;;  %v912_v40 = vld [vmem:[#allocation3 + $0x378] sm:$0xff]  ;;  %2191 = vmatpush.msrb.mxu2 %v880_v37 }
 0x144   :  { %v1598_v49 = vadd.f32 %v1597_v44, %v1389_v45  ;;  %2400 = vmatpush.msrb.mxu3 %v912_v40  ;;  %v4305_v44 = vpop.permute.xlu2 %185 }
 0x145   :  { %2773 = vmatmul.msk.f32.gmra.mxu0 %vm6339_vm15, %v3325_v56  ;;  %2837 = vmatmul.msk.f32.gmra.mxu1 %vm6337_vm12, %v3325_v56  ;;  %vm6340_vm12 = vcmp.eq.s32.totalorder %v3486_v52, %v4227_v57  ;;  %vm6342_vm15 = vcmp.eq.s32.totalorder %v3492_v54, %v4227_v57 }
 0x146   :  { %2617 = vst [vmem:[#allocation6 + $0x80] sm:$0xff] %v1598_v49  ;;  %2901 = vmatmul.msk.f32.gmra.mxu2 %vm6336_vm14, %v3325_v56  ;;  %2965 = vmatmul.msk.f32.gmra.mxu3 %vm6338_vm13, %v3325_v56  ;;  %vm6343_vm14 = vcmp.eq.s32.totalorder %v3474_v48, %v4227_v57  ;;  %vm6341_vm13 = vcmp.eq.s32.totalorder %v3489_v53, %v4227_v57 }
 0x149   :  { %v1391_v61 = vpop.f32.mrf.mxu2  ;;  %v1600_v62 = vpop.f32.mrf.mxu3 }
 0x14a   :  { %v1392_v63 = vadd.f32 %v1391_v61, %v1183_v59  ;;  %v976_v2 = vpop.f32.mrf.mxu0  ;;  %v1185_v3 = vpop.f32.mrf.mxu1  ;;  %v816_v61 = vld [vmem:[#allocation3 + $0x78] sm:$0xff] }
 0x14b   :  { %v1186_v9 = vadd.f32 %v1185_v3, %v976_v2  ;;  %1773 = vmatpush.msrb.mxu0 %v816_v61 }
 0x14c   :  { %v1601_v5 = vadd.f32 %v1600_v62, %v1392_v63  ;;  %v848_v62 = vld [vmem:[#allocation3 + $0x178] sm:$0xff]  ;;  %v4331_v63 = vpop.permute.xlu0 %188 }
 0x14d   :  { %2774 = vmatmul.msk.f32.gmra.mxu0 %vm6343_vm14, %v3325_v56  ;;  %2838 = vmatmul.msk.f32.gmra.mxu1 %vm6340_vm12, %v3325_v56  ;;  %vm6347_vm12 = vcmp.eq.s32.totalorder %v3474_v48, %v4253_v7  ;;  %vm6346_vm14 = vcmp.eq.s32.totalorder %v3492_v54, %v4253_v7 }
 0x14e   :  { %2619 = vst [vmem:[#allocation6 + $0x90] sm:$0xff] %v1601_v5  ;;  %2902 = vmatmul.msk.f32.gmra.mxu2 %vm6341_vm13, %v3325_v56  ;;  %2966 = vmatmul.msk.f32.gmra.mxu3 %vm6342_vm15, %v3325_v56  ;;  %vm6344_vm13 = vcmp.eq.s32.totalorder %v3486_v52, %v4253_v7  ;;  %vm6345_vm15 = vcmp.eq.s32.totalorder %v3489_v53, %v4253_v7 }
 0x14f   :  { %1982 = vmatpush.msrb.mxu1 %v848_v62 }
 0x151   :  { %v1394_v10 = vpop.f32.mrf.mxu2  ;;  %v1603_v13 = vpop.f32.mrf.mxu3 }
 0x152   :  { %v1395_v14 = vadd.f32 %v1394_v10, %v1186_v9  ;;  %v979_v15 = vpop.f32.mrf.mxu0  ;;  %v1188_v16 = vpop.f32.mrf.mxu1 }
 0x153   :  { %v1189_v21 = vadd.f32 %v1188_v16, %v979_v15  ;;  %v4357_v15 = vpop.permute.xlu1 %191 }
 0x154   :  { %v1604_v18 = vadd.f32 %v1603_v13, %v1395_v14 }
 0x155   :  { %2775 = vmatmul.msk.f32.gmra.mxu0 %vm6347_vm12, %v3325_v56  ;;  %2839 = vmatmul.msk.f32.gmra.mxu1 %vm6344_vm13, %v3325_v56  ;;  %vm6351_vm13 = vcmp.eq.s32.totalorder %v3474_v48, %v4279_v19  ;;  %vm6350_vm12 = vcmp.eq.s32.totalorder %v3492_v54, %v4279_v19 }
 0x156   :  { %2621 = vst [vmem:[#allocation6 + $0xa0] sm:$0xff] %v1604_v18  ;;  %2903 = vmatmul.msk.f32.gmra.mxu2 %vm6345_vm15, %v3325_v56  ;;  %2967 = vmatmul.msk.f32.gmra.mxu3 %vm6346_vm14, %v3325_v56  ;;  %vm6349_vm15 = vcmp.eq.s32.totalorder %v3486_v52, %v4279_v19  ;;  %vm6348_vm14 = vcmp.eq.s32.totalorder %v3489_v53, %v4279_v19 }
 0x159   :  { %v1397_v22 = vpop.f32.mrf.mxu2  ;;  %v1606_v23 = vpop.f32.mrf.mxu3 }
 0x15a   :  { %v1398_v25 = vadd.f32 %v1397_v22, %v1189_v21  ;;  %v982_v28 = vpop.f32.mrf.mxu0  ;;  %v1191_v29 = vpop.f32.mrf.mxu1 }
 0x15b   :  { %v1192_v45 = vadd.f32 %v1191_v29, %v982_v28  ;;  %v4383_v29 = vpop.permute.xlu2 %194 }
 0x15c   :  { %v1607_v31 = vadd.f32 %v1606_v23, %v1398_v25 }
 0x15d   :  { %2776 = vmatmul.msk.f32.gmra.mxu0 %vm6351_vm13, %v3325_v56  ;;  %2840 = vmatmul.msk.f32.gmra.mxu1 %vm6349_vm15, %v3325_v56  ;;  %vm6353_vm15 = vcmp.eq.s32.totalorder %v3486_v52, %v4305_v44  ;;  %vm6354_vm13 = vcmp.eq.s32.totalorder %v3492_v54, %v4305_v44 }
 0x15e   :  { %2623 = vst [vmem:[#allocation6 + $0xb0] sm:$0xff] %v1607_v31  ;;  %2904 = vmatmul.msk.f32.gmra.mxu2 %vm6348_vm14, %v3325_v56  ;;  %2968 = vmatmul.msk.f32.gmra.mxu3 %vm6350_vm12, %v3325_v56  ;;  %vm6355_vm14 = vcmp.eq.s32.totalorder %v3474_v48, %v4305_v44  ;;  %vm6352_vm12 = vcmp.eq.s32.totalorder %v3489_v53, %v4305_v44 }
 0x161   :  { %v1400_v46 = vpop.f32.mrf.mxu2  ;;  %v1609_v47 = vpop.f32.mrf.mxu3 }
 0x162   :  { %v1401_v49 = vadd.f32 %v1400_v46, %v1192_v45  ;;  %v985_v50 = vpop.f32.mrf.mxu0  ;;  %v1194_v51 = vpop.f32.mrf.mxu1 }
 0x163   :  { %v1195_v2 = vadd.f32 %v1194_v51, %v985_v50  ;;  %v878_v50 = vld [vmem:[#allocation3 + $0x268] sm:$0xff] }
 0x164   :  { %v1610_v59 = vadd.f32 %v1609_v47, %v1401_v49  ;;  %v910_v51 = vld [vmem:[#allocation3 + $0x368] sm:$0xff]  ;;  %2192 = vmatpush.msrb.mxu2 %v878_v50 }
 0x165   :  { %2777 = vmatmul.msk.f32.gmra.mxu0 %vm6355_vm14, %v3325_v56  ;;  %2841 = vmatmul.msk.f32.gmra.mxu1 %vm6353_vm15, %v3325_v56  ;;  %vm6356_vm15 = vcmp.eq.s32.totalorder %v3486_v52, %v4331_v63  ;;  %vm6358_vm14 = vcmp.eq.s32.totalorder %v3492_v54, %v4331_v63 }
 0x166   :  { %2625 = vst [vmem:[#allocation6 + $0xc0] sm:$0xff] %v1610_v59  ;;  %2905 = vmatmul.msk.f32.gmra.mxu2 %vm6352_vm12, %v3325_v56  ;;  %2969 = vmatmul.msk.f32.gmra.mxu3 %vm6354_vm13, %v3325_v56  ;;  %vm6359_vm12 = vcmp.eq.s32.totalorder %v3474_v48, %v4331_v63  ;;  %vm6357_vm13 = vcmp.eq.s32.totalorder %v3489_v53, %v4331_v63  ;;  %v4409_v59 = vpop.permute.xlu0 %197 }
 0x167   :  { %2401 = vmatpush.msrb.mxu3 %v910_v51 }
 0x169   :  { %v1403_v3 = vpop.f32.mrf.mxu2  ;;  %v1612_v5 = vpop.f32.mrf.mxu3 }
 0x16a   :  { %v1404_v9 = vadd.f32 %v1403_v3, %v1195_v2  ;;  %v988_v10 = vpop.f32.mrf.mxu0  ;;  %v1197_v13 = vpop.f32.mrf.mxu1 }
 0x16b   :  { %v1198_v16 = vadd.f32 %v1197_v13, %v988_v10  ;;  %v814_v13 = vld [vmem:[#allocation3 + $0x68] sm:$0xff] }
 0x16c   :  { %v1613_v14 = vadd.f32 %v1612_v5, %v1404_v9  ;;  %1774 = vmatpush.msrb.mxu0 %v814_v13 }
 0x16d   :  { %2778 = vmatmul.msk.f32.gmra.mxu0 %vm6359_vm12, %v3325_v56  ;;  %2842 = vmatmul.msk.f32.gmra.mxu1 %vm6356_vm15, %v3325_v56  ;;  %vm6363_vm15 = vcmp.eq.s32.totalorder %v3474_v48, %v4357_v15  ;;  %vm6362_vm12 = vcmp.eq.s32.totalorder %v3492_v54, %v4357_v15 }
 0x16e   :  { %2627 = vst [vmem:[#allocation6 + $0xd0] sm:$0xff] %v1613_v14  ;;  %2906 = vmatmul.msk.f32.gmra.mxu2 %vm6357_vm13, %v3325_v56  ;;  %2970 = vmatmul.msk.f32.gmra.mxu3 %vm6358_vm14, %v3325_v56  ;;  %vm6360_vm13 = vcmp.eq.s32.totalorder %v3486_v52, %v4357_v15  ;;  %vm6361_vm14 = vcmp.eq.s32.totalorder %v3489_v53, %v4357_v15  ;;  %v846_v14 = vld [vmem:[#allocation3 + $0x168] sm:$0xff] }
 0x16f   :  { %1983 = vmatpush.msrb.mxu1 %v846_v14  ;;  %v876_v14 = vld [vmem:[#allocation3 + $0x258] sm:$0xff] }
 0x170   :  { %2193 = vmatpush.msrb.mxu2 %v876_v14 }
 0x171   :  { %v1406_v18 = vpop.f32.mrf.mxu2  ;;  %v1615_v21 = vpop.f32.mrf.mxu3 }
 0x172   :  { %v1407_v22 = vadd.f32 %v1406_v18, %v1198_v16  ;;  %v991_v23 = vpop.f32.mrf.mxu0  ;;  %v1200_v25 = vpop.f32.mrf.mxu1 }
 0x173   :  { %v1201_v31 = vadd.f32 %v1200_v25, %v991_v23  ;;  %v4435_v16 = vpop.permute.xlu1 %200 }
 0x174   :  { %v1616_v28 = vadd.f32 %v1615_v21, %v1407_v22 }
 0x175   :  { %2779 = vmatmul.msk.f32.gmra.mxu0 %vm6363_vm15, %v3325_v56  ;;  %2843 = vmatmul.msk.f32.gmra.mxu1 %vm6360_vm13, %v3325_v56  ;;  %vm6367_vm13 = vcmp.eq.s32.totalorder %v3474_v48, %v4383_v29  ;;  %vm6366_vm15 = vcmp.eq.s32.totalorder %v3492_v54, %v4383_v29 }
 0x176   :  { %2629 = vst [vmem:[#allocation6 + $0xe0] sm:$0xff] %v1616_v28  ;;  %2907 = vmatmul.msk.f32.gmra.mxu2 %vm6361_vm14, %v3325_v56  ;;  %2971 = vmatmul.msk.f32.gmra.mxu3 %vm6362_vm12, %v3325_v56  ;;  %vm6365_vm14 = vcmp.eq.s32.totalorder %v3486_v52, %v4383_v29  ;;  %vm6364_vm12 = vcmp.eq.s32.totalorder %v3489_v53, %v4383_v29 }
 0x179   :  { %v1409_v37 = vpop.f32.mrf.mxu2  ;;  %v1618_v40 = vpop.f32.mrf.mxu3 }
 0x17a   :  { %v1410_v45 = vadd.f32 %v1409_v37, %v1201_v31  ;;  %v994_v46 = vpop.f32.mrf.mxu0  ;;  %v1203_v47 = vpop.f32.mrf.mxu1 }
 0x17b   :  { %v1204_v61 = vadd.f32 %v1203_v47, %v994_v46  ;;  %v4461_v37 = vpop.permute.xlu2 %203 }
 0x17c   :  { %v1619_v49 = vadd.f32 %v1618_v40, %v1410_v45 }
 0x17d   :  { %2780 = vmatmul.msk.f32.gmra.mxu0 %vm6367_vm13, %v3325_v56  ;;  %2844 = vmatmul.msk.f32.gmra.mxu1 %vm6365_vm14, %v3325_v56  ;;  %vm6369_vm14 = vcmp.eq.s32.totalorder %v3486_v52, %v4409_v59  ;;  %vm6370_vm13 = vcmp.eq.s32.totalorder %v3492_v54, %v4409_v59 }
 0x17e   :  { %2631 = vst [vmem:[#allocation6 + $0xf0] sm:$0xff] %v1619_v49  ;;  %2908 = vmatmul.msk.f32.gmra.mxu2 %vm6364_vm12, %v3325_v56  ;;  %2972 = vmatmul.msk.f32.gmra.mxu3 %vm6366_vm15, %v3325_v56  ;;  %vm6371_vm12 = vcmp.eq.s32.totalorder %v3474_v48, %v4409_v59  ;;  %vm6368_vm15 = vcmp.eq.s32.totalorder %v3489_v53, %v4409_v59 }
 0x181   :  { %v1412_v62 = vpop.f32.mrf.mxu2  ;;  %v1621_v2 = vpop.f32.mrf.mxu3 }
 0x182   :  { %v1413_v3 = vadd.f32 %v1412_v62, %v1204_v61  ;;  %v997_v5 = vpop.f32.mrf.mxu0  ;;  %v1206_v9 = vpop.f32.mrf.mxu1 }
 0x183   :  { %v1207_v18 = vadd.f32 %v1206_v9, %v997_v5  ;;  %v4487_v61 = vpop.permute.xlu0 %206 }
 0x184   :  { %v1622_v10 = vadd.f32 %v1621_v2, %v1413_v3 }
 0x185   :  { %2781 = vmatmul.msk.f32.gmra.mxu0 %vm6371_vm12, %v3325_v56  ;;  %2845 = vmatmul.msk.f32.gmra.mxu1 %vm6369_vm14, %v3325_v56  ;;  %vm6372_vm14 = vcmp.eq.s32.totalorder %v3486_v52, %v4435_v16  ;;  %vm6374_vm12 = vcmp.eq.s32.totalorder %v3492_v54, %v4435_v16 }
 0x186   :  { %2633 = vst [vmem:[#allocation6 + $0x100] sm:$0xff] %v1622_v10  ;;  %2909 = vmatmul.msk.f32.gmra.mxu2 %vm6368_vm15, %v3325_v56  ;;  %2973 = vmatmul.msk.f32.gmra.mxu3 %vm6370_vm13, %v3325_v56  ;;  %vm6375_vm15 = vcmp.eq.s32.totalorder %v3474_v48, %v4435_v16  ;;  %vm6373_vm13 = vcmp.eq.s32.totalorder %v3489_v53, %v4435_v16 }
 0x189   :  { %v1415_v21 = vpop.f32.mrf.mxu2  ;;  %v1624_v22 = vpop.f32.mrf.mxu3 }
 0x18a   :  { %v1416_v23 = vadd.f32 %v1415_v21, %v1207_v18  ;;  %v1000_v25 = vpop.f32.mrf.mxu0  ;;  %v1209_v28 = vpop.f32.mrf.mxu1  ;;  %v908_v18 = vld [vmem:[#allocation3 + $0x358] sm:$0xff] }
 0x18b   :  { %v1210_v40 = vadd.f32 %v1209_v28, %v1000_v25  ;;  %2402 = vmatpush.msrb.mxu3 %v908_v18  ;;  %v4513_v21 = vpop.permute.xlu1 %209 }
 0x18c   :  { %v1625_v31 = vadd.f32 %v1624_v22, %v1416_v23 }
 0x18d   :  { %2782 = vmatmul.msk.f32.gmra.mxu0 %vm6375_vm15, %v3325_v56  ;;  %2846 = vmatmul.msk.f32.gmra.mxu1 %vm6372_vm14, %v3325_v56  ;;  %vm6379_vm14 = vcmp.eq.s32.totalorder %v3474_v48, %v4461_v37  ;;  %vm6378_vm15 = vcmp.eq.s32.totalorder %v3492_v54, %v4461_v37 }
 0x18e   :  { %2635 = vst [vmem:[#allocation6 + $0x110] sm:$0xff] %v1625_v31  ;;  %2910 = vmatmul.msk.f32.gmra.mxu2 %vm6373_vm13, %v3325_v56  ;;  %2974 = vmatmul.msk.f32.gmra.mxu3 %vm6374_vm12, %v3325_v56  ;;  %vm6376_vm13 = vcmp.eq.s32.totalorder %v3486_v52, %v4461_v37  ;;  %vm6377_vm12 = vcmp.eq.s32.totalorder %v3489_v53, %v4461_v37 }
 0x191   :  { %v1418_v45 = vpop.f32.mrf.mxu2  ;;  %v1627_v46 = vpop.f32.mrf.mxu3 }
 0x192   :  { %v1419_v47 = vadd.f32 %v1418_v45, %v1210_v40  ;;  %v1003_v49 = vpop.f32.mrf.mxu0  ;;  %v1212_v50 = vpop.f32.mrf.mxu1 }
 0x193   :  { %v1213_v62 = vadd.f32 %v1212_v50, %v1003_v49  ;;  %v4539_v49 = vpop.permute.xlu2 %212 }
 0x194   :  { %v1628_v51 = vadd.f32 %v1627_v46, %v1419_v47  ;;  %v812_v46 = vld [vmem:[#allocation3 + $0x58] sm:$0xff] }
 0x195   :  { %2783 = vmatmul.msk.f32.gmra.mxu0 %vm6379_vm14, %v3325_v56  ;;  %2847 = vmatmul.msk.f32.gmra.mxu1 %vm6376_vm13, %v3325_v56  ;;  %vm6383_vm13 = vcmp.eq.s32.totalorder %v3474_v48, %v4487_v61  ;;  %vm6382_vm14 = vcmp.eq.s32.totalorder %v3492_v54, %v4487_v61  ;;  %v844_v47 = vld [vmem:[#allocation3 + $0x158] sm:$0xff] }
 0x196   :  { %2637 = vst [vmem:[#allocation6 + $0x120] sm:$0xff] %v1628_v51  ;;  %2911 = vmatmul.msk.f32.gmra.mxu2 %vm6377_vm12, %v3325_v56  ;;  %2975 = vmatmul.msk.f32.gmra.mxu3 %vm6378_vm15, %v3325_v56  ;;  %vm6381_vm12 = vcmp.eq.s32.totalorder %v3486_v52, %v4487_v61  ;;  %vm6380_vm15 = vcmp.eq.s32.totalorder %v3489_v53, %v4487_v61 }
 0x197   :  { %1775 = vmatpush.msrb.mxu0 %v812_v46  ;;  %1984 = vmatpush.msrb.mxu1 %v844_v47 }
 0x199   :  { %v1421_v2 = vpop.f32.mrf.mxu2  ;;  %v1630_v3 = vpop.f32.mrf.mxu3 }
 0x19a   :  { %v1422_v5 = vadd.f32 %v1421_v2, %v1213_v62  ;;  %v1006_v9 = vpop.f32.mrf.mxu0  ;;  %v1215_v10 = vpop.f32.mrf.mxu1 }
 0x19b   :  { %v1216_v22 = vadd.f32 %v1215_v10, %v1006_v9  ;;  %v4565_v10 = vpop.permute.xlu0 %215 }
 0x19c   :  { %v1631_v13 = vadd.f32 %v1630_v3, %v1422_v5 }
 0x19d   :  { %2784 = vmatmul.msk.f32.gmra.mxu0 %vm6383_vm13, %v3325_v56  ;;  %2848 = vmatmul.msk.f32.gmra.mxu1 %vm6381_vm12, %v3325_v56  ;;  %vm6385_vm12 = vcmp.eq.s32.totalorder %v3486_v52, %v4513_v21  ;;  %vm6386_vm13 = vcmp.eq.s32.totalorder %v3492_v54, %v4513_v21 }
 0x19e   :  { %2639 = vst [vmem:[#allocation6 + $0x130] sm:$0xff] %v1631_v13  ;;  %2912 = vmatmul.msk.f32.gmra.mxu2 %vm6380_vm15, %v3325_v56  ;;  %2976 = vmatmul.msk.f32.gmra.mxu3 %vm6382_vm14, %v3325_v56  ;;  %vm6387_vm15 = vcmp.eq.s32.totalorder %v3474_v48, %v4513_v21  ;;  %vm6384_vm14 = vcmp.eq.s32.totalorder %v3489_v53, %v4513_v21 }
 0x1a1   :  { %v1424_v23 = vpop.f32.mrf.mxu2  ;;  %v1633_v25 = vpop.f32.mrf.mxu3 }
 0x1a2   :  { %v1425_v28 = vadd.f32 %v1424_v23, %v1216_v22  ;;  %v1009_v31 = vpop.f32.mrf.mxu0  ;;  %v1218_v40 = vpop.f32.mrf.mxu1 }
 0x1a3   :  { %v1219_v50 = vadd.f32 %v1218_v40, %v1009_v31  ;;  %v4591_v31 = vpop.permute.xlu1 %218 }
 0x1a4   :  { %v1634_v45 = vadd.f32 %v1633_v25, %v1425_v28 }
 0x1a5   :  { %2785 = vmatmul.msk.f32.gmra.mxu0 %vm6387_vm15, %v3325_v56  ;;  %2849 = vmatmul.msk.f32.gmra.mxu1 %vm6385_vm12, %v3325_v56  ;;  %vm6388_vm12 = vcmp.eq.s32.totalorder %v3486_v52, %v4539_v49  ;;  %vm6390_vm15 = vcmp.eq.s32.totalorder %v3492_v54, %v4539_v49 }
 0x1a6   :  { %2641 = vst [vmem:[#allocation6 + $0x140] sm:$0xff] %v1634_v45  ;;  %2913 = vmatmul.msk.f32.gmra.mxu2 %vm6384_vm14, %v3325_v56  ;;  %2977 = vmatmul.msk.f32.gmra.mxu3 %vm6386_vm13, %v3325_v56  ;;  %vm6391_vm14 = vcmp.eq.s32.totalorder %v3474_v48, %v4539_v49  ;;  %vm6389_vm13 = vcmp.eq.s32.totalorder %v3489_v53, %v4539_v49 }
 0x1a9   :  { %v1427_v51 = vpop.f32.mrf.mxu2  ;;  %v1636_v62 = vpop.f32.mrf.mxu3 }
 0x1aa   :  { %v1428_v2 = vadd.f32 %v1427_v51, %v1219_v50  ;;  %v1012_v3 = vpop.f32.mrf.mxu0  ;;  %v1221_v5 = vpop.f32.mrf.mxu1 }
 0x1ab   :  { %v1222_v13 = vadd.f32 %v1221_v5, %v1012_v3  ;;  %v906_v3 = vld [vmem:[#allocation3 + $0x348] sm:$0xff]  ;;  %v4617_v5 = vpop.permute.xlu2 %221 }
 0x1ac   :  { %v1637_v9 = vadd.f32 %v1636_v62, %v1428_v2  ;;  %v874_v2 = vld [vmem:[#allocation3 + $0x248] sm:$0xff]  ;;  %2403 = vmatpush.msrb.mxu3 %v906_v3 }
 0x1ad   :  { %2786 = vmatmul.msk.f32.gmra.mxu0 %vm6391_vm14, %v3325_v56  ;;  %2850 = vmatmul.msk.f32.gmra.mxu1 %vm6388_vm12, %v3325_v56  ;;  %vm6395_vm12 = vcmp.eq.s32.totalorder %v3474_v48, %v4565_v10  ;;  %vm6394_vm14 = vcmp.eq.s32.totalorder %v3492_v54, %v4565_v10 }
 0x1ae   :  { %2643 = vst [vmem:[#allocation6 + $0x150] sm:$0xff] %v1637_v9  ;;  %2914 = vmatmul.msk.f32.gmra.mxu2 %vm6389_vm13, %v3325_v56  ;;  %2978 = vmatmul.msk.f32.gmra.mxu3 %vm6390_vm15, %v3325_v56  ;;  %vm6392_vm13 = vcmp.eq.s32.totalorder %v3486_v52, %v4565_v10  ;;  %vm6393_vm15 = vcmp.eq.s32.totalorder %v3489_v53, %v4565_v10 }
 0x1af   :  { %2194 = vmatpush.msrb.mxu2 %v874_v2 }
 0x1b1   :  { %v1430_v14 = vpop.f32.mrf.mxu2  ;;  %v1639_v18 = vpop.f32.mrf.mxu3 }
 0x1b2   :  { %v1431_v22 = vadd.f32 %v1430_v14, %v1222_v13  ;;  %v1015_v23 = vpop.f32.mrf.mxu0  ;;  %v1224_v25 = vpop.f32.mrf.mxu1 }
 0x1b3   :  { %v1225_v40 = vadd.f32 %v1224_v25, %v1015_v23 }
 0x1b4   :  { %v1640_v28 = vadd.f32 %v1639_v18, %v1431_v22 }
 0x1b5   :  { %2787 = vmatmul.msk.f32.gmra.mxu0 %vm6395_vm12, %v3325_v56  ;;  %2851 = vmatmul.msk.f32.gmra.mxu1 %vm6392_vm13, %v3325_v56  ;;  %vm6399_vm13 = vcmp.eq.s32.totalorder %v3474_v48, %v4591_v31  ;;  %vm6398_vm12 = vcmp.eq.s32.totalorder %v3492_v54, %v4591_v31 }
 0x1b6   :  { %2645 = vst [vmem:[#allocation6 + $0x160] sm:$0xff] %v1640_v28  ;;  %2915 = vmatmul.msk.f32.gmra.mxu2 %vm6393_vm15, %v3325_v56  ;;  %2979 = vmatmul.msk.f32.gmra.mxu3 %vm6394_vm14, %v3325_v56  ;;  %vm6397_vm15 = vcmp.eq.s32.totalorder %v3486_v52, %v4591_v31  ;;  %vm6396_vm14 = vcmp.eq.s32.totalorder %v3489_v53, %v4591_v31  ;;  %v810_v28 = vld [vmem:[#allocation3 + $0x48] sm:$0xff] }
 0x1b7   :  { %1776 = vmatpush.msrb.mxu0 %v810_v28 }
 0x1b9   :  { %v1433_v45 = vpop.f32.mrf.mxu2  ;;  %v1642_v46 = vpop.f32.mrf.mxu3 }
 0x1ba   :  { %v1434_v47 = vadd.f32 %v1433_v45, %v1225_v40  ;;  %v1018_v50 = vpop.f32.mrf.mxu0  ;;  %v1227_v51 = vpop.f32.mrf.mxu1  ;;  %v842_v40 = vld [vmem:[#allocation3 + $0x148] sm:$0xff] }
 0x1bb   :  { %v1228_v9 = vadd.f32 %v1227_v51, %v1018_v50  ;;  %1985 = vmatpush.msrb.mxu1 %v842_v40  ;;  %v4643_v45 = vpop.permute.xlu0 %224  ;;  %v4695_v40 = vpop.permute.xlu2 %230 }
 0x1bc   :  { %v1643_v62 = vadd.f32 %v1642_v46, %v1434_v47 }
 0x1bd   :  { %2788 = vmatmul.msk.f32.gmra.mxu0 %vm6399_vm13, %v3325_v56  ;;  %2852 = vmatmul.msk.f32.gmra.mxu1 %vm6397_vm15, %v3325_v56  ;;  %vm6401_vm15 = vcmp.eq.s32.totalorder %v3486_v52, %v4617_v5  ;;  %vm6402_vm13 = vcmp.eq.s32.totalorder %v3492_v54, %v4617_v5 }
 0x1be   :  { %2647 = vst [vmem:[#allocation6 + $0x170] sm:$0xff] %v1643_v62  ;;  %2916 = vmatmul.msk.f32.gmra.mxu2 %vm6396_vm14, %v3325_v56  ;;  %2980 = vmatmul.msk.f32.gmra.mxu3 %vm6398_vm12, %v3325_v56  ;;  %vm6403_vm14 = vcmp.eq.s32.totalorder %v3474_v48, %v4617_v5  ;;  %vm6400_vm12 = vcmp.eq.s32.totalorder %v3489_v53, %v4617_v5 }
 0x1c1   :  { %v1436_v13 = vpop.f32.mrf.mxu2  ;;  %v1645_v14 = vpop.f32.mrf.mxu3 }
 0x1c2   :  { %v1437_v18 = vadd.f32 %v1436_v13, %v1228_v9  ;;  %v1021_v22 = vpop.f32.mrf.mxu0  ;;  %v1230_v23 = vpop.f32.mrf.mxu1 }
 0x1c3   :  { %v1231_v46 = vadd.f32 %v1230_v23, %v1021_v22  ;;  %v4669_v9 = vpop.permute.xlu1 %227 }
 0x1c4   :  { %v1646_v25 = vadd.f32 %v1645_v14, %v1437_v18 }
 0x1c5   :  { %2789 = vmatmul.msk.f32.gmra.mxu0 %vm6403_vm14, %v3325_v56  ;;  %2853 = vmatmul.msk.f32.gmra.mxu1 %vm6401_vm15, %v3325_v56  ;;  %vm6404_vm15 = vcmp.eq.s32.totalorder %v3486_v52, %v4643_v45  ;;  %vm6406_vm14 = vcmp.eq.s32.totalorder %v3492_v54, %v4643_v45 }
 0x1c6   :  { %2649 = vst [vmem:[#allocation6 + $0x180] sm:$0xff] %v1646_v25  ;;  %2917 = vmatmul.msk.f32.gmra.mxu2 %vm6400_vm12, %v3325_v56  ;;  %2981 = vmatmul.msk.f32.gmra.mxu3 %vm6402_vm13, %v3325_v56  ;;  %vm6407_vm12 = vcmp.eq.s32.totalorder %v3474_v48, %v4643_v45  ;;  %vm6405_vm13 = vcmp.eq.s32.totalorder %v3489_v53, %v4643_v45 }
 0x1c9   :  { %v1439_v47 = vpop.f32.mrf.mxu2  ;;  %v1648_v50 = vpop.f32.mrf.mxu3 }
 0x1ca   :  { %v1440_v51 = vadd.f32 %v1439_v47, %v1231_v46  ;;  %v1024_v62 = vpop.f32.mrf.mxu0  ;;  %v1233_v2 = vpop.f32.mrf.mxu1 }
 0x1cb   :  { %v1234_v13 = vadd.f32 %v1233_v2, %v1024_v62 }
 0x1cc   :  { %v1649_v3 = vadd.f32 %v1648_v50, %v1440_v51 }
 0x1cd   :  { %2790 = vmatmul.msk.f32.gmra.mxu0 %vm6407_vm12, %v3325_v56  ;;  %2854 = vmatmul.msk.f32.gmra.mxu1 %vm6404_vm15, %v3325_v56  ;;  %vm6411_vm15 = vcmp.eq.s32.totalorder %v3474_v48, %v4669_v9  ;;  %vm6410_vm12 = vcmp.eq.s32.totalorder %v3492_v54, %v4669_v9 }
 0x1ce   :  { %2651 = vst [vmem:[#allocation6 + $0x190] sm:$0xff] %v1649_v3  ;;  %2918 = vmatmul.msk.f32.gmra.mxu2 %vm6405_vm13, %v3325_v56  ;;  %2982 = vmatmul.msk.f32.gmra.mxu3 %vm6406_vm14, %v3325_v56  ;;  %vm6408_vm13 = vcmp.eq.s32.totalorder %v3486_v52, %v4669_v9  ;;  %vm6409_vm14 = vcmp.eq.s32.totalorder %v3489_v53, %v4669_v9 }
 0x1d1   :  { %v1442_v14 = vpop.f32.mrf.mxu2  ;;  %v1651_v18 = vpop.f32.mrf.mxu3 }
 0x1d2   :  { %v1443_v22 = vadd.f32 %v1442_v14, %v1234_v13  ;;  %v1027_v23 = vpop.f32.mrf.mxu0  ;;  %v1236_v25 = vpop.f32.mrf.mxu1  ;;  %v872_v13 = vld [vmem:[#allocation3 + $0x238] sm:$0xff] }
 0x1d3   :  { %v1237_v46 = vadd.f32 %v1236_v25, %v1027_v23  ;;  %v904_v14 = vld [vmem:[#allocation3 + $0x338] sm:$0xff]  ;;  %2195 = vmatpush.msrb.mxu2 %v872_v13 }
 0x1d4   :  { %v1652_v28 = vadd.f32 %v1651_v18, %v1443_v22  ;;  %2404 = vmatpush.msrb.mxu3 %v904_v14  ;;  %v4721_v18 = vpop.permute.xlu0 %233 }
 0x1d5   :  { %2791 = vmatmul.msk.f32.gmra.mxu0 %vm6411_vm15, %v3325_v56  ;;  %2855 = vmatmul.msk.f32.gmra.mxu1 %vm6408_vm13, %v3325_v56  ;;  %vm6415_vm13 = vcmp.eq.s32.totalorder %v3474_v48, %v4695_v40  ;;  %vm6414_vm15 = vcmp.eq.s32.totalorder %v3492_v54, %v4695_v40 }
 0x1d6   :  { %2653 = vst [vmem:[#allocation6 + $0x1a0] sm:$0xff] %v1652_v28  ;;  %2919 = vmatmul.msk.f32.gmra.mxu2 %vm6409_vm14, %v3325_v56  ;;  %2983 = vmatmul.msk.f32.gmra.mxu3 %vm6410_vm12, %v3325_v56  ;;  %vm6413_vm14 = vcmp.eq.s32.totalorder %v3486_v52, %v4695_v40  ;;  %vm6412_vm12 = vcmp.eq.s32.totalorder %v3489_v53, %v4695_v40 }
 0x1d9   :  { %v1445_v47 = vpop.f32.mrf.mxu2  ;;  %v1654_v50 = vpop.f32.mrf.mxu3 }
 0x1da   :  { %v1446_v51 = vadd.f32 %v1445_v47, %v1237_v46  ;;  %v1030_v62 = vpop.f32.mrf.mxu0  ;;  %v1239_v2 = vpop.f32.mrf.mxu1 }
 0x1db   :  { %v1240_v22 = vadd.f32 %v1239_v2, %v1030_v62  ;;  %v840_v62 = vld [vmem:[#allocation3 + $0x138] sm:$0xff]  ;;  %v4747_v2 = vpop.permute.xlu1 %236 }
 0x1dc   :  { %v1655_v3 = vadd.f32 %v1654_v50, %v1446_v51  ;;  %v808_v51 = vld [vmem:[#allocation3 + $0x38] sm:$0xff]  ;;  %1986 = vmatpush.msrb.mxu1 %v840_v62  ;;  %6518 = vst [vmem:[#allocation9_spill] sm:$0xff] %v4747_v2 }
 0x1dd   :  { %2792 = vmatmul.msk.f32.gmra.mxu0 %vm6415_vm13, %v3325_v56  ;;  %2856 = vmatmul.msk.f32.gmra.mxu1 %vm6413_vm14, %v3325_v56  ;;  %vm6417_vm14 = vcmp.eq.s32.totalorder %v3486_v52, %v4721_v18  ;;  %vm6418_vm13 = vcmp.eq.s32.totalorder %v3492_v54, %v4721_v18 }
 0x1de   :  { %2655 = vst [vmem:[#allocation6 + $0x1b0] sm:$0xff] %v1655_v3  ;;  %2920 = vmatmul.msk.f32.gmra.mxu2 %vm6412_vm12, %v3325_v56  ;;  %2984 = vmatmul.msk.f32.gmra.mxu3 %vm6414_vm15, %v3325_v56  ;;  %vm6419_vm12 = vcmp.eq.s32.totalorder %v3474_v48, %v4721_v18  ;;  %vm6416_vm15 = vcmp.eq.s32.totalorder %v3489_v53, %v4721_v18 }
 0x1df   :  { %1777 = vmatpush.msrb.mxu0 %v808_v51 }
 0x1e1   :  { %v1448_v23 = vpop.f32.mrf.mxu2  ;;  %v1657_v25 = vpop.f32.mrf.mxu3 }
 0x1e2   :  { %v1449_v28 = vadd.f32 %v1448_v23, %v1240_v22  ;;  %v1033_v46 = vpop.f32.mrf.mxu0  ;;  %v1242_v47 = vpop.f32.mrf.mxu1 }
 0x1e3   :  { %v1243_v3 = vadd.f32 %v1242_v47, %v1033_v46  ;;  %v4773_v46 = vpop.permute.xlu2 %239 }
 0x1e4   :  { %v1658_v50 = vadd.f32 %v1657_v25, %v1449_v28  ;;  %6519 = vst [vmem:[#allocation10_spill] sm:$0xff] %v4773_v46 }
 0x1e5   :  { %2793 = vmatmul.msk.f32.gmra.mxu0 %vm6419_vm12, %v3325_v56  ;;  %2857 = vmatmul.msk.f32.gmra.mxu1 %vm6417_vm14, %v3325_v56  ;;  %vm6420_vm14 = vcmp.eq.s32.totalorder %v3486_v52, %v4747_v2  ;;  %vm6422_vm12 = vcmp.eq.s32.totalorder %v3492_v54, %v4747_v2 }
 0x1e6   :  { %2657 = vst [vmem:[#allocation6 + $0x1c0] sm:$0xff] %v1658_v50  ;;  %2921 = vmatmul.msk.f32.gmra.mxu2 %vm6416_vm15, %v3325_v56  ;;  %2985 = vmatmul.msk.f32.gmra.mxu3 %vm6418_vm13, %v3325_v56  ;;  %vm6423_vm15 = vcmp.eq.s32.totalorder %v3474_v48, %v4747_v2  ;;  %vm6421_vm13 = vcmp.eq.s32.totalorder %v3489_v53, %v4747_v2 }
 0x1e9   :  { %v1451_v13 = vpop.f32.mrf.mxu2  ;;  %v1660_v14 = vpop.f32.mrf.mxu3 }
 0x1ea   :  { %v1452_v22 = vadd.f32 %v1451_v13, %v1243_v3  ;;  %v1036_v23 = vpop.f32.mrf.mxu0  ;;  %v1245_v25 = vpop.f32.mrf.mxu1 }
 0x1eb   :  { %v1246_v47 = vadd.f32 %v1245_v25, %v1036_v23 }
 0x1ec   :  { %v1661_v28 = vadd.f32 %v1660_v14, %v1452_v22  ;;  %v4799_v22 = vpop.permute.xlu0 %242 }
 0x1ed   :  { %2794 = vmatmul.msk.f32.gmra.mxu0 %vm6423_vm15, %v3325_v56  ;;  %2858 = vmatmul.msk.f32.gmra.mxu1 %vm6420_vm14, %v3325_v56  ;;  %vm6427_vm14 = vcmp.eq.s32.totalorder %v3474_v48, %v4773_v46  ;;  %vm6426_vm15 = vcmp.eq.s32.totalorder %v3492_v54, %v4773_v46  ;;  %6520 = vst [vmem:[#allocation11_spill] sm:$0xff] %v4799_v22 }
 0x1ee   :  { %2659 = vst [vmem:[#allocation6 + $0x1d0] sm:$0xff] %v1661_v28  ;;  %2922 = vmatmul.msk.f32.gmra.mxu2 %vm6421_vm13, %v3325_v56  ;;  %2986 = vmatmul.msk.f32.gmra.mxu3 %vm6422_vm12, %v3325_v56  ;;  %vm6424_vm13 = vcmp.eq.s32.totalorder %v3486_v52, %v4773_v46  ;;  %vm6425_vm12 = vcmp.eq.s32.totalorder %v3489_v53, %v4773_v46 }
 0x1f1   :  { %v1454_v50 = vpop.f32.mrf.mxu2  ;;  %v1663_v51 = vpop.f32.mrf.mxu3 }
 0x1f2   :  { %v1455_v62 = vadd.f32 %v1454_v50, %v1246_v47  ;;  %v1039_v3 = vpop.f32.mrf.mxu0  ;;  %v1248_v13 = vpop.f32.mrf.mxu1 }
 0x1f3   :  { %v1249_v23 = vadd.f32 %v1248_v13, %v1039_v3  ;;  %v870_v3 = vld [vmem:[#allocation3 + $0x228] sm:$0xff] }
 0x1f4   :  { %v1664_v14 = vadd.f32 %v1663_v51, %v1455_v62  ;;  %v902_v13 = vld [vmem:[#allocation3 + $0x328] sm:$0xff]  ;;  %2196 = vmatpush.msrb.mxu2 %v870_v3  ;;  %v4851_v3 = vpop.permute.xlu2 %248 }
 0x1f5   :  { %2795 = vmatmul.msk.f32.gmra.mxu0 %vm6427_vm14, %v3325_v56  ;;  %2859 = vmatmul.msk.f32.gmra.mxu1 %vm6424_vm13, %v3325_v56  ;;  %vm6435_vm13 = vcmp.eq.s32.totalorder %v3474_v48, %v4799_v22  ;;  %vm6434_vm14 = vcmp.eq.s32.totalorder %v3492_v54, %v4799_v22  ;;  %6522 = vst [vmem:[#allocation13_spill] sm:$0xff] %v4851_v3 }
 0x1f6   :  { %2661 = vst [vmem:[#allocation6 + $0x1e0] sm:$0xff] %v1664_v14  ;;  %2923 = vmatmul.msk.f32.gmra.mxu2 %vm6425_vm12, %v3325_v56  ;;  %2987 = vmatmul.msk.f32.gmra.mxu3 %vm6426_vm15, %v3325_v56  ;;  %vm6433_vm12 = vcmp.eq.s32.totalorder %v3486_v52, %v4799_v22  ;;  %vm6432_vm15 = vcmp.eq.s32.totalorder %v3489_v53, %v4799_v22  ;;  %v4825_v14 = vpop.permute.xlu1 %245 }
 0x1f7   :  { %2405 = vmatpush.msrb.mxu3 %v902_v13  ;;  %6521 = vst [vmem:[#allocation12_spill] sm:$0xff] %v4825_v14 }
 0x1f9   :  { %v1457_v25 = vpop.f32.mrf.mxu2  ;;  %v1666_v28 = vpop.f32.mrf.mxu3 }
 0x1fa   :  { %v1458_v47 = vadd.f32 %v1457_v25, %v1249_v23  ;;  %v1042_v50 = vpop.f32.mrf.mxu0  ;;  %v1251_v51 = vpop.f32.mrf.mxu1 }
 0x1fb   :  { %v1252_v23 = vadd.f32 %v1251_v51, %v1042_v50  ;;  %v806_v50 = vld [vmem:[#allocation3 + $0x28] sm:$0xff] }
 0x1fc   :  { %v1667_v62 = vadd.f32 %v1666_v28, %v1458_v47  ;;  %v838_v51 = vld [vmem:[#allocation3 + $0x128] sm:$0xff]  ;;  %1778 = vmatpush.msrb.mxu0 %v806_v50 }
 0x1fd   :  { %2796 = vmatmul.msk.f32.gmra.mxu0 %vm6435_vm13, %v3325_v56  ;;  %2860 = vmatmul.msk.f32.gmra.mxu1 %vm6433_vm12, %v3325_v56  ;;  %vm6439_vm12 = vcmp.eq.s32.totalorder %v3486_v52, %v4825_v14  ;;  %vm6440_vm13 = vcmp.eq.s32.totalorder %v3492_v54, %v4825_v14 }
 0x1fe   :  { %2663 = vst [vmem:[#allocation6 + $0x1f0] sm:$0xff] %v1667_v62  ;;  %2924 = vmatmul.msk.f32.gmra.mxu2 %vm6432_vm15, %v3325_v56  ;;  %2988 = vmatmul.msk.f32.gmra.mxu3 %vm6434_vm14, %v3325_v56  ;;  %vm6441_vm15 = vcmp.eq.s32.totalorder %v3474_v48, %v4825_v14  ;;  %vm6438_vm14 = vcmp.eq.s32.totalorder %v3489_v53, %v4825_v14 }
 0x1ff   :  { %1987 = vmatpush.msrb.mxu1 %v838_v51 }
 0x201   :  { %v1460_v25 = vpop.f32.mrf.mxu2  ;;  %v1669_v28 = vpop.f32.mrf.mxu3 }
 0x202   :  { %v1461_v47 = vadd.f32 %v1460_v25, %v1252_v23  ;;  %v1045_v62 = vpop.f32.mrf.mxu0  ;;  %v1254_v46 = vpop.f32.mrf.mxu1 }
 0x203   :  { %v1255_v13 = vadd.f32 %v1254_v46, %v1045_v62  ;;  %v4877_v46 = vpop.permute.xlu0 %251 }
 0x204   :  { %v1670_v2 = vadd.f32 %v1669_v28, %v1461_v47  ;;  %6523 = vst [vmem:[#allocation14_spill] sm:$0xff] %v4877_v46 }
 0x205   :  { %2797 = vmatmul.msk.f32.gmra.mxu0 %vm6441_vm15, %v3325_v56  ;;  %2861 = vmatmul.msk.f32.gmra.mxu1 %vm6439_vm12, %v3325_v56  ;;  %vm6442_vm12 = vcmp.eq.s32.totalorder %v3486_v52, %v4851_v3  ;;  %vm6444_vm15 = vcmp.eq.s32.totalorder %v3492_v54, %v4851_v3 }
 0x206   :  { %2665 = vst [vmem:[#allocation6 + $0x200] sm:$0xff] %v1670_v2  ;;  %2925 = vmatmul.msk.f32.gmra.mxu2 %vm6438_vm14, %v3325_v56  ;;  %2989 = vmatmul.msk.f32.gmra.mxu3 %vm6440_vm13, %v3325_v56  ;;  %vm6445_vm14 = vcmp.eq.s32.totalorder %v3474_v48, %v4851_v3  ;;  %vm6443_vm13 = vcmp.eq.s32.totalorder %v3489_v53, %v4851_v3 }
 0x209   :  { %v1463_v23 = vpop.f32.mrf.mxu2  ;;  %v1672_v25 = vpop.f32.mrf.mxu3 }
 0x20a   :  { %v1464_v2 = vadd.f32 %v1463_v23, %v1255_v13  ;;  %v1048_v28 = vpop.f32.mrf.mxu0  ;;  %v1257_v47 = vpop.f32.mrf.mxu1 }
 0x20b   :  { %v1258_v62 = vadd.f32 %v1257_v47, %v1048_v28 }
 0x20c   :  { %v1673_v22 = vadd.f32 %v1672_v25, %v1464_v2 }
 0x20d   :  { %2798 = vmatmul.msk.f32.gmra.mxu0 %vm6445_vm14, %v3325_v56  ;;  %2862 = vmatmul.msk.f32.gmra.mxu1 %vm6442_vm12, %v3325_v56  ;;  %vm6451_vm12 = vcmp.eq.s32.totalorder %v3474_v48, %v4877_v46  ;;  %vm6450_vm14 = vcmp.eq.s32.totalorder %v3492_v54, %v4877_v46 }
 0x20e   :  { %2667 = vst [vmem:[#allocation6 + $0x210] sm:$0xff] %v1673_v22  ;;  %2926 = vmatmul.msk.f32.gmra.mxu2 %vm6443_vm13, %v3325_v56  ;;  %2990 = vmatmul.msk.f32.gmra.mxu3 %vm6444_vm15, %v3325_v56  ;;  %vm6448_vm13 = vcmp.eq.s32.totalorder %v3486_v52, %v4877_v46  ;;  %vm6449_vm15 = vcmp.eq.s32.totalorder %v3489_v53, %v4877_v46  ;;  %v4903_v22 = vpop.permute.xlu1 %254 }
 0x20f   :  { %6524 = vst [vmem:[#allocation15_spill] sm:$0xff] %v4903_v22 }
 0x211   :  { %v1466_v50 = vpop.f32.mrf.mxu2  ;;  %v1675_v51 = vpop.f32.mrf.mxu3 }
 0x212   :  { %v1467_v13 = vadd.f32 %v1466_v50, %v1258_v62  ;;  %v1051_v23 = vpop.f32.mrf.mxu0  ;;  %v1260_v25 = vpop.f32.mrf.mxu1 }
 0x213   :  { %v1261_v28 = vadd.f32 %v1260_v25, %v1051_v23  ;;  %v868_v23 = vld [vmem:[#allocation3 + $0x218] sm:$0xff] }
 0x214   :  { %v1676_v2 = vadd.f32 %v1675_v51, %v1467_v13  ;;  %v900_v25 = vld [vmem:[#allocation3 + $0x318] sm:$0xff]  ;;  %2197 = vmatpush.msrb.mxu2 %v868_v23  ;;  %v4955_v23 = vpop.permute.xlu0 %260 }
 0x215   :  { %2799 = vmatmul.msk.f32.gmra.mxu0 %vm6451_vm12, %v3325_v56  ;;  %2863 = vmatmul.msk.f32.gmra.mxu1 %vm6448_vm13, %v3325_v56  ;;  %vm6459_vm13 = vcmp.eq.s32.totalorder %v3474_v48, %v4903_v22  ;;  %vm6458_vm12 = vcmp.eq.s32.totalorder %v3492_v54, %v4903_v22  ;;  %6526 = vst [vmem:[#allocation17_spill] sm:$0xff] %v4955_v23 }
 0x216   :  { %2669 = vst [vmem:[#allocation6 + $0x220] sm:$0xff] %v1676_v2  ;;  %2927 = vmatmul.msk.f32.gmra.mxu2 %vm6449_vm15, %v3325_v56  ;;  %2991 = vmatmul.msk.f32.gmra.mxu3 %vm6450_vm14, %v3325_v56  ;;  %vm6457_vm15 = vcmp.eq.s32.totalorder %v3486_v52, %v4903_v22  ;;  %vm6456_vm14 = vcmp.eq.s32.totalorder %v3489_v53, %v4903_v22  ;;  %v4929_v2 = vpop.permute.xlu2 %257 }
 0x217   :  { %2406 = vmatpush.msrb.mxu3 %v900_v25  ;;  %6525 = vst [vmem:[#allocation16_spill] sm:$0xff] %v4929_v2 }
 0x219   :  { %v1469_v47 = vpop.f32.mrf.mxu2  ;;  %v1678_v62 = vpop.f32.mrf.mxu3 }
 0x21a   :  { %v1470_v50 = vadd.f32 %v1469_v47, %v1261_v28  ;;  %v1054_v51 = vpop.f32.mrf.mxu0  ;;  %v1263_v13 = vpop.f32.mrf.mxu1 }
 0x21b   :  { %v1264_v28 = vadd.f32 %v1263_v13, %v1054_v51  ;;  %v804_v51 = vld [vmem:[#allocation3 + $0x18] sm:$0xff] }
 0x21c   :  { %v1679_v3 = vadd.f32 %v1678_v62, %v1470_v50  ;;  %v836_v13 = vld [vmem:[#allocation3 + $0x118] sm:$0xff]  ;;  %1779 = vmatpush.msrb.mxu0 %v804_v51 }
 0x21d   :  { %2800 = vmatmul.msk.f32.gmra.mxu0 %vm6459_vm13, %v3325_v56  ;;  %2864 = vmatmul.msk.f32.gmra.mxu1 %vm6457_vm15, %v3325_v56  ;;  %vm6463_vm15 = vcmp.eq.s32.totalorder %v3486_v52, %v4929_v2  ;;  %vm6464_vm13 = vcmp.eq.s32.totalorder %v3492_v54, %v4929_v2 }
 0x21e   :  { %2671 = vst [vmem:[#allocation6 + $0x230] sm:$0xff] %v1679_v3  ;;  %2928 = vmatmul.msk.f32.gmra.mxu2 %vm6456_vm14, %v3325_v56  ;;  %2992 = vmatmul.msk.f32.gmra.mxu3 %vm6458_vm12, %v3325_v56  ;;  %vm6465_vm14 = vcmp.eq.s32.totalorder %v3474_v48, %v4929_v2  ;;  %vm6462_vm12 = vcmp.eq.s32.totalorder %v3489_v53, %v4929_v2 }
 0x21f   :  { %1988 = vmatpush.msrb.mxu1 %v836_v13 }
 0x221   :  { %v1472_v47 = vpop.f32.mrf.mxu2  ;;  %v1681_v62 = vpop.f32.mrf.mxu3 }
 0x222   :  { %v1473_v3 = vadd.f32 %v1472_v47, %v1264_v28  ;;  %v1057_v50 = vpop.f32.mrf.mxu0  ;;  %v1266_v46 = vpop.f32.mrf.mxu1 }
 0x223   :  { %v1267_v25 = vadd.f32 %v1266_v46, %v1057_v50  ;;  %v4981_v46 = vpop.permute.xlu1 %263 }
 0x224   :  { %v1682_v14 = vadd.f32 %v1681_v62, %v1473_v3  ;;  %6527 = vst [vmem:[#allocation18_spill] sm:$0xff] %v4981_v46 }
 0x225   :  { %2801 = vmatmul.msk.f32.gmra.mxu0 %vm6465_vm14, %v3325_v56  ;;  %2865 = vmatmul.msk.f32.gmra.mxu1 %vm6463_vm15, %v3325_v56  ;;  %vm6466_vm15 = vcmp.eq.s32.totalorder %v3486_v52, %v4955_v23  ;;  %vm6468_vm14 = vcmp.eq.s32.totalorder %v3492_v54, %v4955_v23 }
 0x226   :  { %2673 = vst [vmem:[#allocation6 + $0x240] sm:$0xff] %v1682_v14  ;;  %2929 = vmatmul.msk.f32.gmra.mxu2 %vm6462_vm12, %v3325_v56  ;;  %2993 = vmatmul.msk.f32.gmra.mxu3 %vm6464_vm13, %v3325_v56  ;;  %vm6469_vm12 = vcmp.eq.s32.totalorder %v3474_v48, %v4955_v23  ;;  %vm6467_vm13 = vcmp.eq.s32.totalorder %v3489_v53, %v4955_v23 }
 0x229   :  { %v1475_v28 = vpop.f32.mrf.mxu2  ;;  %v1684_v47 = vpop.f32.mrf.mxu3 }
 0x22a   :  { %v1476_v14 = vadd.f32 %v1475_v28, %v1267_v25  ;;  %v1060_v62 = vpop.f32.mrf.mxu0  ;;  %v1269_v3 = vpop.f32.mrf.mxu1 }
 0x22b   :  { %v1270_v50 = vadd.f32 %v1269_v3, %v1060_v62 }
 0x22c   :  { %v1685_v22 = vadd.f32 %v1684_v47, %v1476_v14 }
 0x22d   :  { %2802 = vmatmul.msk.f32.gmra.mxu0 %vm6469_vm12, %v3325_v56  ;;  %2866 = vmatmul.msk.f32.gmra.mxu1 %vm6466_vm15, %v3325_v56  ;;  %vm6475_vm15 = vcmp.eq.s32.totalorder %v3474_v48, %v4981_v46  ;;  %vm6474_vm12 = vcmp.eq.s32.totalorder %v3492_v54, %v4981_v46 }
 0x22e   :  { %2675 = vst [vmem:[#allocation6 + $0x250] sm:$0xff] %v1685_v22  ;;  %2930 = vmatmul.msk.f32.gmra.mxu2 %vm6467_vm13, %v3325_v56  ;;  %2994 = vmatmul.msk.f32.gmra.mxu3 %vm6468_vm14, %v3325_v56  ;;  %vm6472_vm13 = vcmp.eq.s32.totalorder %v3486_v52, %v4981_v46  ;;  %vm6473_vm14 = vcmp.eq.s32.totalorder %v3489_v53, %v4981_v46  ;;  %v5007_v22 = vpop.permute.xlu2 %266 }
 0x22f   :  { %6528 = vst [vmem:[#allocation19_spill] sm:$0xff] %v5007_v22 }
 0x231   :  { %v1478_v51 = vpop.f32.mrf.mxu2  ;;  %v1687_v13 = vpop.f32.mrf.mxu3 }
 0x232   :  { %v1479_v25 = vadd.f32 %v1478_v51, %v1270_v50  ;;  %v1063_v28 = vpop.f32.mrf.mxu0  ;;  %v1272_v47 = vpop.f32.mrf.mxu1 }
 0x233   :  { %v1273_v62 = vadd.f32 %v1272_v47, %v1063_v28  ;;  %v866_v28 = vld [vmem:[#allocation3 + $0x208] sm:$0xff] }
 0x234   :  { %v1688_v14 = vadd.f32 %v1687_v13, %v1479_v25  ;;  %v898_v47 = vld [vmem:[#allocation3 + $0x308] sm:$0xff]  ;;  %2198 = vmatpush.msrb.mxu2 %v866_v28  ;;  %v5059_v28 = vpop.permute.xlu1 %272 }
 0x235   :  { %2803 = vmatmul.msk.f32.gmra.mxu0 %vm6475_vm15, %v3325_v56  ;;  %2867 = vmatmul.msk.f32.gmra.mxu1 %vm6472_vm13, %v3325_v56  ;;  %vm6483_vm13 = vcmp.eq.s32.totalorder %v3474_v48, %v5007_v22  ;;  %vm6482_vm15 = vcmp.eq.s32.totalorder %v3492_v54, %v5007_v22  ;;  %6529 = vst [vmem:[#allocation20_spill] sm:$0xff] %v5059_v28 }
 0x236   :  { %2677 = vst [vmem:[#allocation6 + $0x260] sm:$0xff] %v1688_v14  ;;  %2931 = vmatmul.msk.f32.gmra.mxu2 %vm6473_vm14, %v3325_v56  ;;  %2995 = vmatmul.msk.f32.gmra.mxu3 %vm6474_vm12, %v3325_v56  ;;  %vm6481_vm14 = vcmp.eq.s32.totalorder %v3486_v52, %v5007_v22  ;;  %vm6480_vm12 = vcmp.eq.s32.totalorder %v3489_v53, %v5007_v22  ;;  %v5033_v14 = vpop.permute.xlu0 %269 }
 0x237   :  { %2407 = vmatpush.msrb.mxu3 %v898_v47 }
 0x239   :  { %v1481_v3 = vpop.f32.mrf.mxu2  ;;  %v1690_v50 = vpop.f32.mrf.mxu3 }
 0x23a   :  { %v1482_v51 = vadd.f32 %v1481_v3, %v1273_v62  ;;  %v1066_v13 = vpop.f32.mrf.mxu0  ;;  %v1275_v25 = vpop.f32.mrf.mxu1 }
 0x23b   :  { %v1276_v62 = vadd.f32 %v1275_v25, %v1066_v13  ;;  %v802_v13 = vld [vmem:[#allocation3 + $0x8] sm:$0xff] }
 0x23c   :  { %v1691_v23 = vadd.f32 %v1690_v50, %v1482_v51  ;;  %v834_v25 = vld [vmem:[#allocation3 + $0x108] sm:$0xff]  ;;  %1780 = vmatpush.msrb.mxu0 %v802_v13 }
 0x23d   :  { %2804 = vmatmul.msk.f32.gmra.mxu0 %vm6483_vm13, %v3325_v56  ;;  %2868 = vmatmul.msk.f32.gmra.mxu1 %vm6481_vm14, %v3325_v56  ;;  %vm6487_vm14 = vcmp.eq.s32.totalorder %v3486_v52, %v5033_v14  ;;  %vm6488_vm13 = vcmp.eq.s32.totalorder %v3492_v54, %v5033_v14 }
 0x23e   :  { %2679 = vst [vmem:[#allocation6 + $0x270] sm:$0xff] %v1691_v23  ;;  %2932 = vmatmul.msk.f32.gmra.mxu2 %vm6480_vm12, %v3325_v56  ;;  %2996 = vmatmul.msk.f32.gmra.mxu3 %vm6482_vm15, %v3325_v56  ;;  %vm6489_vm12 = vcmp.eq.s32.totalorder %v3474_v48, %v5033_v14  ;;  %vm6486_vm15 = vcmp.eq.s32.totalorder %v3489_v53, %v5033_v14 }
 0x23f   :  { %1989 = vmatpush.msrb.mxu1 %v834_v25 }
 0x241   :  { %v1484_v3 = vpop.f32.mrf.mxu2  ;;  %v1693_v50 = vpop.f32.mrf.mxu3 }
 0x242   :  { %v1485_v23 = vadd.f32 %v1484_v3, %v1276_v62  ;;  %v1069_v51 = vpop.f32.mrf.mxu0  ;;  %v1278_v46 = vpop.f32.mrf.mxu1 }
 0x243   :  { %v1279_v47 = vadd.f32 %v1278_v46, %v1069_v51  ;;  %v5085_v46 = vpop.permute.xlu2 %275 }
 0x244   :  { %v1694_v2 = vadd.f32 %v1693_v50, %v1485_v23  ;;  %6530 = vst [vmem:[#allocation21_spill] sm:$0xff] %v5085_v46 }
 0x245   :  { %2805 = vmatmul.msk.f32.gmra.mxu0 %vm6489_vm12, %v3325_v56  ;;  %2869 = vmatmul.msk.f32.gmra.mxu1 %vm6487_vm14, %v3325_v56  ;;  %vm6490_vm14 = vcmp.eq.s32.totalorder %v3486_v52, %v5059_v28  ;;  %vm6492_vm12 = vcmp.eq.s32.totalorder %v3492_v54, %v5059_v28 }
 0x246   :  { %2681 = vst [vmem:[#allocation6 + $0x280] sm:$0xff] %v1694_v2  ;;  %2933 = vmatmul.msk.f32.gmra.mxu2 %vm6486_vm15, %v3325_v56  ;;  %2997 = vmatmul.msk.f32.gmra.mxu3 %vm6488_vm13, %v3325_v56  ;;  %vm6493_vm15 = vcmp.eq.s32.totalorder %v3474_v48, %v5059_v28  ;;  %vm6491_vm13 = vcmp.eq.s32.totalorder %v3489_v53, %v5059_v28 }
 0x249   :  { %v1487_v62 = vpop.f32.mrf.mxu2  ;;  %v1696_v3 = vpop.f32.mrf.mxu3 }
 0x24a   :  { %v1488_v2 = vadd.f32 %v1487_v62, %v1279_v47  ;;  %v1072_v50 = vpop.f32.mrf.mxu0  ;;  %v1281_v23 = vpop.f32.mrf.mxu1 }
 0x24b   :  { %v1282_v51 = vadd.f32 %v1281_v23, %v1072_v50 }
 0x24c   :  { %v1697_v22 = vadd.f32 %v1696_v3, %v1488_v2 }
 0x24d   :  { %2806 = vmatmul.msk.f32.gmra.mxu0 %vm6493_vm15, %v3325_v56  ;;  %2870 = vmatmul.msk.f32.gmra.mxu1 %vm6490_vm14, %v3325_v56  ;;  %vm6499_vm14 = vcmp.eq.s32.totalorder %v3474_v48, %v5085_v46  ;;  %vm6498_vm15 = vcmp.eq.s32.totalorder %v3492_v54, %v5085_v46 }
 0x24e   :  { %2683 = vst [vmem:[#allocation6 + $0x290] sm:$0xff] %v1697_v22  ;;  %2934 = vmatmul.msk.f32.gmra.mxu2 %vm6491_vm13, %v3325_v56  ;;  %2998 = vmatmul.msk.f32.gmra.mxu3 %vm6492_vm12, %v3325_v56  ;;  %vm6496_vm13 = vcmp.eq.s32.totalorder %v3486_v52, %v5085_v46  ;;  %vm6497_vm12 = vcmp.eq.s32.totalorder %v3489_v53, %v5085_v46  ;;  %v5111_v22 = vpop.permute.xlu0 %278 }
 0x24f   :  { %6531 = vst [vmem:[#allocation22_spill] sm:$0xff] %v5111_v22 }
 0x251   :  { %v1490_v13 = vpop.f32.mrf.mxu2  ;;  %v1699_v25 = vpop.f32.mrf.mxu3 }
 0x252   :  { %v1491_v47 = vadd.f32 %v1490_v13, %v1282_v51  ;;  %v1075_v62 = vpop.f32.mrf.mxu0  ;;  %v1284_v3 = vpop.f32.mrf.mxu1 }
 0x253   :  { %v1285_v50 = vadd.f32 %v1284_v3, %v1075_v62  ;;  %v5137_v62 = vpop.permute.xlu1 %281 }
 0x254   :  { %v1700_v2 = vadd.f32 %v1699_v25, %v1491_v47  ;;  %6532 = vst [vmem:[#allocation23_spill] sm:$0xff] %v5137_v62 }
 0x255   :  { %2807 = vmatmul.msk.f32.gmra.mxu0 %vm6499_vm14, %v3325_v56  ;;  %2871 = vmatmul.msk.f32.gmra.mxu1 %vm6496_vm13, %v3325_v56  ;;  %vm6505_vm13 = vcmp.eq.s32.totalorder %v3474_v48, %v5111_v22  ;;  %vm6504_vm14 = vcmp.eq.s32.totalorder %v3492_v54, %v5111_v22 }
 0x256   :  { %2685 = vst [vmem:[#allocation6 + $0x2a0] sm:$0xff] %v1700_v2  ;;  %2935 = vmatmul.msk.f32.gmra.mxu2 %vm6497_vm12, %v3325_v56  ;;  %2999 = vmatmul.msk.f32.gmra.mxu3 %vm6498_vm15, %v3325_v56  ;;  %vm6502_vm12 = vcmp.eq.s32.totalorder %v3486_v52, %v5111_v22  ;;  %vm6503_vm15 = vcmp.eq.s32.totalorder %v3489_v53, %v5111_v22 }
 0x259   :  { %v1493_v23 = vpop.f32.mrf.mxu2  ;;  %v1702_v51 = vpop.f32.mrf.mxu3 }
 0x25a   :  { %v1494_v13 = vadd.f32 %v1493_v23, %v1285_v50  ;;  %v1078_v25 = vpop.f32.mrf.mxu0  ;;  %v1287_v47 = vpop.f32.mrf.mxu1 }
 0x25b   :  { %v1288_v3 = vadd.f32 %v1287_v47, %v1078_v25 }
 0x25c   :  { %v1703_v28 = vadd.f32 %v1702_v51, %v1494_v13 }
 0x25d   :  { %2808 = vmatmul.msk.f32.gmra.mxu0 %vm6505_vm13, %v3325_v56  ;;  %2872 = vmatmul.msk.f32.gmra.mxu1 %vm6502_vm12, %v3325_v56  ;;  %vm6511_vm12 = vcmp.eq.s32.totalorder %v3474_v48, %v5137_v62  ;;  %vm6510_vm13 = vcmp.eq.s32.totalorder %v3492_v54, %v5137_v62 }
 0x25e   :  { %2687 = vst [vmem:[#allocation6 + $0x2b0] sm:$0xff] %v1703_v28  ;;  %2936 = vmatmul.msk.f32.gmra.mxu2 %vm6503_vm15, %v3325_v56  ;;  %3000 = vmatmul.msk.f32.gmra.mxu3 %vm6504_vm14, %v3325_v56  ;;  %vm6508_vm15 = vcmp.eq.s32.totalorder %v3486_v52, %v5137_v62  ;;  %vm6509_vm14 = vcmp.eq.s32.totalorder %v3489_v53, %v5137_v62  ;;  %v5163_v28 = vpop.permute.xlu2 %284 }
 0x261   :  { %v1496_v2 = vpop.f32.mrf.mxu2  ;;  %v1705_v50 = vpop.f32.mrf.mxu3 }
 0x262   :  { %v1497_v23 = vadd.f32 %v1496_v2, %v1288_v3  ;;  %v1081_v51 = vpop.f32.mrf.mxu0  ;;  %v1290_v13 = vpop.f32.mrf.mxu1 }
 0x263   :  { %v1291_v25 = vadd.f32 %v1290_v13, %v1081_v51 }
 0x264   :  { %v1706_v46 = vadd.f32 %v1705_v50, %v1497_v23 }
 0x265   :  { %2809 = vmatmul.msk.f32.gmra.mxu0 %vm6511_vm12, %v3325_v56  ;;  %2873 = vmatmul.msk.f32.gmra.mxu1 %vm6508_vm15, %v3325_v56  ;;  %vm6517_vm15 = vcmp.eq.s32.totalorder %v3474_v48, %v5163_v28  ;;  %vm6516_vm12 = vcmp.eq.s32.totalorder %v3492_v54, %v5163_v28 }
 0x266   :  { %2689 = vst [vmem:[#allocation6 + $0x2c0] sm:$0xff] %v1706_v46  ;;  %2937 = vmatmul.msk.f32.gmra.mxu2 %vm6509_vm14, %v3325_v56  ;;  %3001 = vmatmul.msk.f32.gmra.mxu3 %vm6510_vm13, %v3325_v56  ;;  %vm6514_vm14 = vcmp.eq.s32.totalorder %v3486_v52, %v5163_v28  ;;  %vm6515_vm13 = vcmp.eq.s32.totalorder %v3489_v53, %v5163_v28  ;;  %v5189_v46 = vpop.permute.xlu0 %287 }
 0x269   :  { %v1499_v47 = vpop.f32.mrf.mxu2  ;;  %v1708_v3 = vpop.f32.mrf.mxu3 }
 0x26a   :  { %v1500_v2 = vadd.f32 %v1499_v47, %v1291_v25  ;;  %v1084_v50 = vpop.f32.mrf.mxu0  ;;  %v1293_v23 = vpop.f32.mrf.mxu1 }
 0x26b   :  { %v1294_v51 = vadd.f32 %v1293_v23, %v1084_v50 }
 0x26c   :  { %v1709_v22 = vadd.f32 %v1708_v3, %v1500_v2 }
 0x26d   :  { %2810 = vmatmul.msk.f32.gmra.mxu0 %vm6517_vm15, %v3325_v56  ;;  %2874 = vmatmul.msk.f32.gmra.mxu1 %vm6514_vm14, %v3325_v56  ;;  %vm541_vm14 = vcmp.eq.s32.totalorder %v3474_v48, %v5189_v46  ;;  %vm544_vm15 = vcmp.eq.s32.totalorder %v3492_v54, %v5189_v46 }
 0x26e   :  { %2691 = vst [vmem:[#allocation6 + $0x2d0] sm:$0xff] %v1709_v22  ;;  %2938 = vmatmul.msk.f32.gmra.mxu2 %vm6515_vm13, %v3325_v56  ;;  %3002 = vmatmul.msk.f32.gmra.mxu3 %vm6516_vm12, %v3325_v56  ;;  %vm542_vm13 = vcmp.eq.s32.totalorder %v3486_v52, %v5189_v46  ;;  %vm543_vm12 = vcmp.eq.s32.totalorder %v3489_v53, %v5189_v46 }
 0x271   :  { %v1502_v13 = vpop.f32.mrf.mxu2  ;;  %v1711_v25 = vpop.f32.mrf.mxu3 }
 0x272   :  { %v1503_v47 = vadd.f32 %v1502_v13, %v1294_v51  ;;  %v1087_v3 = vpop.f32.mrf.mxu0  ;;  %v1296_v2 = vpop.f32.mrf.mxu1 }
 0x273   :  { %v1297_v22 = vadd.f32 %v1296_v2, %v1087_v3 }
 0x274   :  { %v1712_v62 = vadd.f32 %v1711_v25, %v1503_v47 }
 0x275   :  { %2811 = vmatmul.msk.f32.gmra.mxu0 %vm541_vm14, %v3325_v56  ;;  %2875 = vmatmul.msk.f32.gmra.mxu1 %vm542_vm13, %v3325_v56 }
 0x276   :  { %2693 = vst [vmem:[#allocation6 + $0x2e0] sm:$0xff] %v1712_v62  ;;  %2939 = vmatmul.msk.f32.gmra.mxu2 %vm543_vm12, %v3325_v56  ;;  %3003 = vmatmul.msk.f32.gmra.mxu3 %vm544_vm15, %v3325_v56 }
 0x279   :  { %v1505_v50 = vpop.f32.mrf.mxu2  ;;  %v1714_v23 = vpop.f32.mrf.mxu3 }
 0x27a   :  { %v1506_v51 = vadd.f32 %v1505_v50, %v1297_v22  ;;  %v1090_v13 = vpop.f32.mrf.mxu0  ;;  %v1299_v25 = vpop.f32.mrf.mxu1 }
 0x27b   :  { %v1300_v62 = vadd.f32 %v1299_v25, %v1090_v13 }
 0x27c   :  { %v1715_v47 = vadd.f32 %v1714_v23, %v1506_v51 }
 0x27d   :  { %3004 = vmatmul.msk.f32.vlgmr.msrb.gmra.mxu0 %vm289_vm0, %v3325_v56  ;;  %3068 = vmatmul.msk.f32.vlgmr.msrb.gmra.mxu1 %vm290_vm1, %v3325_v56  ;;  %vm6533_vm0 = vcmp.eq.s32.totalorder %v3474_v48, %v3599_v8  ;;  %vm6534_vm1 = vcmp.eq.s32.totalorder %v3486_v52, %v3599_v8 }
 0x27e   :  { %2695 = vst [vmem:[#allocation6 + $0x2f0] sm:$0xff] %v1715_v47  ;;  %3132 = vmatmul.msk.f32.vlgmr.msrb.gmra.mxu2 %vm291_vm2, %v3325_v56  ;;  %3196 = vmatmul.msk.f32.vlgmr.msrb.gmra.mxu3 %vm292_vm3, %v3325_v56  ;;  %vm6535_vm2 = vcmp.eq.s32.totalorder %v3489_v53, %v3599_v8  ;;  %vm6536_vm3 = vcmp.eq.s32.totalorder %v3492_v54, %v3599_v8 }
 0x281   :  { %v1508_v3 = vpop.f32.mrf.mxu2  ;;  %v1717_v2 = vpop.f32.mrf.mxu3 }
 0x282   :  { %v1509_v22 = vadd.f32 %v1508_v3, %v1300_v62  ;;  %v1093_v50 = vpop.f32.mrf.mxu0  ;;  %v1302_v23 = vpop.f32.mrf.mxu1 }
 0x283   :  { %v1303_v55 = vadd.f32 %v1302_v23, %v1093_v50 }
 0x284   :  { %v1718_v51 = vadd.f32 %v1717_v2, %v1509_v22 }
 0x285   :  { %3005 = vmatmul.msk.f32.gmra.mxu0 %vm293_vm4, %v3325_v56  ;;  %3069 = vmatmul.msk.f32.gmra.mxu1 %vm294_vm5, %v3325_v56  ;;  %vm6537_vm4 = vcmp.eq.s32.totalorder %v3474_v48, %v3634_v12  ;;  %vm6538_vm5 = vcmp.eq.s32.totalorder %v3486_v52, %v3634_v12 }
 0x286   :  { %2697 = vst [vmem:[#allocation6 + $0x300] sm:$0xff] %v1718_v51  ;;  %3133 = vmatmul.msk.f32.gmra.mxu2 %vm295_vm6, %v3325_v56  ;;  %3197 = vmatmul.msk.f32.gmra.mxu3 %vm296_vm7, %v3325_v56  ;;  %vm6539_vm6 = vcmp.eq.s32.totalorder %v3489_v53, %v3634_v12  ;;  %vm6540_vm7 = vcmp.eq.s32.totalorder %v3492_v54, %v3634_v12 }
 0x289   :  { %v1511_v13 = vpop.f32.mrf.mxu2  ;;  %v1720_v25 = vpop.f32.mrf.mxu3 }
 0x28a   :  { %v1512_v47 = vadd.f32 %v1511_v13, %v1303_v55  ;;  %v1096_v62 = vpop.f32.mrf.mxu0  ;;  %v1305_v3 = vpop.f32.mrf.mxu1 }
 0x28b   :  { %v1306_v0 = vadd.f32 %v1305_v3, %v1096_v62 }
 0x28c   :  { %v1721_v2 = vadd.f32 %v1720_v25, %v1512_v47 }
 0x28d   :  { %3006 = vmatmul.msk.f32.gmra.mxu0 %vm297_vm8, %v3325_v56  ;;  %3070 = vmatmul.msk.f32.gmra.mxu1 %vm298_vm9, %v3325_v56  ;;  %vm6541_vm8 = vcmp.eq.s32.totalorder %v3474_v48, %v3669_v20  ;;  %vm6542_vm9 = vcmp.eq.s32.totalorder %v3486_v52, %v3669_v20 }
 0x28e   :  { %2699 = vst [vmem:[#allocation6 + $0x310] sm:$0xff] %v1721_v2  ;;  %3134 = vmatmul.msk.f32.gmra.mxu2 %vm299_vm10, %v3325_v56  ;;  %3198 = vmatmul.msk.f32.gmra.mxu3 %vm300_vm11, %v3325_v56  ;;  %vm6543_vm10 = vcmp.eq.s32.totalorder %v3489_v53, %v3669_v20  ;;  %vm6544_vm11 = vcmp.eq.s32.totalorder %v3492_v54, %v3669_v20 }
 0x291   :  { %v1514_v22 = vpop.f32.mrf.mxu2  ;;  %v1723_v50 = vpop.f32.mrf.mxu3 }
 0x292   :  { %v1515_v23 = vadd.f32 %v1514_v22, %v1306_v0  ;;  %v1099_v51 = vpop.f32.mrf.mxu0  ;;  %v1308_v55 = vpop.f32.mrf.mxu1 }
 0x293   :  { %v1309_v4 = vadd.f32 %v1308_v55, %v1099_v51 }
 0x294   :  { %v1724_v13 = vadd.f32 %v1723_v50, %v1515_v23 }
 0x295   :  { %3007 = vmatmul.msk.f32.gmra.mxu0 %vm6533_vm0, %v3325_v56  ;;  %3071 = vmatmul.msk.f32.gmra.mxu1 %vm6534_vm1, %v3325_v56  ;;  %vm6545_vm0 = vcmp.eq.s32.totalorder %v3474_v48, %v3704_v24  ;;  %vm6546_vm1 = vcmp.eq.s32.totalorder %v3486_v52, %v3704_v24 }
 0x296   :  { %2701 = vst [vmem:[#allocation6 + $0x320] sm:$0xff] %v1724_v13  ;;  %3135 = vmatmul.msk.f32.gmra.mxu2 %vm6535_vm2, %v3325_v56  ;;  %3199 = vmatmul.msk.f32.gmra.mxu3 %vm6536_vm3, %v3325_v56  ;;  %vm6547_vm2 = vcmp.eq.s32.totalorder %v3489_v53, %v3704_v24  ;;  %vm6548_vm3 = vcmp.eq.s32.totalorder %v3492_v54, %v3704_v24 }
 0x299   :  { %v1517_v25 = vpop.f32.mrf.mxu2  ;;  %v1726_v47 = vpop.f32.mrf.mxu3 }
 0x29a   :  { %v1518_v62 = vadd.f32 %v1517_v25, %v1309_v4  ;;  %v1102_v3 = vpop.f32.mrf.mxu0  ;;  %v1311_v2 = vpop.f32.mrf.mxu1 }
 0x29b   :  { %v1312_v8 = vadd.f32 %v1311_v2, %v1102_v3 }
 0x29c   :  { %v1727_v0 = vadd.f32 %v1726_v47, %v1518_v62 }
 0x29d   :  { %3008 = vmatmul.msk.f32.gmra.mxu0 %vm6537_vm4, %v3325_v56  ;;  %3072 = vmatmul.msk.f32.gmra.mxu1 %vm6538_vm5, %v3325_v56  ;;  %vm6549_vm4 = vcmp.eq.s32.totalorder %v3474_v48, %v3733_v26  ;;  %vm6550_vm5 = vcmp.eq.s32.totalorder %v3486_v52, %v3733_v26 }
 0x29e   :  { %2703 = vst [vmem:[#allocation6 + $0x330] sm:$0xff] %v1727_v0  ;;  %3136 = vmatmul.msk.f32.gmra.mxu2 %vm6539_vm6, %v3325_v56  ;;  %3200 = vmatmul.msk.f32.gmra.mxu3 %vm6540_vm7, %v3325_v56  ;;  %vm6551_vm6 = vcmp.eq.s32.totalorder %v3489_v53, %v3733_v26  ;;  %vm6552_vm7 = vcmp.eq.s32.totalorder %v3492_v54, %v3733_v26 }
 0x2a1   :  { %v1520_v22 = vpop.f32.mrf.mxu2  ;;  %v1729_v50 = vpop.f32.mrf.mxu3 }
 0x2a2   :  { %v1521_v23 = vadd.f32 %v1520_v22, %v1312_v8  ;;  %v1105_v51 = vpop.f32.mrf.mxu0  ;;  %v1314_v55 = vpop.f32.mrf.mxu1 }
 0x2a3   :  { %v1315_v12 = vadd.f32 %v1314_v55, %v1105_v51 }
 0x2a4   :  { %v1730_v13 = vadd.f32 %v1729_v50, %v1521_v23 }
 0x2a5   :  { %3009 = vmatmul.msk.f32.gmra.mxu0 %vm6541_vm8, %v3325_v56  ;;  %3073 = vmatmul.msk.f32.gmra.mxu1 %vm6542_vm9, %v3325_v56  ;;  %vm6553_vm8 = vcmp.eq.s32.totalorder %v3474_v48, %v3759_v27  ;;  %vm6554_vm9 = vcmp.eq.s32.totalorder %v3486_v52, %v3759_v27 }
 0x2a6   :  { %2705 = vst [vmem:[#allocation6 + $0x340] sm:$0xff] %v1730_v13  ;;  %3137 = vmatmul.msk.f32.gmra.mxu2 %vm6543_vm10, %v3325_v56  ;;  %3201 = vmatmul.msk.f32.gmra.mxu3 %vm6544_vm11, %v3325_v56  ;;  %vm6555_vm10 = vcmp.eq.s32.totalorder %v3489_v53, %v3759_v27  ;;  %vm6556_vm11 = vcmp.eq.s32.totalorder %v3492_v54, %v3759_v27 }
 0x2a9   :  { %v1523_v4 = vpop.f32.mrf.mxu2  ;;  %v1732_v25 = vpop.f32.mrf.mxu3 }
 0x2aa   :  { %v1524_v47 = vadd.f32 %v1523_v4, %v1315_v12  ;;  %v1108_v62 = vpop.f32.mrf.mxu0  ;;  %v1317_v3 = vpop.f32.mrf.mxu1 }
 0x2ab   :  { %v1318_v20 = vadd.f32 %v1317_v3, %v1108_v62 }
 0x2ac   :  { %v1733_v2 = vadd.f32 %v1732_v25, %v1524_v47 }
 0x2ad   :  { %3010 = vmatmul.msk.f32.gmra.mxu0 %vm6545_vm0, %v3325_v56  ;;  %3074 = vmatmul.msk.f32.gmra.mxu1 %vm6546_vm1, %v3325_v56  ;;  %vm6557_vm0 = vcmp.eq.s32.totalorder %v3474_v48, %v3785_v32  ;;  %vm6558_vm1 = vcmp.eq.s32.totalorder %v3486_v52, %v3785_v32 }
 0x2ae   :  { %2707 = vst [vmem:[#allocation6 + $0x350] sm:$0xff] %v1733_v2  ;;  %3138 = vmatmul.msk.f32.gmra.mxu2 %vm6547_vm2, %v3325_v56  ;;  %3202 = vmatmul.msk.f32.gmra.mxu3 %vm6548_vm3, %v3325_v56  ;;  %vm6559_vm2 = vcmp.eq.s32.totalorder %v3489_v53, %v3785_v32  ;;  %vm6560_vm3 = vcmp.eq.s32.totalorder %v3492_v54, %v3785_v32 }
 0x2b1   :  { %v1526_v0 = vpop.f32.mrf.mxu2  ;;  %v1735_v8 = vpop.f32.mrf.mxu3 }
 0x2b2   :  { %v1527_v22 = vadd.f32 %v1526_v0, %v1318_v20  ;;  %v1111_v50 = vpop.f32.mrf.mxu0  ;;  %v1320_v23 = vpop.f32.mrf.mxu1 }
 0x2b3   :  { %v1321_v24 = vadd.f32 %v1320_v23, %v1111_v50 }
 0x2b4   :  { %v1736_v51 = vadd.f32 %v1735_v8, %v1527_v22 }
 0x2b5   :  { %3011 = vmatmul.msk.f32.gmra.mxu0 %vm6549_vm4, %v3325_v56  ;;  %3075 = vmatmul.msk.f32.gmra.mxu1 %vm6550_vm5, %v3325_v56  ;;  %vm6561_vm4 = vcmp.eq.s32.totalorder %v3474_v48, %v3811_v33  ;;  %vm6562_vm5 = vcmp.eq.s32.totalorder %v3486_v52, %v3811_v33 }
 0x2b6   :  { %2709 = vst [vmem:[#allocation6 + $0x360] sm:$0xff] %v1736_v51  ;;  %3139 = vmatmul.msk.f32.gmra.mxu2 %vm6551_vm6, %v3325_v56  ;;  %3203 = vmatmul.msk.f32.gmra.mxu3 %vm6552_vm7, %v3325_v56  ;;  %vm6563_vm6 = vcmp.eq.s32.totalorder %v3489_v53, %v3811_v33  ;;  %vm6564_vm7 = vcmp.eq.s32.totalorder %v3492_v54, %v3811_v33 }
 0x2b9   :  { %v1529_v55 = vpop.f32.mrf.mxu2  ;;  %v1738_v13 = vpop.f32.mrf.mxu3 }
 0x2ba   :  { %v1530_v12 = vadd.f32 %v1529_v55, %v1321_v24  ;;  %v1114_v4 = vpop.f32.mrf.mxu0  ;;  %v1323_v25 = vpop.f32.mrf.mxu1 }
 0x2bb   :  { %v1324_v26 = vadd.f32 %v1323_v25, %v1114_v4 }
 0x2bc   :  { %v1739_v47 = vadd.f32 %v1738_v13, %v1530_v12 }
 0x2bd   :  { %3012 = vmatmul.msk.f32.gmra.mxu0 %vm6553_vm8, %v3325_v56  ;;  %3076 = vmatmul.msk.f32.gmra.mxu1 %vm6554_vm9, %v3325_v56  ;;  %vm6565_vm8 = vcmp.eq.s32.totalorder %v3474_v48, %v3837_v34  ;;  %vm6566_vm9 = vcmp.eq.s32.totalorder %v3486_v52, %v3837_v34 }
 0x2be   :  { %2711 = vst [vmem:[#allocation6 + $0x370] sm:$0xff] %v1739_v47  ;;  %3140 = vmatmul.msk.f32.gmra.mxu2 %vm6555_vm10, %v3325_v56  ;;  %3204 = vmatmul.msk.f32.gmra.mxu3 %vm6556_vm11, %v3325_v56  ;;  %vm6567_vm10 = vcmp.eq.s32.totalorder %v3489_v53, %v3837_v34  ;;  %vm6568_vm11 = vcmp.eq.s32.totalorder %v3492_v54, %v3837_v34 }
 0x2c1   :  { %v1532_v62 = vpop.f32.mrf.mxu2  ;;  %v1741_v3 = vpop.f32.mrf.mxu3 }
 0x2c2   :  { %v1533_v2 = vadd.f32 %v1532_v62, %v1324_v26  ;;  %v1117_v20 = vpop.f32.mrf.mxu0  ;;  %v1326_v0 = vpop.f32.mrf.mxu1 }
 0x2c3   :  { %v1327_v27 = vadd.f32 %v1326_v0, %v1117_v20 }
 0x2c4   :  { %v1742_v8 = vadd.f32 %v1741_v3, %v1533_v2 }
 0x2c5   :  { %3013 = vmatmul.msk.f32.gmra.mxu0 %vm6557_vm0, %v3325_v56  ;;  %3077 = vmatmul.msk.f32.gmra.mxu1 %vm6558_vm1, %v3325_v56  ;;  %vm6569_vm0 = vcmp.eq.s32.totalorder %v3474_v48, %v3863_v35  ;;  %vm6570_vm1 = vcmp.eq.s32.totalorder %v3486_v52, %v3863_v35 }
 0x2c6   :  { %2713 = vst [vmem:[#allocation6 + $0x380] sm:$0xff] %v1742_v8  ;;  %3141 = vmatmul.msk.f32.gmra.mxu2 %vm6559_vm2, %v3325_v56  ;;  %3205 = vmatmul.msk.f32.gmra.mxu3 %vm6560_vm3, %v3325_v56  ;;  %vm6571_vm2 = vcmp.eq.s32.totalorder %v3489_v53, %v3863_v35  ;;  %vm6572_vm3 = vcmp.eq.s32.totalorder %v3492_v54, %v3863_v35 }
 0x2c9   :  { %v1535_v22 = vpop.f32.mrf.mxu2  ;;  %v1744_v50 = vpop.f32.mrf.mxu3 }
 0x2ca   :  { %v1536_v23 = vadd.f32 %v1535_v22, %v1327_v27  ;;  %v1120_v51 = vpop.f32.mrf.mxu0  ;;  %v1329_v24 = vpop.f32.mrf.mxu1 }
 0x2cb   :  { %v1330_v32 = vadd.f32 %v1329_v24, %v1120_v51 }
 0x2cc   :  { %v1745_v55 = vadd.f32 %v1744_v50, %v1536_v23 }
 0x2cd   :  { %3014 = vmatmul.msk.f32.gmra.mxu0 %vm6561_vm4, %v3325_v56  ;;  %3078 = vmatmul.msk.f32.gmra.mxu1 %vm6562_vm5, %v3325_v56  ;;  %vm6573_vm4 = vcmp.eq.s32.totalorder %v3474_v48, %v3889_v38  ;;  %vm6574_vm5 = vcmp.eq.s32.totalorder %v3486_v52, %v3889_v38 }
 0x2ce   :  { %2715 = vst [vmem:[#allocation6 + $0x390] sm:$0xff] %v1745_v55  ;;  %3142 = vmatmul.msk.f32.gmra.mxu2 %vm6563_vm6, %v3325_v56  ;;  %3206 = vmatmul.msk.f32.gmra.mxu3 %vm6564_vm7, %v3325_v56  ;;  %vm6575_vm6 = vcmp.eq.s32.totalorder %v3489_v53, %v3889_v38  ;;  %vm6576_vm7 = vcmp.eq.s32.totalorder %v3492_v54, %v3889_v38 }
 0x2d1   :  { %v1538_v13 = vpop.f32.mrf.mxu2  ;;  %v1747_v12 = vpop.f32.mrf.mxu3 }
 0x2d2   :  { %v1539_v4 = vadd.f32 %v1538_v13, %v1330_v32  ;;  %v1123_v25 = vpop.f32.mrf.mxu0  ;;  %v1332_v47 = vpop.f32.mrf.mxu1 }
 0x2d3   :  { %v1333_v33 = vadd.f32 %v1332_v47, %v1123_v25 }
 0x2d4   :  { %v1748_v26 = vadd.f32 %v1747_v12, %v1539_v4 }
 0x2d5   :  { %3015 = vmatmul.msk.f32.gmra.mxu0 %vm6565_vm8, %v3325_v56  ;;  %3079 = vmatmul.msk.f32.gmra.mxu1 %vm6566_vm9, %v3325_v56  ;;  %vm6577_vm8 = vcmp.eq.s32.totalorder %v3474_v48, %v3915_v41  ;;  %vm6578_vm9 = vcmp.eq.s32.totalorder %v3486_v52, %v3915_v41 }
 0x2d6   :  { %2717 = vst [vmem:[#allocation6 + $0x3a0] sm:$0xff] %v1748_v26  ;;  %3143 = vmatmul.msk.f32.gmra.mxu2 %vm6567_vm10, %v3325_v56  ;;  %3207 = vmatmul.msk.f32.gmra.mxu3 %vm6568_vm11, %v3325_v56  ;;  %vm6579_vm10 = vcmp.eq.s32.totalorder %v3489_v53, %v3915_v41  ;;  %vm6580_vm11 = vcmp.eq.s32.totalorder %v3492_v54, %v3915_v41 }
 0x2d9   :  { %v1541_v62 = vpop.f32.mrf.mxu2  ;;  %v1750_v3 = vpop.f32.mrf.mxu3 }
 0x2da   :  { %v1542_v2 = vadd.f32 %v1541_v62, %v1333_v33  ;;  %v1126_v20 = vpop.f32.mrf.mxu0  ;;  %v1335_v0 = vpop.f32.mrf.mxu1 }
 0x2db   :  { %v1336_v34 = vadd.f32 %v1335_v0, %v1126_v20 }
 0x2dc   :  { %v1751_v8 = vadd.f32 %v1750_v3, %v1542_v2 }
 0x2dd   :  { %3016 = vmatmul.msk.f32.gmra.mxu0 %vm6569_vm0, %v3325_v56  ;;  %3080 = vmatmul.msk.f32.gmra.mxu1 %vm6570_vm1, %v3325_v56  ;;  %vm6581_vm0 = vcmp.eq.s32.totalorder %v3474_v48, %v3941_v42  ;;  %vm6582_vm1 = vcmp.eq.s32.totalorder %v3486_v52, %v3941_v42 }
 0x2de   :  { %2719 = vst [vmem:[#allocation6 + $0x3b0] sm:$0xff] %v1751_v8  ;;  %3144 = vmatmul.msk.f32.gmra.mxu2 %vm6571_vm2, %v3325_v56  ;;  %3208 = vmatmul.msk.f32.gmra.mxu3 %vm6572_vm3, %v3325_v56  ;;  %vm6583_vm2 = vcmp.eq.s32.totalorder %v3489_v53, %v3941_v42  ;;  %vm6584_vm3 = vcmp.eq.s32.totalorder %v3492_v54, %v3941_v42 }
 0x2e1   :  { %v1544_v27 = vpop.f32.mrf.mxu2  ;;  %v1753_v22 = vpop.f32.mrf.mxu3 }
 0x2e2   :  { %v1545_v50 = vadd.f32 %v1544_v27, %v1336_v34  ;;  %v1129_v23 = vpop.f32.mrf.mxu0  ;;  %v1338_v51 = vpop.f32.mrf.mxu1 }
 0x2e3   :  { %v1339_v35 = vadd.f32 %v1338_v51, %v1129_v23 }
 0x2e4   :  { %v1754_v24 = vadd.f32 %v1753_v22, %v1545_v50 }
 0x2e5   :  { %3017 = vmatmul.msk.f32.gmra.mxu0 %vm6573_vm4, %v3325_v56  ;;  %3081 = vmatmul.msk.f32.gmra.mxu1 %vm6574_vm5, %v3325_v56  ;;  %vm6585_vm4 = vcmp.eq.s32.totalorder %v3474_v48, %v3967_v43  ;;  %vm6586_vm5 = vcmp.eq.s32.totalorder %v3486_v52, %v3967_v43 }
 0x2e6   :  { %2721 = vst [vmem:[#allocation6 + $0x3c0] sm:$0xff] %v1754_v24  ;;  %3145 = vmatmul.msk.f32.gmra.mxu2 %vm6575_vm6, %v3325_v56  ;;  %3209 = vmatmul.msk.f32.gmra.mxu3 %vm6576_vm7, %v3325_v56  ;;  %vm6587_vm6 = vcmp.eq.s32.totalorder %v3489_v53, %v3967_v43  ;;  %vm6588_vm7 = vcmp.eq.s32.totalorder %v3492_v54, %v3967_v43 }
 0x2e9   :  { %v1547_v55 = vpop.f32.mrf.mxu2  ;;  %v1756_v32 = vpop.f32.mrf.mxu3 }
 0x2ea   :  { %v1548_v13 = vadd.f32 %v1547_v55, %v1339_v35  ;;  %v1132_v12 = vpop.f32.mrf.mxu0  ;;  %v1341_v4 = vpop.f32.mrf.mxu1 }
 0x2eb   :  { %v1342_v38 = vadd.f32 %v1341_v4, %v1132_v12 }
 0x2ec   :  { %v1757_v25 = vadd.f32 %v1756_v32, %v1548_v13 }
 0x2ed   :  { %3018 = vmatmul.msk.f32.gmra.mxu0 %vm6577_vm8, %v3325_v56  ;;  %3082 = vmatmul.msk.f32.gmra.mxu1 %vm6578_vm9, %v3325_v56  ;;  %vm6589_vm8 = vcmp.eq.s32.totalorder %v3474_v48, %v3993_v60  ;;  %vm6590_vm9 = vcmp.eq.s32.totalorder %v3486_v52, %v3993_v60 }
 0x2ee   :  { %2723 = vst [vmem:[#allocation6 + $0x3d0] sm:$0xff] %v1757_v25  ;;  %3146 = vmatmul.msk.f32.gmra.mxu2 %vm6579_vm10, %v3325_v56  ;;  %3210 = vmatmul.msk.f32.gmra.mxu3 %vm6580_vm11, %v3325_v56  ;;  %vm6591_vm10 = vcmp.eq.s32.totalorder %v3489_v53, %v3993_v60  ;;  %vm6592_vm11 = vcmp.eq.s32.totalorder %v3492_v54, %v3993_v60 }
 0x2f1   :  { %v1550_v47 = vpop.f32.mrf.mxu2  ;;  %v1759_v26 = vpop.f32.mrf.mxu3 }
 0x2f2   :  { %v1551_v33 = vadd.f32 %v1550_v47, %v1342_v38  ;;  %v1135_v62 = vpop.f32.mrf.mxu0  ;;  %v1344_v3 = vpop.f32.mrf.mxu1 }
 0x2f3   :  { %v1345_v41 = vadd.f32 %v1344_v3, %v1135_v62 }
 0x2f4   :  { %v1760_v2 = vadd.f32 %v1759_v26, %v1551_v33 }
 0x2f5   :  { %3019 = vmatmul.msk.f32.gmra.mxu0 %vm6581_vm0, %v3325_v56  ;;  %3083 = vmatmul.msk.f32.gmra.mxu1 %vm6582_vm1, %v3325_v56  ;;  %vm6593_vm0 = vcmp.eq.s32.totalorder %v3474_v48, %v4019_v1  ;;  %vm6594_vm1 = vcmp.eq.s32.totalorder %v3486_v52, %v4019_v1 }
 0x2f6   :  { %2725 = vst [vmem:[#allocation6 + $0x3e0] sm:$0xff] %v1760_v2  ;;  %3147 = vmatmul.msk.f32.gmra.mxu2 %vm6583_vm2, %v3325_v56  ;;  %3211 = vmatmul.msk.f32.gmra.mxu3 %vm6584_vm3, %v3325_v56  ;;  %vm6595_vm2 = vcmp.eq.s32.totalorder %v3489_v53, %v4019_v1  ;;  %vm6596_vm3 = vcmp.eq.s32.totalorder %v3492_v54, %v4019_v1 }
 0x2f9   :  { %v1553_v20 = vpop.f32.mrf.mxu2  ;;  %v1762_v0 = vpop.f32.mrf.mxu3 }
 0x2fa   :  { %v1554_v8 = vadd.f32 %v1553_v20, %v1345_v41  ;;  %v1782_v34 = vpop.f32.mrf.mxu0  ;;  %v1991_v27 = vpop.f32.mrf.mxu1 }
 0x2fb   :  { %v1992_v42 = vadd.f32 %v1991_v27, %v1782_v34 }
 0x2fc   :  { %v1763_v22 = vadd.f32 %v1762_v0, %v1554_v8 }
 0x2fd   :  { %3020 = vmatmul.msk.f32.gmra.mxu0 %vm6585_vm4, %v3325_v56  ;;  %3084 = vmatmul.msk.f32.gmra.mxu1 %vm6586_vm5, %v3325_v56  ;;  %vm6597_vm4 = vcmp.eq.s32.totalorder %v3474_v48, %v4045_v11  ;;  %vm6598_vm5 = vcmp.eq.s32.totalorder %v3486_v52, %v4045_v11 }
 0x2fe   :  { %2727 = vst [vmem:[#allocation6 + $0x3f0] sm:$0xff] %v1763_v22  ;;  %3148 = vmatmul.msk.f32.gmra.mxu2 %vm6587_vm6, %v3325_v56  ;;  %3212 = vmatmul.msk.f32.gmra.mxu3 %vm6588_vm7, %v3325_v56  ;;  %vm6599_vm6 = vcmp.eq.s32.totalorder %v3489_v53, %v4045_v11  ;;  %vm6600_vm7 = vcmp.eq.s32.totalorder %v3492_v54, %v4045_v11 }
 0x301   :  { %v2200_v50 = vpop.f32.mrf.mxu2  ;;  %v2409_v23 = vpop.f32.mrf.mxu3 }
 0x302   :  { %v2201_v51 = vadd.f32 %v2200_v50, %v1992_v42  ;;  %v1785_v24 = vpop.f32.mrf.mxu0  ;;  %v1994_v35 = vpop.f32.mrf.mxu1 }
 0x303   :  { %v1995_v43 = vadd.f32 %v1994_v35, %v1785_v24 }
 0x304   :  { %v2410_v55 = vadd.f32 %v2409_v23, %v2201_v51 }
 0x305   :  { %3021 = vmatmul.msk.f32.gmra.mxu0 %vm6589_vm8, %v3325_v56  ;;  %3085 = vmatmul.msk.f32.gmra.mxu1 %vm6590_vm9, %v3325_v56  ;;  %vm6601_vm8 = vcmp.eq.s32.totalorder %v3474_v48, %v4071_v30  ;;  %vm6602_vm9 = vcmp.eq.s32.totalorder %v3486_v52, %v4071_v30 }
 0x306   :  { %2602 = vst [vmem:[#allocation6 + $0x8] sm:$0xff] %v2410_v55  ;;  %3149 = vmatmul.msk.f32.gmra.mxu2 %vm6591_vm10, %v3325_v56  ;;  %3213 = vmatmul.msk.f32.gmra.mxu3 %vm6592_vm11, %v3325_v56  ;;  %vm6603_vm10 = vcmp.eq.s32.totalorder %v3489_v53, %v4071_v30  ;;  %vm6604_vm11 = vcmp.eq.s32.totalorder %v3492_v54, %v4071_v30 }
 0x309   :  { %v2203_v32 = vpop.f32.mrf.mxu2  ;;  %v2412_v13 = vpop.f32.mrf.mxu3 }
 0x30a   :  { %v2204_v12 = vadd.f32 %v2203_v32, %v1995_v43  ;;  %v1788_v4 = vpop.f32.mrf.mxu0  ;;  %v1997_v25 = vpop.f32.mrf.mxu1 }
 0x30b   :  { %v1998_v60 = vadd.f32 %v1997_v25, %v1788_v4 }
 0x30c   :  { %v2413_v38 = vadd.f32 %v2412_v13, %v2204_v12 }
 0x30d   :  { %3022 = vmatmul.msk.f32.gmra.mxu0 %vm6593_vm0, %v3325_v56  ;;  %3086 = vmatmul.msk.f32.gmra.mxu1 %vm6594_vm1, %v3325_v56  ;;  %vm6605_vm0 = vcmp.eq.s32.totalorder %v3474_v48, %v4097_v39  ;;  %vm6606_vm1 = vcmp.eq.s32.totalorder %v3486_v52, %v4097_v39 }
 0x30e   :  { %2604 = vst [vmem:[#allocation6 + $0x18] sm:$0xff] %v2413_v38  ;;  %3150 = vmatmul.msk.f32.gmra.mxu2 %vm6595_vm2, %v3325_v56  ;;  %3214 = vmatmul.msk.f32.gmra.mxu3 %vm6596_vm3, %v3325_v56  ;;  %vm6607_vm2 = vcmp.eq.s32.totalorder %v3489_v53, %v4097_v39  ;;  %vm6608_vm3 = vcmp.eq.s32.totalorder %v3492_v54, %v4097_v39 }
 0x311   :  { %v2206_v47 = vpop.f32.mrf.mxu2  ;;  %v2415_v26 = vpop.f32.mrf.mxu3 }
 0x312   :  { %v2207_v33 = vadd.f32 %v2206_v47, %v1998_v60  ;;  %v1791_v62 = vpop.f32.mrf.mxu0  ;;  %v2000_v3 = vpop.f32.mrf.mxu1 }
 0x313   :  { %v2001_v1 = vadd.f32 %v2000_v3, %v1791_v62 }
 0x314   :  { %v2416_v2 = vadd.f32 %v2415_v26, %v2207_v33 }
 0x315   :  { %3023 = vmatmul.msk.f32.gmra.mxu0 %vm6597_vm4, %v3325_v56  ;;  %3087 = vmatmul.msk.f32.gmra.mxu1 %vm6598_vm5, %v3325_v56  ;;  %vm6609_vm4 = vcmp.eq.s32.totalorder %v3474_v48, %v4123_v58  ;;  %vm6610_vm5 = vcmp.eq.s32.totalorder %v3486_v52, %v4123_v58 }
 0x316   :  { %2606 = vst [vmem:[#allocation6 + $0x28] sm:$0xff] %v2416_v2  ;;  %3151 = vmatmul.msk.f32.gmra.mxu2 %vm6599_vm6, %v3325_v56  ;;  %3215 = vmatmul.msk.f32.gmra.mxu3 %vm6600_vm7, %v3325_v56  ;;  %vm6611_vm6 = vcmp.eq.s32.totalorder %v3489_v53, %v4123_v58  ;;  %vm6612_vm7 = vcmp.eq.s32.totalorder %v3492_v54, %v4123_v58 }
 0x319   :  { %v2209_v41 = vpop.f32.mrf.mxu2  ;;  %v2418_v20 = vpop.f32.mrf.mxu3 }
 0x31a   :  { %v2210_v0 = vadd.f32 %v2209_v41, %v2001_v1  ;;  %v1794_v8 = vpop.f32.mrf.mxu0  ;;  %v2003_v34 = vpop.f32.mrf.mxu1 }
 0x31b   :  { %v2004_v11 = vadd.f32 %v2003_v34, %v1794_v8 }
 0x31c   :  { %v2419_v27 = vadd.f32 %v2418_v20, %v2210_v0 }
 0x31d   :  { %3024 = vmatmul.msk.f32.gmra.mxu0 %vm6601_vm8, %v3325_v56  ;;  %3088 = vmatmul.msk.f32.gmra.mxu1 %vm6602_vm9, %v3325_v56  ;;  %vm6613_vm8 = vcmp.eq.s32.totalorder %v3474_v48, %v4149_v6  ;;  %vm6614_vm9 = vcmp.eq.s32.totalorder %v3486_v52, %v4149_v6 }
 0x31e   :  { %2608 = vst [vmem:[#allocation6 + $0x38] sm:$0xff] %v2419_v27  ;;  %3152 = vmatmul.msk.f32.gmra.mxu2 %vm6603_vm10, %v3325_v56  ;;  %3216 = vmatmul.msk.f32.gmra.mxu3 %vm6604_vm11, %v3325_v56  ;;  %vm6615_vm10 = vcmp.eq.s32.totalorder %v3489_v53, %v4149_v6  ;;  %vm6616_vm11 = vcmp.eq.s32.totalorder %v3492_v54, %v4149_v6 }
 0x321   :  { %v2212_v22 = vpop.f32.mrf.mxu2  ;;  %v2421_v42 = vpop.f32.mrf.mxu3 }
 0x322   :  { %v2213_v50 = vadd.f32 %v2212_v22, %v2004_v11  ;;  %v1797_v23 = vpop.f32.mrf.mxu0  ;;  %v2006_v51 = vpop.f32.mrf.mxu1 }
 0x323   :  { %v2007_v30 = vadd.f32 %v2006_v51, %v1797_v23 }
 0x324   :  { %v2422_v24 = vadd.f32 %v2421_v42, %v2213_v50 }
 0x325   :  { %3025 = vmatmul.msk.f32.gmra.mxu0 %vm6605_vm0, %v3325_v56  ;;  %3089 = vmatmul.msk.f32.gmra.mxu1 %vm6606_vm1, %v3325_v56  ;;  %vm6617_vm0 = vcmp.eq.s32.totalorder %v3474_v48, %v4175_v17  ;;  %vm6618_vm1 = vcmp.eq.s32.totalorder %v3486_v52, %v4175_v17 }
 0x326   :  { %2610 = vst [vmem:[#allocation6 + $0x48] sm:$0xff] %v2422_v24  ;;  %3153 = vmatmul.msk.f32.gmra.mxu2 %vm6607_vm2, %v3325_v56  ;;  %3217 = vmatmul.msk.f32.gmra.mxu3 %vm6608_vm3, %v3325_v56  ;;  %vm6619_vm2 = vcmp.eq.s32.totalorder %v3489_v53, %v4175_v17  ;;  %vm6620_vm3 = vcmp.eq.s32.totalorder %v3492_v54, %v4175_v17 }
 0x329   :  { %v2215_v35 = vpop.f32.mrf.mxu2  ;;  %v2424_v55 = vpop.f32.mrf.mxu3 }
 0x32a   :  { %v2216_v43 = vadd.f32 %v2215_v35, %v2007_v30  ;;  %v1800_v32 = vpop.f32.mrf.mxu0  ;;  %v2009_v13 = vpop.f32.mrf.mxu1 }
 0x32b   :  { %v2010_v39 = vadd.f32 %v2009_v13, %v1800_v32 }
 0x32c   :  { %v2425_v12 = vadd.f32 %v2424_v55, %v2216_v43 }
 0x32d   :  { %3026 = vmatmul.msk.f32.gmra.mxu0 %vm6609_vm4, %v3325_v56  ;;  %3090 = vmatmul.msk.f32.gmra.mxu1 %vm6610_vm5, %v3325_v56  ;;  %vm6621_vm4 = vcmp.eq.s32.totalorder %v3474_v48, %v4201_v36  ;;  %vm6622_vm5 = vcmp.eq.s32.totalorder %v3486_v52, %v4201_v36 }
 0x32e   :  { %2612 = vst [vmem:[#allocation6 + $0x58] sm:$0xff] %v2425_v12  ;;  %3154 = vmatmul.msk.f32.gmra.mxu2 %vm6611_vm6, %v3325_v56  ;;  %3218 = vmatmul.msk.f32.gmra.mxu3 %vm6612_vm7, %v3325_v56  ;;  %vm6623_vm6 = vcmp.eq.s32.totalorder %v3489_v53, %v4201_v36  ;;  %vm6624_vm7 = vcmp.eq.s32.totalorder %v3492_v54, %v4201_v36 }
 0x331   :  { %v2218_v4 = vpop.f32.mrf.mxu2  ;;  %v2427_v25 = vpop.f32.mrf.mxu3 }
 0x332   :  { %v2219_v38 = vadd.f32 %v2218_v4, %v2010_v39  ;;  %v1803_v60 = vpop.f32.mrf.mxu0  ;;  %v2012_v47 = vpop.f32.mrf.mxu1 }
 0x333   :  { %v2013_v58 = vadd.f32 %v2012_v47, %v1803_v60 }
 0x334   :  { %v2428_v26 = vadd.f32 %v2427_v25, %v2219_v38 }
 0x335   :  { %3027 = vmatmul.msk.f32.gmra.mxu0 %vm6613_vm8, %v3325_v56  ;;  %3091 = vmatmul.msk.f32.gmra.mxu1 %vm6614_vm9, %v3325_v56  ;;  %vm6625_vm8 = vcmp.eq.s32.totalorder %v3474_v48, %v4227_v57  ;;  %vm6626_vm9 = vcmp.eq.s32.totalorder %v3486_v52, %v4227_v57 }
 0x336   :  { %2614 = vst [vmem:[#allocation6 + $0x68] sm:$0xff] %v2428_v26  ;;  %3155 = vmatmul.msk.f32.gmra.mxu2 %vm6615_vm10, %v3325_v56  ;;  %3219 = vmatmul.msk.f32.gmra.mxu3 %vm6616_vm11, %v3325_v56  ;;  %vm6627_vm10 = vcmp.eq.s32.totalorder %v3489_v53, %v4227_v57  ;;  %vm6628_vm11 = vcmp.eq.s32.totalorder %v3492_v54, %v4227_v57 }
 0x339   :  { %v2221_v33 = vpop.f32.mrf.mxu2  ;;  %v2430_v62 = vpop.f32.mrf.mxu3 }
 0x33a   :  { %v2222_v3 = vadd.f32 %v2221_v33, %v2013_v58  ;;  %v1806_v2 = vpop.f32.mrf.mxu0  ;;  %v2015_v1 = vpop.f32.mrf.mxu1 }
 0x33b   :  { %v2016_v6 = vadd.f32 %v2015_v1, %v1806_v2 }
 0x33c   :  { %v2431_v41 = vadd.f32 %v2430_v62, %v2222_v3 }
 0x33d   :  { %3028 = vmatmul.msk.f32.gmra.mxu0 %vm6617_vm0, %v3325_v56  ;;  %3092 = vmatmul.msk.f32.gmra.mxu1 %vm6618_vm1, %v3325_v56  ;;  %vm6629_vm0 = vcmp.eq.s32.totalorder %v3474_v48, %v4253_v7  ;;  %vm6630_vm1 = vcmp.eq.s32.totalorder %v3486_v52, %v4253_v7 }
 0x33e   :  { %2616 = vst [vmem:[#allocation6 + $0x78] sm:$0xff] %v2431_v41  ;;  %3156 = vmatmul.msk.f32.gmra.mxu2 %vm6619_vm2, %v3325_v56  ;;  %3220 = vmatmul.msk.f32.gmra.mxu3 %vm6620_vm3, %v3325_v56  ;;  %vm6631_vm2 = vcmp.eq.s32.totalorder %v3489_v53, %v4253_v7  ;;  %vm6632_vm3 = vcmp.eq.s32.totalorder %v3492_v54, %v4253_v7 }
 0x341   :  { %v2224_v20 = vpop.f32.mrf.mxu2  ;;  %v2433_v0 = vpop.f32.mrf.mxu3 }
 0x342   :  { %v2225_v8 = vadd.f32 %v2224_v20, %v2016_v6  ;;  %v1809_v34 = vpop.f32.mrf.mxu0  ;;  %v2018_v27 = vpop.f32.mrf.mxu1 }
 0x343   :  { %v2019_v17 = vadd.f32 %v2018_v27, %v1809_v34 }
 0x344   :  { %v2434_v11 = vadd.f32 %v2433_v0, %v2225_v8 }
 0x345   :  { %3029 = vmatmul.msk.f32.gmra.mxu0 %vm6621_vm4, %v3325_v56  ;;  %3093 = vmatmul.msk.f32.gmra.mxu1 %vm6622_vm5, %v3325_v56  ;;  %vm6633_vm4 = vcmp.eq.s32.totalorder %v3474_v48, %v4279_v19  ;;  %vm6634_vm5 = vcmp.eq.s32.totalorder %v3486_v52, %v4279_v19 }
 0x346   :  { %2618 = vst [vmem:[#allocation6 + $0x88] sm:$0xff] %v2434_v11  ;;  %3157 = vmatmul.msk.f32.gmra.mxu2 %vm6623_vm6, %v3325_v56  ;;  %3221 = vmatmul.msk.f32.gmra.mxu3 %vm6624_vm7, %v3325_v56  ;;  %vm6635_vm6 = vcmp.eq.s32.totalorder %v3489_v53, %v4279_v19  ;;  %vm6636_vm7 = vcmp.eq.s32.totalorder %v3492_v54, %v4279_v19 }
 0x349   :  { %v2227_v22 = vpop.f32.mrf.mxu2  ;;  %v2436_v42 = vpop.f32.mrf.mxu3 }
 0x34a   :  { %v2228_v50 = vadd.f32 %v2227_v22, %v2019_v17  ;;  %v1812_v23 = vpop.f32.mrf.mxu0  ;;  %v2021_v51 = vpop.f32.mrf.mxu1 }
 0x34b   :  { %v2022_v36 = vadd.f32 %v2021_v51, %v1812_v23 }
 0x34c   :  { %v2437_v24 = vadd.f32 %v2436_v42, %v2228_v50 }
 0x34d   :  { %3030 = vmatmul.msk.f32.gmra.mxu0 %vm6625_vm8, %v3325_v56  ;;  %3094 = vmatmul.msk.f32.gmra.mxu1 %vm6626_vm9, %v3325_v56  ;;  %vm6637_vm8 = vcmp.eq.s32.totalorder %v3474_v48, %v4305_v44  ;;  %vm6638_vm9 = vcmp.eq.s32.totalorder %v3486_v52, %v4305_v44 }
 0x34e   :  { %2620 = vst [vmem:[#allocation6 + $0x98] sm:$0xff] %v2437_v24  ;;  %3158 = vmatmul.msk.f32.gmra.mxu2 %vm6627_vm10, %v3325_v56  ;;  %3222 = vmatmul.msk.f32.gmra.mxu3 %vm6628_vm11, %v3325_v56  ;;  %vm6639_vm10 = vcmp.eq.s32.totalorder %v3489_v53, %v4305_v44  ;;  %vm6640_vm11 = vcmp.eq.s32.totalorder %v3492_v54, %v4305_v44 }
 0x351   :  { %v2230_v30 = vpop.f32.mrf.mxu2  ;;  %v2439_v35 = vpop.f32.mrf.mxu3 }
 0x352   :  { %v2231_v55 = vadd.f32 %v2230_v30, %v2022_v36  ;;  %v1815_v43 = vpop.f32.mrf.mxu0  ;;  %v2024_v32 = vpop.f32.mrf.mxu1 }
 0x353   :  { %v2025_v57 = vadd.f32 %v2024_v32, %v1815_v43 }
 0x354   :  { %v2440_v13 = vadd.f32 %v2439_v35, %v2231_v55 }
 0x355   :  { %3031 = vmatmul.msk.f32.gmra.mxu0 %vm6629_vm0, %v3325_v56  ;;  %3095 = vmatmul.msk.f32.gmra.mxu1 %vm6630_vm1, %v3325_v56  ;;  %vm6641_vm0 = vcmp.eq.s32.totalorder %v3474_v48, %v4331_v63  ;;  %vm6642_vm1 = vcmp.eq.s32.totalorder %v3486_v52, %v4331_v63 }
 0x356   :  { %2622 = vst [vmem:[#allocation6 + $0xa8] sm:$0xff] %v2440_v13  ;;  %3159 = vmatmul.msk.f32.gmra.mxu2 %vm6631_vm2, %v3325_v56  ;;  %3223 = vmatmul.msk.f32.gmra.mxu3 %vm6632_vm3, %v3325_v56  ;;  %vm6643_vm2 = vcmp.eq.s32.totalorder %v3489_v53, %v4331_v63  ;;  %vm6644_vm3 = vcmp.eq.s32.totalorder %v3492_v54, %v4331_v63 }
 0x359   :  { %v2233_v12 = vpop.f32.mrf.mxu2  ;;  %v2442_v39 = vpop.f32.mrf.mxu3 }
 0x35a   :  { %v2234_v4 = vadd.f32 %v2233_v12, %v2025_v57  ;;  %v1818_v25 = vpop.f32.mrf.mxu0  ;;  %v2027_v38 = vpop.f32.mrf.mxu1 }
 0x35b   :  { %v2028_v7 = vadd.f32 %v2027_v38, %v1818_v25 }
 0x35c   :  { %v2443_v60 = vadd.f32 %v2442_v39, %v2234_v4 }
 0x35d   :  { %3032 = vmatmul.msk.f32.gmra.mxu0 %vm6633_vm4, %v3325_v56  ;;  %3096 = vmatmul.msk.f32.gmra.mxu1 %vm6634_vm5, %v3325_v56  ;;  %vm6645_vm4 = vcmp.eq.s32.totalorder %v3474_v48, %v4357_v15  ;;  %vm6646_vm5 = vcmp.eq.s32.totalorder %v3486_v52, %v4357_v15 }
 0x35e   :  { %2624 = vst [vmem:[#allocation6 + $0xb8] sm:$0xff] %v2443_v60  ;;  %3160 = vmatmul.msk.f32.gmra.mxu2 %vm6635_vm6, %v3325_v56  ;;  %3224 = vmatmul.msk.f32.gmra.mxu3 %vm6636_vm7, %v3325_v56  ;;  %vm6647_vm6 = vcmp.eq.s32.totalorder %v3489_v53, %v4357_v15  ;;  %vm6648_vm7 = vcmp.eq.s32.totalorder %v3492_v54, %v4357_v15 }
 0x361   :  { %v2236_v47 = vpop.f32.mrf.mxu2  ;;  %v2445_v26 = vpop.f32.mrf.mxu3 }
 0x362   :  { %v2237_v58 = vadd.f32 %v2236_v47, %v2028_v7  ;;  %v1821_v33 = vpop.f32.mrf.mxu0  ;;  %v2030_v62 = vpop.f32.mrf.mxu1 }
 0x363   :  { %v2031_v19 = vadd.f32 %v2030_v62, %v1821_v33 }
 0x364   :  { %v2446_v3 = vadd.f32 %v2445_v26, %v2237_v58 }
 0x365   :  { %3033 = vmatmul.msk.f32.gmra.mxu0 %vm6637_vm8, %v3325_v56  ;;  %3097 = vmatmul.msk.f32.gmra.mxu1 %vm6638_vm9, %v3325_v56  ;;  %vm6649_vm8 = vcmp.eq.s32.totalorder %v3474_v48, %v4383_v29  ;;  %vm6650_vm9 = vcmp.eq.s32.totalorder %v3486_v52, %v4383_v29 }
 0x366   :  { %2626 = vst [vmem:[#allocation6 + $0xc8] sm:$0xff] %v2446_v3  ;;  %3161 = vmatmul.msk.f32.gmra.mxu2 %vm6639_vm10, %v3325_v56  ;;  %3225 = vmatmul.msk.f32.gmra.mxu3 %vm6640_vm11, %v3325_v56  ;;  %vm6651_vm10 = vcmp.eq.s32.totalorder %v3489_v53, %v4383_v29  ;;  %vm6652_vm11 = vcmp.eq.s32.totalorder %v3492_v54, %v4383_v29 }
 0x369   :  { %v2239_v2 = vpop.f32.mrf.mxu2  ;;  %v2448_v1 = vpop.f32.mrf.mxu3 }
 0x36a   :  { %v2240_v41 = vadd.f32 %v2239_v2, %v2031_v19  ;;  %v1824_v6 = vpop.f32.mrf.mxu0  ;;  %v2033_v20 = vpop.f32.mrf.mxu1 }
 0x36b   :  { %v2034_v44 = vadd.f32 %v2033_v20, %v1824_v6 }
 0x36c   :  { %v2449_v0 = vadd.f32 %v2448_v1, %v2240_v41 }
 0x36d   :  { %3034 = vmatmul.msk.f32.gmra.mxu0 %vm6641_vm0, %v3325_v56  ;;  %3098 = vmatmul.msk.f32.gmra.mxu1 %vm6642_vm1, %v3325_v56  ;;  %vm6653_vm0 = vcmp.eq.s32.totalorder %v3474_v48, %v4409_v59  ;;  %vm6654_vm1 = vcmp.eq.s32.totalorder %v3486_v52, %v4409_v59 }
 0x36e   :  { %2628 = vst [vmem:[#allocation6 + $0xd8] sm:$0xff] %v2449_v0  ;;  %3162 = vmatmul.msk.f32.gmra.mxu2 %vm6643_vm2, %v3325_v56  ;;  %3226 = vmatmul.msk.f32.gmra.mxu3 %vm6644_vm3, %v3325_v56  ;;  %vm6655_vm2 = vcmp.eq.s32.totalorder %v3489_v53, %v4409_v59  ;;  %vm6656_vm3 = vcmp.eq.s32.totalorder %v3492_v54, %v4409_v59 }
 0x371   :  { %v2242_v8 = vpop.f32.mrf.mxu2  ;;  %v2451_v34 = vpop.f32.mrf.mxu3 }
 0x372   :  { %v2243_v27 = vadd.f32 %v2242_v8, %v2034_v44  ;;  %v1827_v11 = vpop.f32.mrf.mxu0  ;;  %v2036_v17 = vpop.f32.mrf.mxu1 }
 0x373   :  { %v2037_v63 = vadd.f32 %v2036_v17, %v1827_v11 }
 0x374   :  { %v2452_v22 = vadd.f32 %v2451_v34, %v2243_v27 }
 0x375   :  { %3035 = vmatmul.msk.f32.gmra.mxu0 %vm6645_vm4, %v3325_v56  ;;  %3099 = vmatmul.msk.f32.gmra.mxu1 %vm6646_vm5, %v3325_v56  ;;  %vm6657_vm4 = vcmp.eq.s32.totalorder %v3474_v48, %v4435_v16  ;;  %vm6658_vm5 = vcmp.eq.s32.totalorder %v3486_v52, %v4435_v16 }
 0x376   :  { %2630 = vst [vmem:[#allocation6 + $0xe8] sm:$0xff] %v2452_v22  ;;  %3163 = vmatmul.msk.f32.gmra.mxu2 %vm6647_vm6, %v3325_v56  ;;  %3227 = vmatmul.msk.f32.gmra.mxu3 %vm6648_vm7, %v3325_v56  ;;  %vm6659_vm6 = vcmp.eq.s32.totalorder %v3489_v53, %v4435_v16  ;;  %vm6660_vm7 = vcmp.eq.s32.totalorder %v3492_v54, %v4435_v16 }
 0x379   :  { %v2245_v42 = vpop.f32.mrf.mxu2  ;;  %v2454_v50 = vpop.f32.mrf.mxu3 }
 0x37a   :  { %v2246_v23 = vadd.f32 %v2245_v42, %v2037_v63  ;;  %v1830_v51 = vpop.f32.mrf.mxu0  ;;  %v2039_v24 = vpop.f32.mrf.mxu1 }
 0x37b   :  { %v2040_v15 = vadd.f32 %v2039_v24, %v1830_v51 }
 0x37c   :  { %v2455_v36 = vadd.f32 %v2454_v50, %v2246_v23 }
 0x37d   :  { %3036 = vmatmul.msk.f32.gmra.mxu0 %vm6649_vm8, %v3325_v56  ;;  %3100 = vmatmul.msk.f32.gmra.mxu1 %vm6650_vm9, %v3325_v56  ;;  %vm6661_vm8 = vcmp.eq.s32.totalorder %v3474_v48, %v4461_v37  ;;  %vm6662_vm9 = vcmp.eq.s32.totalorder %v3486_v52, %v4461_v37 }
 0x37e   :  { %2632 = vst [vmem:[#allocation6 + $0xf8] sm:$0xff] %v2455_v36  ;;  %3164 = vmatmul.msk.f32.gmra.mxu2 %vm6651_vm10, %v3325_v56  ;;  %3228 = vmatmul.msk.f32.gmra.mxu3 %vm6652_vm11, %v3325_v56  ;;  %vm6663_vm10 = vcmp.eq.s32.totalorder %v3489_v53, %v4461_v37  ;;  %vm6664_vm11 = vcmp.eq.s32.totalorder %v3492_v54, %v4461_v37 }
 0x381   :  { %v2248_v30 = vpop.f32.mrf.mxu2  ;;  %v2457_v35 = vpop.f32.mrf.mxu3 }
 0x382   :  { %v2249_v55 = vadd.f32 %v2248_v30, %v2040_v15  ;;  %v1833_v43 = vpop.f32.mrf.mxu0  ;;  %v2042_v32 = vpop.f32.mrf.mxu1 }
 0x383   :  { %v2043_v29 = vadd.f32 %v2042_v32, %v1833_v43 }
 0x384   :  { %v2458_v13 = vadd.f32 %v2457_v35, %v2249_v55 }
 0x385   :  { %3037 = vmatmul.msk.f32.gmra.mxu0 %vm6653_vm0, %v3325_v56  ;;  %3101 = vmatmul.msk.f32.gmra.mxu1 %vm6654_vm1, %v3325_v56  ;;  %vm6665_vm0 = vcmp.eq.s32.totalorder %v3474_v48, %v4487_v61  ;;  %vm6666_vm1 = vcmp.eq.s32.totalorder %v3486_v52, %v4487_v61 }
 0x386   :  { %2634 = vst [vmem:[#allocation6 + $0x108] sm:$0xff] %v2458_v13  ;;  %3165 = vmatmul.msk.f32.gmra.mxu2 %vm6655_vm2, %v3325_v56  ;;  %3229 = vmatmul.msk.f32.gmra.mxu3 %vm6656_vm3, %v3325_v56  ;;  %vm6667_vm2 = vcmp.eq.s32.totalorder %v3489_v53, %v4487_v61  ;;  %vm6668_vm3 = vcmp.eq.s32.totalorder %v3492_v54, %v4487_v61 }
 0x389   :  { %v2251_v57 = vpop.f32.mrf.mxu2  ;;  %v2460_v12 = vpop.f32.mrf.mxu3 }
 0x38a   :  { %v2252_v39 = vadd.f32 %v2251_v57, %v2043_v29  ;;  %v1836_v4 = vpop.f32.mrf.mxu0  ;;  %v2045_v25 = vpop.f32.mrf.mxu1 }
 0x38b   :  { %v2046_v59 = vadd.f32 %v2045_v25, %v1836_v4 }
 0x38c   :  { %v2461_v38 = vadd.f32 %v2460_v12, %v2252_v39 }
 0x38d   :  { %3038 = vmatmul.msk.f32.gmra.mxu0 %vm6657_vm4, %v3325_v56  ;;  %3102 = vmatmul.msk.f32.gmra.mxu1 %vm6658_vm5, %v3325_v56  ;;  %vm6669_vm4 = vcmp.eq.s32.totalorder %v3474_v48, %v4513_v21  ;;  %vm6670_vm5 = vcmp.eq.s32.totalorder %v3486_v52, %v4513_v21 }
 0x38e   :  { %2636 = vst [vmem:[#allocation6 + $0x118] sm:$0xff] %v2461_v38  ;;  %3166 = vmatmul.msk.f32.gmra.mxu2 %vm6659_vm6, %v3325_v56  ;;  %3230 = vmatmul.msk.f32.gmra.mxu3 %vm6660_vm7, %v3325_v56  ;;  %vm6671_vm6 = vcmp.eq.s32.totalorder %v3489_v53, %v4513_v21  ;;  %vm6672_vm7 = vcmp.eq.s32.totalorder %v3492_v54, %v4513_v21 }
 0x391   :  { %v2254_v60 = vpop.f32.mrf.mxu2  ;;  %v2463_v7 = vpop.f32.mrf.mxu3 }
 0x392   :  { %v2255_v47 = vadd.f32 %v2254_v60, %v2046_v59  ;;  %v1839_v26 = vpop.f32.mrf.mxu0  ;;  %v2048_v58 = vpop.f32.mrf.mxu1 }
 0x393   :  { %v2049_v16 = vadd.f32 %v2048_v58, %v1839_v26 }
 0x394   :  { %v2464_v33 = vadd.f32 %v2463_v7, %v2255_v47 }
 0x395   :  { %3039 = vmatmul.msk.f32.gmra.mxu0 %vm6661_vm8, %v3325_v56  ;;  %3103 = vmatmul.msk.f32.gmra.mxu1 %vm6662_vm9, %v3325_v56  ;;  %vm6673_vm8 = vcmp.eq.s32.totalorder %v3474_v48, %v4539_v49  ;;  %vm6674_vm9 = vcmp.eq.s32.totalorder %v3486_v52, %v4539_v49 }
 0x396   :  { %2638 = vst [vmem:[#allocation6 + $0x128] sm:$0xff] %v2464_v33  ;;  %3167 = vmatmul.msk.f32.gmra.mxu2 %vm6663_vm10, %v3325_v56  ;;  %3231 = vmatmul.msk.f32.gmra.mxu3 %vm6664_vm11, %v3325_v56  ;;  %vm6675_vm10 = vcmp.eq.s32.totalorder %v3489_v53, %v4539_v49  ;;  %vm6676_vm11 = vcmp.eq.s32.totalorder %v3492_v54, %v4539_v49 }
 0x399   :  { %v2257_v62 = vpop.f32.mrf.mxu2  ;;  %v2466_v3 = vpop.f32.mrf.mxu3 }
 0x39a   :  { %v2258_v19 = vadd.f32 %v2257_v62, %v2049_v16  ;;  %v1842_v2 = vpop.f32.mrf.mxu0  ;;  %v2051_v1 = vpop.f32.mrf.mxu1 }
 0x39b   :  { %v2052_v37 = vadd.f32 %v2051_v1, %v1842_v2 }
 0x39c   :  { %v2467_v41 = vadd.f32 %v2466_v3, %v2258_v19 }
 0x39d   :  { %3040 = vmatmul.msk.f32.gmra.mxu0 %vm6665_vm0, %v3325_v56  ;;  %3104 = vmatmul.msk.f32.gmra.mxu1 %vm6666_vm1, %v3325_v56  ;;  %vm6677_vm0 = vcmp.eq.s32.totalorder %v3474_v48, %v4565_v10  ;;  %vm6678_vm1 = vcmp.eq.s32.totalorder %v3486_v52, %v4565_v10 }
 0x39e   :  { %2640 = vst [vmem:[#allocation6 + $0x138] sm:$0xff] %v2467_v41  ;;  %3168 = vmatmul.msk.f32.gmra.mxu2 %vm6667_vm2, %v3325_v56  ;;  %3232 = vmatmul.msk.f32.gmra.mxu3 %vm6668_vm3, %v3325_v56  ;;  %vm6679_vm2 = vcmp.eq.s32.totalorder %v3489_v53, %v4565_v10  ;;  %vm6680_vm3 = vcmp.eq.s32.totalorder %v3492_v54, %v4565_v10 }
 0x3a1   :  { %v2260_v6 = vpop.f32.mrf.mxu2  ;;  %v2469_v20 = vpop.f32.mrf.mxu3 }
 0x3a2   :  { %v2261_v0 = vadd.f32 %v2260_v6, %v2052_v37  ;;  %v1845_v44 = vpop.f32.mrf.mxu0  ;;  %v2054_v8 = vpop.f32.mrf.mxu1 }
 0x3a3   :  { %v2055_v61 = vadd.f32 %v2054_v8, %v1845_v44 }
 0x3a4   :  { %v2470_v34 = vadd.f32 %v2469_v20, %v2261_v0 }
 0x3a5   :  { %3041 = vmatmul.msk.f32.gmra.mxu0 %vm6669_vm4, %v3325_v56  ;;  %3105 = vmatmul.msk.f32.gmra.mxu1 %vm6670_vm5, %v3325_v56  ;;  %vm6681_vm4 = vcmp.eq.s32.totalorder %v3474_v48, %v4591_v31  ;;  %vm6682_vm5 = vcmp.eq.s32.totalorder %v3486_v52, %v4591_v31 }
 0x3a6   :  { %2642 = vst [vmem:[#allocation6 + $0x148] sm:$0xff] %v2470_v34  ;;  %3169 = vmatmul.msk.f32.gmra.mxu2 %vm6671_vm6, %v3325_v56  ;;  %3233 = vmatmul.msk.f32.gmra.mxu3 %vm6672_vm7, %v3325_v56  ;;  %vm6683_vm6 = vcmp.eq.s32.totalorder %v3489_v53, %v4591_v31  ;;  %vm6684_vm7 = vcmp.eq.s32.totalorder %v3492_v54, %v4591_v31 }
 0x3a9   :  { %v2263_v27 = vpop.f32.mrf.mxu2  ;;  %v2472_v11 = vpop.f32.mrf.mxu3 }
 0x3aa   :  { %v2264_v17 = vadd.f32 %v2263_v27, %v2055_v61  ;;  %v1848_v22 = vpop.f32.mrf.mxu0  ;;  %v2057_v63 = vpop.f32.mrf.mxu1 }
 0x3ab   :  { %v2058_v21 = vadd.f32 %v2057_v63, %v1848_v22 }
 0x3ac   :  { %v2473_v42 = vadd.f32 %v2472_v11, %v2264_v17 }
 0x3ad   :  { %3042 = vmatmul.msk.f32.gmra.mxu0 %vm6673_vm8, %v3325_v56  ;;  %3106 = vmatmul.msk.f32.gmra.mxu1 %vm6674_vm9, %v3325_v56  ;;  %vm6685_vm8 = vcmp.eq.s32.totalorder %v3474_v48, %v4617_v5  ;;  %vm6686_vm9 = vcmp.eq.s32.totalorder %v3486_v52, %v4617_v5 }
 0x3ae   :  { %2644 = vst [vmem:[#allocation6 + $0x158] sm:$0xff] %v2473_v42  ;;  %3170 = vmatmul.msk.f32.gmra.mxu2 %vm6675_vm10, %v3325_v56  ;;  %3234 = vmatmul.msk.f32.gmra.mxu3 %vm6676_vm11, %v3325_v56  ;;  %vm6687_vm10 = vcmp.eq.s32.totalorder %v3489_v53, %v4617_v5  ;;  %vm6688_vm11 = vcmp.eq.s32.totalorder %v3492_v54, %v4617_v5 }
 0x3b1   :  { %v2266_v50 = vpop.f32.mrf.mxu2  ;;  %v2475_v23 = vpop.f32.mrf.mxu3 }
 0x3b2   :  { %v2267_v51 = vadd.f32 %v2266_v50, %v2058_v21  ;;  %v1851_v24 = vpop.f32.mrf.mxu0  ;;  %v2060_v36 = vpop.f32.mrf.mxu1  ;;  %v6705_v50 = vld [vmem:[#allocation9_spill] sm:$0xff] }
 0x3b3   :  { %v2061_v49 = vadd.f32 %v2060_v36, %v1851_v24 }
 0x3b4   :  { %v2476_v15 = vadd.f32 %v2475_v23, %v2267_v51 }
 0x3b5   :  { %3043 = vmatmul.msk.f32.gmra.mxu0 %vm6677_vm0, %v3325_v56  ;;  %3107 = vmatmul.msk.f32.gmra.mxu1 %vm6678_vm1, %v3325_v56  ;;  %vm6689_vm0 = vcmp.eq.s32.totalorder %v3474_v48, %v4643_v45  ;;  %vm6690_vm1 = vcmp.eq.s32.totalorder %v3486_v52, %v4643_v45 }
 0x3b6   :  { %2646 = vst [vmem:[#allocation6 + $0x168] sm:$0xff] %v2476_v15  ;;  %3171 = vmatmul.msk.f32.gmra.mxu2 %vm6679_vm2, %v3325_v56  ;;  %3235 = vmatmul.msk.f32.gmra.mxu3 %vm6680_vm3, %v3325_v56  ;;  %vm6691_vm2 = vcmp.eq.s32.totalorder %v3489_v53, %v4643_v45  ;;  %vm6692_vm3 = vcmp.eq.s32.totalorder %v3492_v54, %v4643_v45 }
 0x3b9   :  { %v2269_v30 = vpop.f32.mrf.mxu2  ;;  %v2478_v35 = vpop.f32.mrf.mxu3 }
 0x3ba   :  { %v2270_v55 = vadd.f32 %v2269_v30, %v2061_v49  ;;  %v1854_v43 = vpop.f32.mrf.mxu0  ;;  %v2063_v32 = vpop.f32.mrf.mxu1  ;;  %v6710_v30 = vld [vmem:[#allocation10_spill] sm:$0xff] }
 0x3bb   :  { %v2064_v10 = vadd.f32 %v2063_v32, %v1854_v43 }
 0x3bc   :  { %v2479_v13 = vadd.f32 %v2478_v35, %v2270_v55 }
 0x3bd   :  { %3044 = vmatmul.msk.f32.gmra.mxu0 %vm6681_vm4, %v3325_v56  ;;  %3108 = vmatmul.msk.f32.gmra.mxu1 %vm6682_vm5, %v3325_v56  ;;  %vm6693_vm4 = vcmp.eq.s32.totalorder %v3474_v48, %v4669_v9  ;;  %vm6694_vm5 = vcmp.eq.s32.totalorder %v3486_v52, %v4669_v9 }
 0x3be   :  { %2648 = vst [vmem:[#allocation6 + $0x178] sm:$0xff] %v2479_v13  ;;  %3172 = vmatmul.msk.f32.gmra.mxu2 %vm6683_vm6, %v3325_v56  ;;  %3236 = vmatmul.msk.f32.gmra.mxu3 %vm6684_vm7, %v3325_v56  ;;  %vm6695_vm6 = vcmp.eq.s32.totalorder %v3489_v53, %v4669_v9  ;;  %vm6696_vm7 = vcmp.eq.s32.totalorder %v3492_v54, %v4669_v9 }
 0x3c1   :  { %v2272_v29 = vpop.f32.mrf.mxu2  ;;  %v2481_v57 = vpop.f32.mrf.mxu3 }
 0x3c2   :  { %v2273_v12 = vadd.f32 %v2272_v29, %v2064_v10  ;;  %v1857_v39 = vpop.f32.mrf.mxu0  ;;  %v2066_v4 = vpop.f32.mrf.mxu1 }
 0x3c3   :  { %v2067_v31 = vadd.f32 %v2066_v4, %v1857_v39 }
 0x3c4   :  { %v2482_v25 = vadd.f32 %v2481_v57, %v2273_v12  ;;  %v6715_v57 = vld [vmem:[#allocation11_spill] sm:$0xff] }
 0x3c5   :  { %3045 = vmatmul.msk.f32.gmra.mxu0 %vm6685_vm8, %v3325_v56  ;;  %3109 = vmatmul.msk.f32.gmra.mxu1 %vm6686_vm9, %v3325_v56  ;;  %vm6697_vm8 = vcmp.eq.s32.totalorder %v3474_v48, %v4695_v40  ;;  %vm6698_vm9 = vcmp.eq.s32.totalorder %v3486_v52, %v4695_v40 }
 0x3c6   :  { %2650 = vst [vmem:[#allocation6 + $0x188] sm:$0xff] %v2482_v25  ;;  %3173 = vmatmul.msk.f32.gmra.mxu2 %vm6687_vm10, %v3325_v56  ;;  %3237 = vmatmul.msk.f32.gmra.mxu3 %vm6688_vm11, %v3325_v56  ;;  %vm6699_vm10 = vcmp.eq.s32.totalorder %v3489_v53, %v4695_v40  ;;  %vm6700_vm11 = vcmp.eq.s32.totalorder %v3492_v54, %v4695_v40 }
 0x3c9   :  { %v2275_v38 = vpop.f32.mrf.mxu2  ;;  %v2484_v59 = vpop.f32.mrf.mxu3 }
 0x3ca   :  { %v2276_v60 = vadd.f32 %v2275_v38, %v2067_v31  ;;  %v1860_v7 = vpop.f32.mrf.mxu0  ;;  %v2069_v47 = vpop.f32.mrf.mxu1 }
 0x3cb   :  { %v2070_v5 = vadd.f32 %v2069_v47, %v1860_v7 }
 0x3cc   :  { %v2485_v26 = vadd.f32 %v2484_v59, %v2276_v60  ;;  %v6720_v60 = vld [vmem:[#allocation12_spill] sm:$0xff] }
 0x3cd   :  { %3046 = vmatmul.msk.f32.gmra.mxu0 %vm6689_vm0, %v3325_v56  ;;  %3110 = vmatmul.msk.f32.gmra.mxu1 %vm6690_vm1, %v3325_v56  ;;  %vm6701_vm0 = vcmp.eq.s32.totalorder %v3474_v48, %v4721_v18  ;;  %vm6702_vm1 = vcmp.eq.s32.totalorder %v3486_v52, %v4721_v18 }
 0x3ce   :  { %2652 = vst [vmem:[#allocation6 + $0x198] sm:$0xff] %v2485_v26  ;;  %3174 = vmatmul.msk.f32.gmra.mxu2 %vm6691_vm2, %v3325_v56  ;;  %3238 = vmatmul.msk.f32.gmra.mxu3 %vm6692_vm3, %v3325_v56  ;;  %vm6703_vm2 = vcmp.eq.s32.totalorder %v3489_v53, %v4721_v18  ;;  %vm6704_vm3 = vcmp.eq.s32.totalorder %v3492_v54, %v4721_v18 }
 0x3d1   :  { %v2278_v58 = vpop.f32.mrf.mxu2  ;;  %v2487_v33 = vpop.f32.mrf.mxu3 }
 0x3d2   :  { %v2279_v16 = vadd.f32 %v2278_v58, %v2070_v5  ;;  %v1863_v62 = vpop.f32.mrf.mxu0  ;;  %v2072_v3 = vpop.f32.mrf.mxu1 }
 0x3d3   :  { %v2073_v45 = vadd.f32 %v2072_v3, %v1863_v62  ;;  %v6725_v62 = vld [vmem:[#allocation13_spill] sm:$0xff] }
 0x3d4   :  { %v2488_v19 = vadd.f32 %v2487_v33, %v2279_v16 }
 0x3d5   :  { %3047 = vmatmul.msk.f32.gmra.mxu0 %vm6693_vm4, %v3325_v56  ;;  %3111 = vmatmul.msk.f32.gmra.mxu1 %vm6694_vm5, %v3325_v56  ;;  %vm6706_vm4 = vcmp.eq.s32.totalorder %v3474_v48, %v6705_v50  ;;  %vm6707_vm5 = vcmp.eq.s32.totalorder %v3486_v52, %v6705_v50 }
 0x3d6   :  { %2654 = vst [vmem:[#allocation6 + $0x1a8] sm:$0xff] %v2488_v19  ;;  %3175 = vmatmul.msk.f32.gmra.mxu2 %vm6695_vm6, %v3325_v56  ;;  %3239 = vmatmul.msk.f32.gmra.mxu3 %vm6696_vm7, %v3325_v56  ;;  %vm6708_vm6 = vcmp.eq.s32.totalorder %v3489_v53, %v6705_v50  ;;  %vm6709_vm7 = vcmp.eq.s32.totalorder %v3492_v54, %v6705_v50  ;;  %v6740_v50 = vld [vmem:[#allocation16_spill] sm:$0xff] }
 0x3d9   :  { %v2281_v2 = vpop.f32.mrf.mxu2  ;;  %v2490_v1 = vpop.f32.mrf.mxu3 }
 0x3da   :  { %v2282_v41 = vadd.f32 %v2281_v2, %v2073_v45  ;;  %v1866_v37 = vpop.f32.mrf.mxu0  ;;  %v2075_v6 = vpop.f32.mrf.mxu1 }
 0x3db   :  { %v2076_v9 = vadd.f32 %v2075_v6, %v1866_v37  ;;  %v6730_v6 = vld [vmem:[#allocation14_spill] sm:$0xff] }
 0x3dc   :  { %v2491_v20 = vadd.f32 %v2490_v1, %v2282_v41 }
 0x3dd   :  { %3048 = vmatmul.msk.f32.gmra.mxu0 %vm6697_vm8, %v3325_v56  ;;  %3112 = vmatmul.msk.f32.gmra.mxu1 %vm6698_vm9, %v3325_v56  ;;  %vm6711_vm8 = vcmp.eq.s32.totalorder %v3474_v48, %v6710_v30  ;;  %vm6712_vm9 = vcmp.eq.s32.totalorder %v3486_v52, %v6710_v30 }
 0x3de   :  { %2656 = vst [vmem:[#allocation6 + $0x1b8] sm:$0xff] %v2491_v20  ;;  %3176 = vmatmul.msk.f32.gmra.mxu2 %vm6699_vm10, %v3325_v56  ;;  %3240 = vmatmul.msk.f32.gmra.mxu3 %vm6700_vm11, %v3325_v56  ;;  %vm6713_vm10 = vcmp.eq.s32.totalorder %v3489_v53, %v6710_v30  ;;  %vm6714_vm11 = vcmp.eq.s32.totalorder %v3492_v54, %v6710_v30  ;;  %v6745_v30 = vld [vmem:[#allocation17_spill] sm:$0xff] }
 0x3e1   :  { %v2284_v0 = vpop.f32.mrf.mxu2  ;;  %v2493_v44 = vpop.f32.mrf.mxu3 }
 0x3e2   :  { %v2285_v8 = vadd.f32 %v2284_v0, %v2076_v9  ;;  %v1869_v34 = vpop.f32.mrf.mxu0  ;;  %v2078_v61 = vpop.f32.mrf.mxu1 }
 0x3e3   :  { %v2079_v40 = vadd.f32 %v2078_v61, %v1869_v34 }
 0x3e4   :  { %v2494_v27 = vadd.f32 %v2493_v44, %v2285_v8 }
 0x3e5   :  { %3049 = vmatmul.msk.f32.gmra.mxu0 %vm6701_vm0, %v3325_v56  ;;  %3113 = vmatmul.msk.f32.gmra.mxu1 %vm6702_vm1, %v3325_v56  ;;  %vm6716_vm0 = vcmp.eq.s32.totalorder %v3474_v48, %v6715_v57  ;;  %vm6717_vm1 = vcmp.eq.s32.totalorder %v3486_v52, %v6715_v57 }
 0x3e6   :  { %2658 = vst [vmem:[#allocation6 + $0x1c8] sm:$0xff] %v2494_v27  ;;  %3177 = vmatmul.msk.f32.gmra.mxu2 %vm6703_vm2, %v3325_v56  ;;  %3241 = vmatmul.msk.f32.gmra.mxu3 %vm6704_vm3, %v3325_v56  ;;  %vm6718_vm2 = vcmp.eq.s32.totalorder %v3489_v53, %v6715_v57  ;;  %vm6719_vm3 = vcmp.eq.s32.totalorder %v3492_v54, %v6715_v57  ;;  %v6735_v27 = vld [vmem:[#allocation15_spill] sm:$0xff]  ;;  %v6750_v57 = vld [vmem:[#allocation18_spill] sm:$0xff] }
 0x3e9   :  { %v2287_v11 = vpop.f32.mrf.mxu2  ;;  %v2496_v17 = vpop.f32.mrf.mxu3 }
 0x3ea   :  { %v2288_v22 = vadd.f32 %v2287_v11, %v2079_v40  ;;  %v1872_v63 = vpop.f32.mrf.mxu0  ;;  %v2081_v42 = vpop.f32.mrf.mxu1 }
 0x3eb   :  { %v2082_v18 = vadd.f32 %v2081_v42, %v1872_v63 }
 0x3ec   :  { %v2497_v21 = vadd.f32 %v2496_v17, %v2288_v22 }
 0x3ed   :  { %3050 = vmatmul.msk.f32.gmra.mxu0 %vm6706_vm4, %v3325_v56  ;;  %3114 = vmatmul.msk.f32.gmra.mxu1 %vm6707_vm5, %v3325_v56  ;;  %vm6721_vm4 = vcmp.eq.s32.totalorder %v3474_v48, %v6720_v60  ;;  %vm6722_vm5 = vcmp.eq.s32.totalorder %v3486_v52, %v6720_v60 }
 0x3ee   :  { %2660 = vst [vmem:[#allocation6 + $0x1d8] sm:$0xff] %v2497_v21  ;;  %3178 = vmatmul.msk.f32.gmra.mxu2 %vm6708_vm6, %v3325_v56  ;;  %3242 = vmatmul.msk.f32.gmra.mxu3 %vm6709_vm7, %v3325_v56  ;;  %vm6723_vm6 = vcmp.eq.s32.totalorder %v3489_v53, %v6720_v60  ;;  %vm6724_vm7 = vcmp.eq.s32.totalorder %v3492_v54, %v6720_v60  ;;  %v6755_v60 = vld [vmem:[#allocation19_spill] sm:$0xff] }
 0x3f1   :  { %v2290_v23 = vpop.f32.mrf.mxu2  ;;  %v2499_v51 = vpop.f32.mrf.mxu3 }
 0x3f2   :  { %v2291_v24 = vadd.f32 %v2290_v23, %v2082_v18  ;;  %v1875_v36 = vpop.f32.mrf.mxu0  ;;  %v2084_v15 = vpop.f32.mrf.mxu1 }
 0x3f3   :  { %v2085_v35 = vadd.f32 %v2084_v15, %v1875_v36 }
 0x3f4   :  { %v2500_v49 = vadd.f32 %v2499_v51, %v2291_v24 }
 0x3f5   :  { %3051 = vmatmul.msk.f32.gmra.mxu0 %vm6711_vm8, %v3325_v56  ;;  %3115 = vmatmul.msk.f32.gmra.mxu1 %vm6712_vm9, %v3325_v56  ;;  %vm6726_vm8 = vcmp.eq.s32.totalorder %v3474_v48, %v6725_v62  ;;  %vm6727_vm9 = vcmp.eq.s32.totalorder %v3486_v52, %v6725_v62 }
 0x3f6   :  { %2662 = vst [vmem:[#allocation6 + $0x1e8] sm:$0xff] %v2500_v49  ;;  %3179 = vmatmul.msk.f32.gmra.mxu2 %vm6713_vm10, %v3325_v56  ;;  %3243 = vmatmul.msk.f32.gmra.mxu3 %vm6714_vm11, %v3325_v56  ;;  %vm6728_vm10 = vcmp.eq.s32.totalorder %v3489_v53, %v6725_v62  ;;  %vm6729_vm11 = vcmp.eq.s32.totalorder %v3492_v54, %v6725_v62 }
 0x3f9   :  { %v2293_v55 = vpop.f32.mrf.mxu2  ;;  %v2502_v43 = vpop.f32.mrf.mxu3 }
 0x3fa   :  { %v2294_v32 = vadd.f32 %v2293_v55, %v2085_v35  ;;  %v1878_v13 = vpop.f32.mrf.mxu0  ;;  %v2087_v10 = vpop.f32.mrf.mxu1 }
 0x3fb   :  { %v2088_v12 = vadd.f32 %v2087_v10, %v1878_v13 }
 0x3fc   :  { %v2503_v29 = vadd.f32 %v2502_v43, %v2294_v32 }
 0x3fd   :  { %3052 = vmatmul.msk.f32.gmra.mxu0 %vm6716_vm0, %v3325_v56  ;;  %3116 = vmatmul.msk.f32.gmra.mxu1 %vm6717_vm1, %v3325_v56  ;;  %vm6731_vm0 = vcmp.eq.s32.totalorder %v3474_v48, %v6730_v6  ;;  %vm6732_vm1 = vcmp.eq.s32.totalorder %v3486_v52, %v6730_v6 }
 0x3fe   :  { %2664 = vst [vmem:[#allocation6 + $0x1f8] sm:$0xff] %v2503_v29  ;;  %3180 = vmatmul.msk.f32.gmra.mxu2 %vm6718_vm2, %v3325_v56  ;;  %3244 = vmatmul.msk.f32.gmra.mxu3 %vm6719_vm3, %v3325_v56  ;;  %vm6733_vm2 = vcmp.eq.s32.totalorder %v3489_v53, %v6730_v6  ;;  %vm6734_vm3 = vcmp.eq.s32.totalorder %v3492_v54, %v6730_v6 }
 0x401   :  { %v2296_v39 = vpop.f32.mrf.mxu2  ;;  %v2505_v4 = vpop.f32.mrf.mxu3 }
 0x402   :  { %v2297_v25 = vadd.f32 %v2296_v39, %v2088_v12  ;;  %v1881_v31 = vpop.f32.mrf.mxu0  ;;  %v2090_v38 = vpop.f32.mrf.mxu1 }
 0x403   :  { %v2091_v7 = vadd.f32 %v2090_v38, %v1881_v31 }
 0x404   :  { %v2506_v59 = vadd.f32 %v2505_v4, %v2297_v25 }
 0x405   :  { %3053 = vmatmul.msk.f32.gmra.mxu0 %vm6721_vm4, %v3325_v56  ;;  %3117 = vmatmul.msk.f32.gmra.mxu1 %vm6722_vm5, %v3325_v56  ;;  %vm6736_vm4 = vcmp.eq.s32.totalorder %v3474_v48, %v6735_v27  ;;  %vm6737_vm5 = vcmp.eq.s32.totalorder %v3486_v52, %v6735_v27 }
 0x406   :  { %2666 = vst [vmem:[#allocation6 + $0x208] sm:$0xff] %v2506_v59  ;;  %3181 = vmatmul.msk.f32.gmra.mxu2 %vm6723_vm6, %v3325_v56  ;;  %3245 = vmatmul.msk.f32.gmra.mxu3 %vm6724_vm7, %v3325_v56  ;;  %vm6738_vm6 = vcmp.eq.s32.totalorder %v3489_v53, %v6735_v27  ;;  %vm6739_vm7 = vcmp.eq.s32.totalorder %v3492_v54, %v6735_v27 }
 0x409   :  { %v2299_v47 = vpop.f32.mrf.mxu2  ;;  %v2508_v26 = vpop.f32.mrf.mxu3 }
 0x40a   :  { %v2300_v5 = vadd.f32 %v2299_v47, %v2091_v7  ;;  %v1884_v58 = vpop.f32.mrf.mxu0  ;;  %v2093_v33 = vpop.f32.mrf.mxu1 }
 0x40b   :  { %v2094_v3 = vadd.f32 %v2093_v33, %v1884_v58 }
 0x40c   :  { %v2509_v16 = vadd.f32 %v2508_v26, %v2300_v5 }
 0x40d   :  { %3054 = vmatmul.msk.f32.gmra.mxu0 %vm6726_vm8, %v3325_v56  ;;  %3118 = vmatmul.msk.f32.gmra.mxu1 %vm6727_vm9, %v3325_v56  ;;  %vm6741_vm8 = vcmp.eq.s32.totalorder %v3474_v48, %v6740_v50  ;;  %vm6742_vm9 = vcmp.eq.s32.totalorder %v3486_v52, %v6740_v50 }
 0x40e   :  { %2668 = vst [vmem:[#allocation6 + $0x218] sm:$0xff] %v2509_v16  ;;  %3182 = vmatmul.msk.f32.gmra.mxu2 %vm6728_vm10, %v3325_v56  ;;  %3246 = vmatmul.msk.f32.gmra.mxu3 %vm6729_vm11, %v3325_v56  ;;  %vm6743_vm10 = vcmp.eq.s32.totalorder %v3489_v53, %v6740_v50  ;;  %vm6744_vm11 = vcmp.eq.s32.totalorder %v3492_v54, %v6740_v50 }
 0x411   :  { %v2302_v19 = vpop.f32.mrf.mxu2  ;;  %v2511_v45 = vpop.f32.mrf.mxu3 }
 0x412   :  { %v2303_v2 = vadd.f32 %v2302_v19, %v2094_v3  ;;  %v1887_v1 = vpop.f32.mrf.mxu0  ;;  %v2096_v41 = vpop.f32.mrf.mxu1 }
 0x413   :  { %v2097_v20 = vadd.f32 %v2096_v41, %v1887_v1 }
 0x414   :  { %v2512_v37 = vadd.f32 %v2511_v45, %v2303_v2 }
 0x415   :  { %3055 = vmatmul.msk.f32.gmra.mxu0 %vm6731_vm0, %v3325_v56  ;;  %3119 = vmatmul.msk.f32.gmra.mxu1 %vm6732_vm1, %v3325_v56  ;;  %vm6746_vm0 = vcmp.eq.s32.totalorder %v3474_v48, %v6745_v30  ;;  %vm6747_vm1 = vcmp.eq.s32.totalorder %v3486_v52, %v6745_v30 }
 0x416   :  { %2670 = vst [vmem:[#allocation6 + $0x228] sm:$0xff] %v2512_v37  ;;  %3183 = vmatmul.msk.f32.gmra.mxu2 %vm6733_vm2, %v3325_v56  ;;  %3247 = vmatmul.msk.f32.gmra.mxu3 %vm6734_vm3, %v3325_v56  ;;  %vm6748_vm2 = vcmp.eq.s32.totalorder %v3489_v53, %v6745_v30  ;;  %vm6749_vm3 = vcmp.eq.s32.totalorder %v3492_v54, %v6745_v30  ;;  %v6764_v37 = vld [vmem:[#allocation20_spill] sm:$0xff] }
 0x419   :  { %v2305_v9 = vpop.f32.mrf.mxu2  ;;  %v2514_v0 = vpop.f32.mrf.mxu3 }
 0x41a   :  { %v2306_v44 = vadd.f32 %v2305_v9, %v2097_v20  ;;  %v1890_v8 = vpop.f32.mrf.mxu0  ;;  %v2099_v34 = vpop.f32.mrf.mxu1 }
 0x41b   :  { %v2100_v40 = vadd.f32 %v2099_v34, %v1890_v8  ;;  %v6769_v34 = vld [vmem:[#allocation21_spill] sm:$0xff] }
 0x41c   :  { %v2515_v61 = vadd.f32 %v2514_v0, %v2306_v44 }
 0x41d   :  { %3056 = vmatmul.msk.f32.gmra.mxu0 %vm6736_vm4, %v3325_v56  ;;  %3120 = vmatmul.msk.f32.gmra.mxu1 %vm6737_vm5, %v3325_v56  ;;  %vm6751_vm4 = vcmp.eq.s32.totalorder %v3474_v48, %v6750_v57  ;;  %vm6752_vm5 = vcmp.eq.s32.totalorder %v3486_v52, %v6750_v57 }
 0x41e   :  { %2672 = vst [vmem:[#allocation6 + $0x238] sm:$0xff] %v2515_v61  ;;  %3184 = vmatmul.msk.f32.gmra.mxu2 %vm6738_vm6, %v3325_v56  ;;  %3248 = vmatmul.msk.f32.gmra.mxu3 %vm6739_vm7, %v3325_v56  ;;  %vm6753_vm6 = vcmp.eq.s32.totalorder %v3489_v53, %v6750_v57  ;;  %vm6754_vm7 = vcmp.eq.s32.totalorder %v3492_v54, %v6750_v57 }
 0x421   :  { %v2308_v11 = vpop.f32.mrf.mxu2  ;;  %v2517_v17 = vpop.f32.mrf.mxu3 }
 0x422   :  { %v2309_v22 = vadd.f32 %v2308_v11, %v2100_v40  ;;  %v1893_v63 = vpop.f32.mrf.mxu0  ;;  %v2102_v42 = vpop.f32.mrf.mxu1 }
 0x423   :  { %v2103_v18 = vadd.f32 %v2102_v42, %v1893_v63  ;;  %v6774_v42 = vld [vmem:[#allocation22_spill] sm:$0xff] }
 0x424   :  { %v2518_v21 = vadd.f32 %v2517_v17, %v2309_v22 }
 0x425   :  { %3057 = vmatmul.msk.f32.gmra.mxu0 %vm6741_vm8, %v3325_v56  ;;  %3121 = vmatmul.msk.f32.gmra.mxu1 %vm6742_vm9, %v3325_v56  ;;  %vm6756_vm8 = vcmp.eq.s32.totalorder %v3474_v48, %v6755_v60  ;;  %vm6757_vm9 = vcmp.eq.s32.totalorder %v3486_v52, %v6755_v60 }
 0x426   :  { %2674 = vst [vmem:[#allocation6 + $0x248] sm:$0xff] %v2518_v21  ;;  %3185 = vmatmul.msk.f32.gmra.mxu2 %vm6743_vm10, %v3325_v56  ;;  %3249 = vmatmul.msk.f32.gmra.mxu3 %vm6744_vm11, %v3325_v56  ;;  %vm6758_vm10 = vcmp.eq.s32.totalorder %v3489_v53, %v6755_v60  ;;  %vm6759_vm11 = vcmp.eq.s32.totalorder %v3492_v54, %v6755_v60 }
 0x429   :  { %v2311_v23 = vpop.f32.mrf.mxu2  ;;  %v2520_v51 = vpop.f32.mrf.mxu3 }
 0x42a   :  { %v2312_v24 = vadd.f32 %v2311_v23, %v2103_v18  ;;  %v1896_v36 = vpop.f32.mrf.mxu0  ;;  %v2105_v15 = vpop.f32.mrf.mxu1 }
 0x42b   :  { %v2106_v35 = vadd.f32 %v2105_v15, %v1896_v36  ;;  %v6779_v15 = vld [vmem:[#allocation23_spill] sm:$0xff] }
 0x42c   :  { %v2521_v49 = vadd.f32 %v2520_v51, %v2312_v24 }
 0x42d   :  { %3058 = vmatmul.msk.f32.gmra.mxu0 %vm6746_vm0, %v3325_v56  ;;  %3122 = vmatmul.msk.f32.gmra.mxu1 %vm6747_vm1, %v3325_v56  ;;  %vm6760_vm0 = vcmp.eq.s32.totalorder %v3474_v48, %v5033_v14  ;;  %vm6761_vm1 = vcmp.eq.s32.totalorder %v3486_v52, %v5033_v14 }
 0x42e   :  { %2676 = vst [vmem:[#allocation6 + $0x258] sm:$0xff] %v2521_v49  ;;  %3186 = vmatmul.msk.f32.gmra.mxu2 %vm6748_vm2, %v3325_v56  ;;  %3250 = vmatmul.msk.f32.gmra.mxu3 %vm6749_vm3, %v3325_v56  ;;  %vm6762_vm2 = vcmp.eq.s32.totalorder %v3489_v53, %v5033_v14  ;;  %vm6763_vm3 = vcmp.eq.s32.totalorder %v3492_v54, %v5033_v14 }
 0x431   :  { %v2314_v55 = vpop.f32.mrf.mxu2  ;;  %v2523_v43 = vpop.f32.mrf.mxu3 }
 0x432   :  { %v2315_v32 = vadd.f32 %v2314_v55, %v2106_v35  ;;  %v1899_v13 = vpop.f32.mrf.mxu0  ;;  %v2108_v10 = vpop.f32.mrf.mxu1 }
 0x433   :  { %v2109_v12 = vadd.f32 %v2108_v10, %v1899_v13 }
 0x434   :  { %v2524_v29 = vadd.f32 %v2523_v43, %v2315_v32 }
 0x435   :  { %3059 = vmatmul.msk.f32.gmra.mxu0 %vm6751_vm4, %v3325_v56  ;;  %3123 = vmatmul.msk.f32.gmra.mxu1 %vm6752_vm5, %v3325_v56  ;;  %vm6765_vm4 = vcmp.eq.s32.totalorder %v3474_v48, %v6764_v37  ;;  %vm6766_vm5 = vcmp.eq.s32.totalorder %v3486_v52, %v6764_v37 }
 0x436   :  { %2678 = vst [vmem:[#allocation6 + $0x268] sm:$0xff] %v2524_v29  ;;  %3187 = vmatmul.msk.f32.gmra.mxu2 %vm6753_vm6, %v3325_v56  ;;  %3251 = vmatmul.msk.f32.gmra.mxu3 %vm6754_vm7, %v3325_v56  ;;  %vm6767_vm6 = vcmp.eq.s32.totalorder %v3489_v53, %v6764_v37  ;;  %vm6768_vm7 = vcmp.eq.s32.totalorder %v3492_v54, %v6764_v37 }
 0x439   :  { %v2317_v39 = vpop.f32.mrf.mxu2  ;;  %v2526_v4 = vpop.f32.mrf.mxu3 }
 0x43a   :  { %v2318_v25 = vadd.f32 %v2317_v39, %v2109_v12  ;;  %v1902_v31 = vpop.f32.mrf.mxu0  ;;  %v2111_v38 = vpop.f32.mrf.mxu1 }
 0x43b   :  { %v2112_v7 = vadd.f32 %v2111_v38, %v1902_v31 }
 0x43c   :  { %v2527_v59 = vadd.f32 %v2526_v4, %v2318_v25 }
 0x43d   :  { %3060 = vmatmul.msk.f32.gmra.mxu0 %vm6756_vm8, %v3325_v56  ;;  %3124 = vmatmul.msk.f32.gmra.mxu1 %vm6757_vm9, %v3325_v56  ;;  %vm6770_vm8 = vcmp.eq.s32.totalorder %v3474_v48, %v6769_v34  ;;  %vm6771_vm9 = vcmp.eq.s32.totalorder %v3486_v52, %v6769_v34 }
 0x43e   :  { %2680 = vst [vmem:[#allocation6 + $0x278] sm:$0xff] %v2527_v59  ;;  %3188 = vmatmul.msk.f32.gmra.mxu2 %vm6758_vm10, %v3325_v56  ;;  %3252 = vmatmul.msk.f32.gmra.mxu3 %vm6759_vm11, %v3325_v56  ;;  %vm6772_vm10 = vcmp.eq.s32.totalorder %v3489_v53, %v6769_v34  ;;  %vm6773_vm11 = vcmp.eq.s32.totalorder %v3492_v54, %v6769_v34 }
 0x441   :  { %v2320_v47 = vpop.f32.mrf.mxu2  ;;  %v2529_v26 = vpop.f32.mrf.mxu3 }
 0x442   :  { %v2321_v5 = vadd.f32 %v2320_v47, %v2112_v7  ;;  %v1905_v58 = vpop.f32.mrf.mxu0  ;;  %v2114_v33 = vpop.f32.mrf.mxu1 }
 0x443   :  { %v2115_v62 = vadd.f32 %v2114_v33, %v1905_v58 }
 0x444   :  { %v2530_v16 = vadd.f32 %v2529_v26, %v2321_v5 }
 0x445   :  { %3061 = vmatmul.msk.f32.gmra.mxu0 %vm6760_vm0, %v3325_v56  ;;  %3125 = vmatmul.msk.f32.gmra.mxu1 %vm6761_vm1, %v3325_v56  ;;  %vm6775_vm0 = vcmp.eq.s32.totalorder %v3474_v48, %v6774_v42  ;;  %vm6776_vm1 = vcmp.eq.s32.totalorder %v3486_v52, %v6774_v42 }
 0x446   :  { %2682 = vst [vmem:[#allocation6 + $0x288] sm:$0xff] %v2530_v16  ;;  %3189 = vmatmul.msk.f32.gmra.mxu2 %vm6762_vm2, %v3325_v56  ;;  %3253 = vmatmul.msk.f32.gmra.mxu3 %vm6763_vm3, %v3325_v56  ;;  %vm6777_vm2 = vcmp.eq.s32.totalorder %v3489_v53, %v6774_v42  ;;  %vm6778_vm3 = vcmp.eq.s32.totalorder %v3492_v54, %v6774_v42 }
 0x449   :  { %v2323_v3 = vpop.f32.mrf.mxu2  ;;  %v2532_v19 = vpop.f32.mrf.mxu3 }
 0x44a   :  { %v2324_v45 = vadd.f32 %v2323_v3, %v2115_v62  ;;  %v1908_v2 = vpop.f32.mrf.mxu0  ;;  %v2117_v1 = vpop.f32.mrf.mxu1 }
 0x44b   :  { %v2118_v14 = vadd.f32 %v2117_v1, %v1908_v2 }
 0x44c   :  { %v2533_v41 = vadd.f32 %v2532_v19, %v2324_v45 }
 0x44d   :  { %3062 = vmatmul.msk.f32.gmra.mxu0 %vm6765_vm4, %v3325_v56  ;;  %3126 = vmatmul.msk.f32.gmra.mxu1 %vm6766_vm5, %v3325_v56  ;;  %vm6780_vm4 = vcmp.eq.s32.totalorder %v3474_v48, %v6779_v15  ;;  %vm6781_vm5 = vcmp.eq.s32.totalorder %v3486_v52, %v6779_v15 }
 0x44e   :  { %2684 = vst [vmem:[#allocation6 + $0x298] sm:$0xff] %v2533_v41  ;;  %3190 = vmatmul.msk.f32.gmra.mxu2 %vm6767_vm6, %v3325_v56  ;;  %3254 = vmatmul.msk.f32.gmra.mxu3 %vm6768_vm7, %v3325_v56  ;;  %vm6782_vm6 = vcmp.eq.s32.totalorder %v3489_v53, %v6779_v15  ;;  %vm6783_vm7 = vcmp.eq.s32.totalorder %v3492_v54, %v6779_v15 }
 0x451   :  { %v2326_v6 = vpop.f32.mrf.mxu2  ;;  %v2535_v20 = vpop.f32.mrf.mxu3 }
 0x452   :  { %v2327_v9 = vadd.f32 %v2326_v6, %v2118_v14  ;;  %v1911_v0 = vpop.f32.mrf.mxu0  ;;  %v2120_v44 = vpop.f32.mrf.mxu1 }
 0x453   :  { %v2121_v61 = vadd.f32 %v2120_v44, %v1911_v0 }
 0x454   :  { %v2536_v8 = vadd.f32 %v2535_v20, %v2327_v9 }
 0x455   :  { %3063 = vmatmul.msk.f32.gmra.mxu0 %vm6770_vm8, %v3325_v56  ;;  %3127 = vmatmul.msk.f32.gmra.mxu1 %vm6771_vm9, %v3325_v56  ;;  %vm6784_vm8 = vcmp.eq.s32.totalorder %v3474_v48, %v5163_v28  ;;  %vm6785_vm9 = vcmp.eq.s32.totalorder %v3486_v52, %v5163_v28 }
 0x456   :  { %2686 = vst [vmem:[#allocation6 + $0x2a8] sm:$0xff] %v2536_v8  ;;  %3191 = vmatmul.msk.f32.gmra.mxu2 %vm6772_vm10, %v3325_v56  ;;  %3255 = vmatmul.msk.f32.gmra.mxu3 %vm6773_vm11, %v3325_v56  ;;  %vm6786_vm10 = vcmp.eq.s32.totalorder %v3489_v53, %v5163_v28  ;;  %vm6787_vm11 = vcmp.eq.s32.totalorder %v3492_v54, %v5163_v28 }
 0x459   :  { %v2329_v27 = vpop.f32.mrf.mxu2  ;;  %v2538_v40 = vpop.f32.mrf.mxu3 }
 0x45a   :  { %v2330_v11 = vadd.f32 %v2329_v27, %v2121_v61  ;;  %v1914_v17 = vpop.f32.mrf.mxu0  ;;  %v2123_v22 = vpop.f32.mrf.mxu1 }
 0x45b   :  { %v2124_v21 = vadd.f32 %v2123_v22, %v1914_v17 }
 0x45c   :  { %v2539_v63 = vadd.f32 %v2538_v40, %v2330_v11 }
 0x45d   :  { %3064 = vmatmul.msk.f32.gmra.mxu0 %vm6775_vm0, %v3325_v56  ;;  %3128 = vmatmul.msk.f32.gmra.mxu1 %vm6776_vm1, %v3325_v56 }
 0x45e   :  { %2688 = vst [vmem:[#allocation6 + $0x2b8] sm:$0xff] %v2539_v63  ;;  %3192 = vmatmul.msk.f32.gmra.mxu2 %vm6777_vm2, %v3325_v56  ;;  %3256 = vmatmul.msk.f32.gmra.mxu3 %vm6778_vm3, %v3325_v56 }
 0x461   :  { %v2332_v50 = vpop.f32.mrf.mxu2  ;;  %v2541_v18 = vpop.f32.mrf.mxu3 }
 0x462   :  { %v2333_v23 = vadd.f32 %v2332_v50, %v2124_v21  ;;  %v1917_v51 = vpop.f32.mrf.mxu0  ;;  %v2126_v24 = vpop.f32.mrf.mxu1 }
 0x463   :  { %v2127_v49 = vadd.f32 %v2126_v24, %v1917_v51 }
 0x464   :  { %v2542_v36 = vadd.f32 %v2541_v18, %v2333_v23 }
 0x465   :  { %3065 = vmatmul.msk.f32.gmra.mxu0 %vm6780_vm4, %v3325_v56  ;;  %3129 = vmatmul.msk.f32.gmra.mxu1 %vm6781_vm5, %v3325_v56 }
 0x466   :  { %2690 = vst [vmem:[#allocation6 + $0x2c8] sm:$0xff] %v2542_v36  ;;  %3193 = vmatmul.msk.f32.gmra.mxu2 %vm6782_vm6, %v3325_v56  ;;  %3257 = vmatmul.msk.f32.gmra.mxu3 %vm6783_vm7, %v3325_v56 }
 0x469   :  { %v2335_v30 = vpop.f32.mrf.mxu2  ;;  %v2544_v35 = vpop.f32.mrf.mxu3 }
 0x46a   :  { %v2336_v55 = vadd.f32 %v2335_v30, %v2127_v49  ;;  %v1920_v43 = vpop.f32.mrf.mxu0  ;;  %v2129_v32 = vpop.f32.mrf.mxu1 }
 0x46b   :  { %v2130_v10 = vadd.f32 %v2129_v32, %v1920_v43 }
 0x46c   :  { %v2545_v13 = vadd.f32 %v2544_v35, %v2336_v55 }
 0x46d   :  { %3066 = vmatmul.msk.f32.gmra.mxu0 %vm6784_vm8, %v3325_v56  ;;  %3130 = vmatmul.msk.f32.gmra.mxu1 %vm6785_vm9, %v3325_v56 }
 0x46e   :  { %2692 = vst [vmem:[#allocation6 + $0x2d8] sm:$0xff] %v2545_v13  ;;  %3194 = vmatmul.msk.f32.gmra.mxu2 %vm6786_vm10, %v3325_v56  ;;  %3258 = vmatmul.msk.f32.gmra.mxu3 %vm6787_vm11, %v3325_v56 }
 0x471   :  { %v2338_v29 = vpop.f32.mrf.mxu2  ;;  %v2547_v57 = vpop.f32.mrf.mxu3 }
 0x472   :  { %v2339_v12 = vadd.f32 %v2338_v29, %v2130_v10  ;;  %v1923_v39 = vpop.f32.mrf.mxu0  ;;  %v2132_v4 = vpop.f32.mrf.mxu1 }
 0x473   :  { %v2133_v28 = vadd.f32 %v2132_v4, %v1923_v39 }
 0x474   :  { %v2548_v25 = vadd.f32 %v2547_v57, %v2339_v12 }
 0x475   :  { %3067 = vmatmul.msk.f32.gmra.mxu0 %vm541_vm14, %v3325_v56  ;;  %3131 = vmatmul.msk.f32.gmra.mxu1 %vm542_vm13, %v3325_v56 }
 0x476   :  { %2694 = vst [vmem:[#allocation6 + $0x2e8] sm:$0xff] %v2548_v25  ;;  %3195 = vmatmul.msk.f32.gmra.mxu2 %vm543_vm12, %v3325_v56  ;;  %3259 = vmatmul.msk.f32.gmra.mxu3 %vm544_vm15, %v3325_v56 }
 0x479   :  { %v2341_v31 = vpop.f32.mrf.mxu2  ;;  %v2550_v48 = vpop.f32.mrf.mxu3 }
 0x47a   :  { %v2342_v38 = vadd.f32 %v2341_v31, %v2133_v28  ;;  %v1926_v59 = vpop.f32.mrf.mxu0  ;;  %v2135_v60 = vpop.f32.mrf.mxu1 }
 0x47b   :  { %v2136_v52 = vadd.f32 %v2135_v60, %v1926_v59 }
 0x47c   :  { %v2551_v7 = vadd.f32 %v2550_v48, %v2342_v38 }
 0x47e   :  { %2696 = vst [vmem:[#allocation6 + $0x2f8] sm:$0xff] %v2551_v7 }
 0x481   :  { %v2344_v47 = vpop.f32.mrf.mxu2  ;;  %v2553_v26 = vpop.f32.mrf.mxu3 }
 0x482   :  { %v2345_v5 = vadd.f32 %v2344_v47, %v2136_v52  ;;  %v1929_v58 = vpop.f32.mrf.mxu0  ;;  %v2138_v53 = vpop.f32.mrf.mxu1 }
 0x483   :  { %v2139_v16 = vadd.f32 %v2138_v53, %v1929_v58 }
 0x484   :  { %v2554_v33 = vadd.f32 %v2553_v26, %v2345_v5 }
 0x486   :  { %2698 = vst [vmem:[#allocation6 + $0x308] sm:$0xff] %v2554_v33 }
 0x489   :  { %v2347_v62 = vpop.f32.mrf.mxu2  ;;  %v2556_v54 = vpop.f32.mrf.mxu3 }
 0x48a   :  { %v2348_v56 = vadd.f32 %v2347_v62, %v2139_v16  ;;  %v1932_v46 = vpop.f32.mrf.mxu0  ;;  %v2141_v3 = vpop.f32.mrf.mxu1 }
 0x48b   :  { %v2142_v45 = vadd.f32 %v2141_v3, %v1932_v46 }
 0x48c   :  { %v2557_v19 = vadd.f32 %v2556_v54, %v2348_v56 }
 0x48e   :  { %2700 = vst [vmem:[#allocation6 + $0x318] sm:$0xff] %v2557_v19 }
 0x491   :  { %v2350_v2 = vpop.f32.mrf.mxu2  ;;  %v2559_v1 = vpop.f32.mrf.mxu3 }
 0x492   :  { %v2351_v41 = vadd.f32 %v2350_v2, %v2142_v45  ;;  %v1935_v37 = vpop.f32.mrf.mxu0  ;;  %v2144_v14 = vpop.f32.mrf.mxu1 }
 0x493   :  { %v2145_v20 = vadd.f32 %v2144_v14, %v1935_v37 }
 0x494   :  { %v2560_v6 = vadd.f32 %v2559_v1, %v2351_v41 }
 0x496   :  { %2702 = vst [vmem:[#allocation6 + $0x328] sm:$0xff] %v2560_v6 }
 0x499   :  { %v2353_v9 = vpop.f32.mrf.mxu2  ;;  %v2562_v0 = vpop.f32.mrf.mxu3 }
 0x49a   :  { %v2354_v44 = vadd.f32 %v2353_v9, %v2145_v20  ;;  %v1938_v8 = vpop.f32.mrf.mxu0  ;;  %v2147_v34 = vpop.f32.mrf.mxu1 }
 0x49b   :  { %v2148_v27 = vadd.f32 %v2147_v34, %v1938_v8 }
 0x49c   :  { %v2563_v61 = vadd.f32 %v2562_v0, %v2354_v44 }
 0x49e   :  { %2704 = vst [vmem:[#allocation6 + $0x338] sm:$0xff] %v2563_v61 }
 0x4a1   :  { %v2356_v40 = vpop.f32.mrf.mxu2  ;;  %v2565_v11 = vpop.f32.mrf.mxu3 }
 0x4a2   :  { %v2357_v17 = vadd.f32 %v2356_v40, %v2148_v27  ;;  %v1941_v22 = vpop.f32.mrf.mxu0  ;;  %v2150_v63 = vpop.f32.mrf.mxu1 }
 0x4a3   :  { %v2151_v21 = vadd.f32 %v2150_v63, %v1941_v22 }
 0x4a4   :  { %v2566_v42 = vadd.f32 %v2565_v11, %v2357_v17 }
 0x4a6   :  { %2706 = vst [vmem:[#allocation6 + $0x348] sm:$0xff] %v2566_v42 }
 0x4a9   :  { %v2359_v50 = vpop.f32.mrf.mxu2  ;;  %v2568_v18 = vpop.f32.mrf.mxu3 }
 0x4aa   :  { %v2360_v23 = vadd.f32 %v2359_v50, %v2151_v21  ;;  %v1944_v51 = vpop.f32.mrf.mxu0  ;;  %v2153_v24 = vpop.f32.mrf.mxu1 }
 0x4ab   :  { %v2154_v15 = vadd.f32 %v2153_v24, %v1944_v51 }
 0x4ac   :  { %v2569_v36 = vadd.f32 %v2568_v18, %v2360_v23 }
 0x4ae   :  { %2708 = vst [vmem:[#allocation6 + $0x358] sm:$0xff] %v2569_v36 }
 0x4b1   :  { %v2362_v49 = vpop.f32.mrf.mxu2  ;;  %v2571_v30 = vpop.f32.mrf.mxu3 }
 0x4b2   :  { %v2363_v35 = vadd.f32 %v2362_v49, %v2154_v15  ;;  %v1947_v55 = vpop.f32.mrf.mxu0  ;;  %v2156_v43 = vpop.f32.mrf.mxu1 }
 0x4b3   :  { %v2157_v13 = vadd.f32 %v2156_v43, %v1947_v55 }
 0x4b4   :  { %v2572_v32 = vadd.f32 %v2571_v30, %v2363_v35 }
 0x4b6   :  { %2710 = vst [vmem:[#allocation6 + $0x368] sm:$0xff] %v2572_v32 }
 0x4b9   :  { %v2365_v10 = vpop.f32.mrf.mxu2  ;;  %v2574_v29 = vpop.f32.mrf.mxu3 }
 0x4ba   :  { %v2366_v57 = vadd.f32 %v2365_v10, %v2157_v13  ;;  %v1950_v12 = vpop.f32.mrf.mxu0  ;;  %v2159_v39 = vpop.f32.mrf.mxu1 }
 0x4bb   :  { %v2160_v25 = vadd.f32 %v2159_v39, %v1950_v12 }
 0x4bc   :  { %v2575_v4 = vadd.f32 %v2574_v29, %v2366_v57 }
 0x4be   :  { %2712 = vst [vmem:[#allocation6 + $0x378] sm:$0xff] %v2575_v4 }
 0x4c1   :  { %v2368_v28 = vpop.f32.mrf.mxu2  ;;  %v2577_v31 = vpop.f32.mrf.mxu3 }
 0x4c2   :  { %v2369_v48 = vadd.f32 %v2368_v28, %v2160_v25  ;;  %v1953_v38 = vpop.f32.mrf.mxu0  ;;  %v2162_v59 = vpop.f32.mrf.mxu1 }
 0x4c3   :  { %v2163_v7 = vadd.f32 %v2162_v59, %v1953_v38 }
 0x4c4   :  { %v2578_v60 = vadd.f32 %v2577_v31, %v2369_v48 }
 0x4c6   :  { %2714 = vst [vmem:[#allocation6 + $0x388] sm:$0xff] %v2578_v60 }
 0x4c9   :  { %v2371_v52 = vpop.f32.mrf.mxu2  ;;  %v2580_v47 = vpop.f32.mrf.mxu3 }
 0x4ca   :  { %v2372_v26 = vadd.f32 %v2371_v52, %v2163_v7  ;;  %v1956_v5 = vpop.f32.mrf.mxu0  ;;  %v2165_v58 = vpop.f32.mrf.mxu1 }
 0x4cb   :  { %v2166_v33 = vadd.f32 %v2165_v58, %v1956_v5 }
 0x4cc   :  { %v2581_v53 = vadd.f32 %v2580_v47, %v2372_v26 }
 0x4ce   :  { %2716 = vst [vmem:[#allocation6 + $0x398] sm:$0xff] %v2581_v53 }
 0x4d1   :  { %v2374_v16 = vpop.f32.mrf.mxu2  ;;  %v2583_v62 = vpop.f32.mrf.mxu3 }
 0x4d2   :  { %v2375_v54 = vadd.f32 %v2374_v16, %v2166_v33  ;;  %v1959_v56 = vpop.f32.mrf.mxu0  ;;  %v2168_v46 = vpop.f32.mrf.mxu1 }
 0x4d3   :  { %v2169_v19 = vadd.f32 %v2168_v46, %v1959_v56 }
 0x4d4   :  { %v2584_v3 = vadd.f32 %v2583_v62, %v2375_v54 }
 0x4d6   :  { %2718 = vst [vmem:[#allocation6 + $0x3a8] sm:$0xff] %v2584_v3 }
 0x4d9   :  { %v2377_v45 = vpop.f32.mrf.mxu2  ;;  %v2586_v2 = vpop.f32.mrf.mxu3 }
 0x4da   :  { %v2378_v1 = vadd.f32 %v2377_v45, %v2169_v19  ;;  %v1962_v41 = vpop.f32.mrf.mxu0  ;;  %v2171_v37 = vpop.f32.mrf.mxu1 }
 0x4db   :  { %v2172_v6 = vadd.f32 %v2171_v37, %v1962_v41 }
 0x4dc   :  { %v2587_v14 = vadd.f32 %v2586_v2, %v2378_v1 }
 0x4de   :  { %2720 = vst [vmem:[#allocation6 + $0x3b8] sm:$0xff] %v2587_v14 }
 0x4e1   :  { %v2380_v20 = vpop.f32.mrf.mxu2  ;;  %v2589_v9 = vpop.f32.mrf.mxu3 }
 0x4e2   :  { %v2381_v0 = vadd.f32 %v2380_v20, %v2172_v6  ;;  %v1965_v44 = vpop.f32.mrf.mxu0  ;;  %v2174_v8 = vpop.f32.mrf.mxu1 }
 0x4e3   :  { %v2175_v61 = vadd.f32 %v2174_v8, %v1965_v44 }
 0x4e4   :  { %v2590_v34 = vadd.f32 %v2589_v9, %v2381_v0 }
 0x4e6   :  { %2722 = vst [vmem:[#allocation6 + $0x3c8] sm:$0xff] %v2590_v34 }
 0x4e9   :  { %v2383_v27 = vpop.f32.mrf.mxu2  ;;  %v2592_v40 = vpop.f32.mrf.mxu3 }
 0x4ea   :  { %v2384_v11 = vadd.f32 %v2383_v27, %v2175_v61  ;;  %v1968_v17 = vpop.f32.mrf.mxu0  ;;  %v2177_v22 = vpop.f32.mrf.mxu1 }
 0x4eb   :  { %v2178_v42 = vadd.f32 %v2177_v22, %v1968_v17 }
 0x4ec   :  { %v2593_v63 = vadd.f32 %v2592_v40, %v2384_v11 }
 0x4ee   :  { %2724 = vst [vmem:[#allocation6 + $0x3d8] sm:$0xff] %v2593_v63 }
 0x4f1   :  { %v2386_v21 = vpop.f32.mrf.mxu2  ;;  %v2595_v50 = vpop.f32.mrf.mxu3 }
 0x4f2   :  { %v2387_v18 = vadd.f32 %v2386_v21, %v2178_v42  ;;  %v1971_v51 = vpop.f32.mrf.mxu0  ;;  %v2180_v24 = vpop.f32.mrf.mxu1 }
 0x4f3   :  { %v2181_v36 = vadd.f32 %v2180_v24, %v1971_v51 }
 0x4f4   :  { %v2596_v23 = vadd.f32 %v2595_v50, %v2387_v18 }
 0x4f6   :  { %2726 = vst [vmem:[#allocation6 + $0x3e8] sm:$0xff] %v2596_v23 }
 0x4f9   :  { %v2389_v15 = vpop.f32.mrf.mxu2  ;;  %v2598_v30 = vpop.f32.mrf.mxu3 }
 0x4fa   :  { %v2390_v49 = vadd.f32 %v2389_v15, %v2181_v36 }
 0x4fc   :  { %v2599_v35 = vadd.f32 %v2598_v30, %v2390_v49 }
 0x4fe   :  { %2728 = vst [vmem:[#allocation6 + $0x3f8] sm:$0xff] %v2599_v35 }
 0x4ff   :  { %2732 = vsyncadd [#allocation5], 4096  ;;  %s2735_s8 = sshll.u32 %s6247_s2, 4  ;;  %s3326_s9 = smov [#allocation6]   ;;  %s2736_s8 = int_to_ptr.hbm [resolvable:$true] %s2735_s8 }
 0x500   :  { %s2733_s10 = sshll.u32 %s3326_s9, 4  ;;  %s2734_s10 = int_to_ptr.vmem [resolvable:$true] %s2733_s10 }
 0x501   :  { %2741 = dma.vmem_to_hbm [thread:$0]  %s2734_s10, 12288, %s2736_s8, [#allocation5], %s3322_s14, %s3322_s14, %s3323_s15  }
 0x502   :  { %3319 = dma.done.wait [#allocation5], 16384  }
 0x503   :  { %3320 = vsyncadd [#allocation5], 4294950912 }
 0x504   :  { %2746 = vsyncpa [#allocation4], 1 }
 0x505   :  { %2747 = vsyncpa [#allocation5], 1 }

</bundles_post_ra>
